<compile_context>
chip_gen: v5e
topology: v5e:2x2
jax: 0.10.0
libtpu: 0.0.40
codegen_flags: <defaults>
</compile_context>

<pallas_src>
import functools

import jax
import jax.numpy as jnp
from jax import lax
from jax.experimental import pallas as pl
from jax.experimental.pallas import tpu as pltpu

LANES = 128   # lane width / padded output-channel count
_TM = 512     # M-tile for the tiled matmul kernels (>=512 rows ~ HBM roofline)


def _round_up(x, m):
    return (x + m - 1) // m * m


# ----------------------------------------------------------------------------
# Pallas kernels
# ----------------------------------------------------------------------------
def _matmul_bias_act_kernel(x_ref, w_ref, b_ref, o_ref, *, relu):
    """o = act(x @ w + b). bf16 operands, f32 MXU accumulation, lane-dense out."""
    acc = jnp.dot(x_ref[...], w_ref[...], preferred_element_type=jnp.float32)
    acc = acc + b_ref[...]
    if relu:
        acc = jnp.maximum(acc, 0.0)
    o_ref[...] = acc.astype(o_ref.dtype)


def _mlp_kernel(x_ref, w1_ref, b1_ref, w2_ref, b2_ref, o_ref):
    """Fused FC head: o = relu(x @ w1 + b1) @ w2 + b2 (both matmuls on MXU)."""
    h = jnp.dot(x_ref[...], w1_ref[...], preferred_element_type=jnp.float32)
    h = jnp.maximum(h + b1_ref[...], 0.0)
    o = jnp.dot(h.astype(jnp.bfloat16), w2_ref[...],
                preferred_element_type=jnp.float32)
    o_ref[...] = (o + b2_ref[...]).astype(o_ref.dtype)


# ----------------------------------------------------------------------------
# Pallas wrappers (tiled over M, lane-dense N, bf16 operands)
# ----------------------------------------------------------------------------
def matmul_bias_act(x, w, b, *, relu, out_dtype, tm=_TM):
    """x:[M,K] bf16, w:[K,Npad] bf16 (Npad % 128 == 0, K % 8 == 0), b:[1,Npad] f32."""
    m, k = x.shape
    k2, npad = w.shape
    assert k == k2 and npad % LANES == 0
    tm_eff = m if m <= tm else tm          # full-M block when small, else 512-row tiles
    grid_m = pl.cdiv(m, tm_eff)
    return pl.pallas_call(
        functools.partial(_matmul_bias_act_kernel, relu=relu),
        out_shape=jax.ShapeDtypeStruct((m, npad), out_dtype),
        grid=(grid_m,),
        in_specs=[
            pl.BlockSpec((tm_eff, k), lambda i: (i, 0)),
            pl.BlockSpec((k, npad), lambda i: (0, 0)),
            pl.BlockSpec((1, npad), lambda i: (0, 0)),
        ],
        out_specs=pl.BlockSpec((tm_eff, npad), lambda i: (i, 0)),
        compiler_params=pltpu.CompilerParams(dimension_semantics=("parallel",)),
    )(x, w, b)


def mlp_head(x, w1, b1, w2, b2, *, tm=_TM):
    """Fused fc1(+ReLU)+fc2.  x:[M,K1] bf16; weights pre-padded to 128 lanes."""
    m, k1 = x.shape
    _, h = w1.shape
    _, no = w2.shape
    tm_eff = m if m <= tm else tm
    grid_m = pl.cdiv(m, tm_eff)
    return pl.pallas_call(
        _mlp_kernel,
        out_shape=jax.ShapeDtypeStruct((m, no), jnp.float32),
        grid=(grid_m,),
        in_specs=[
            pl.BlockSpec((tm_eff, k1), lambda i: (i, 0)),
            pl.BlockSpec((k1, h), lambda i: (0, 0)),
            pl.BlockSpec((1, h), lambda i: (0, 0)),
            pl.BlockSpec((h, no), lambda i: (0, 0)),
            pl.BlockSpec((1, no), lambda i: (0, 0)),
        ],
        out_specs=pl.BlockSpec((tm_eff, no), lambda i: (i, 0)),
        compiler_params=pltpu.CompilerParams(dimension_semantics=("parallel",)),
    )(x, w1, b1, w2, b2)


# ----------------------------------------------------------------------------
# Conv / pool layers (NHWC)
# ----------------------------------------------------------------------------
def conv2d_relu_nhwc(x, w_kc, b_pad, *, k, out_c):
    """Valid kxk conv + ReLU via patch-matmul on the MXU.
    x:[N,H,W,Cin] bf16; w_kc:[Kpad,128] bf16 with rows in (kh,kw,ci) order;
    b_pad:[1,128] f32.  Returns [N,OH,OW,out_c] bf16."""
    n, hh, ww, cin = x.shape
    oh, ow = hh - k + 1, ww - k + 1
    kdim = k * k * cin
    kpad, npad = w_kc.shape
    # TODO(synk): fuse this im2col into the kernel as an in-VMEM shift-and-matmul
    # over the k*k taps (accumulator scratch + tap grid axis) to remove the k^2x
    # patch materialization in HBM; kept as XLA glue here for lowering safety.
    cols = [x[:, i:i + oh, j:j + ow, :] for i in range(k) for j in range(k)]
    patches = jnp.stack(cols, axis=3).reshape(n * oh * ow, kdim)
    if kpad != kdim:
        patches = jnp.pad(patches, ((0, 0), (0, kpad - kdim)))
    out = matmul_bias_act(patches, w_kc, b_pad, relu=True, out_dtype=jnp.bfloat16)
    out = out.reshape(n, oh, ow, npad)
    return out if out_c == npad else out[..., :out_c]


def maxpool2x2_nhwc(x):
    """2x2 / stride-2 max-pool in NHWC (channels stay on the lane axis)."""
    n, hh, ww, c = x.shape
    return x.reshape(n, hh // 2, 2, ww // 2, 2, c).max(axis=(2, 4))


# ----------------------------------------------------------------------------
# Parameters: PyTorch-layout init + one-time kernel-friendly re-layout
# ----------------------------------------------------------------------------
def init_params(key):
    ks = jax.random.split(key, 10)

    def conv_w(k_, oc, ic, ksz):
        fan_in = ic * ksz * ksz
        return jax.random.normal(k_, (oc, ic, ksz, ksz), jnp.float32) * fan_in ** -0.5

    def lin_w(k_, out_f, in_f):
        return jax.random.normal(k_, (out_f, in_f), jnp.float32) * in_f ** -0.5

    return {
        "conv1_w": conv_w(ks[0], 16, 1, 5),
        "conv1_b": jax.random.normal(ks[1], (16,), jnp.float32) * 0.01,
        "conv2_w": conv_w(ks[2], 32, 16, 5),
        "conv2_b": jax.random.normal(ks[3], (32,), jnp.float32) * 0.01,
        "conv3_w": conv_w(ks[4], 64, 32, 5),
        "conv3_b": jax.random.normal(ks[5], (64,), jnp.float32) * 0.01,
        "fc1_w": lin_w(ks[6], 100, 64 * 3 * 3),
        "fc1_b": jax.random.normal(ks[7], (100,), jnp.float32) * 0.01,
        "fc2_w": lin_w(ks[8], 10, 100),
        "fc2_b": jax.random.normal(ks[9], (10,), jnp.float32) * 0.01,
    }


def prepare_params(p):
    """One-time weight re-layout (outside the jitted forward): bf16 cast, output
    channels zero-padded to 128 lanes, K padded to a multiple of 8, conv weights
    in (kh,kw,ci)-row order, fc1 permuted to the NHWC(+channel-pad) flatten order
    with zero rows for padded channels so numerics match the PyTorch module."""
    def conv_prep(w, b):
        oc, ic, k, _ = w.shape
        kdim = k * k * ic
        kpad = _round_up(kdim, 8)
        wt = w.transpose(2, 3, 1, 0).reshape(kdim, oc)          # (kh,kw,ci) x oc
        wt = jnp.pad(wt, ((0, kpad - kdim), (0, LANES - oc)))
        bp = jnp.pad(b, (0, LANES - oc)).reshape(1, LANES)
        return wt.astype(jnp.bfloat16), bp.astype(jnp.float32)

    c1w, c1b = conv_prep(p["conv1_w"], p["conv1_b"])
    c2w, c2b = conv_prep(p["conv2_w"], p["conv2_b"])
    c3w, c3b = conv_prep(p["conv3_w"], p["conv3_b"])

    # fc1: [100, 576] with columns in torch (c,h,w) flatten order  ->  rows in the
    # kernel's NHWC (h, w, c_pad128) flatten order; padded channels -> zero rows.
    w1 = p["fc1_w"].reshape(100, 64, 3, 3).transpose(2, 3, 1, 0)     # [3,3,64,100]
    w1 = jnp.pad(w1, ((0, 0), (0, 0), (0, LANES - 64), (0, LANES - 100)))
    w1 = w1.reshape(3 * 3 * LANES, LANES).astype(jnp.bfloat16)       # [1152,128]
    b1 = jnp.pad(p["fc1_b"], (0, LANES - 100)).reshape(1, LANES).astype(jnp.float32)

    w2 = jnp.pad(p["fc2_w"].T, ((0, LANES - 100), (0, LANES - 10))).astype(jnp.bfloat16)
    b2 = jnp.pad(p["fc2_b"], (0, LANES - 10)).reshape(1, LANES).astype(jnp.float32)

    return {"c1_w": c1w, "c1_b": c1b, "c2_w": c2w, "c2_b": c2b,
            "c3_w": c3w, "c3_b": c3b, "fc1_w": w1, "fc1_b": b1,
            "fc2_w": w2, "fc2_b": b2}


# ----------------------------------------------------------------------------
# Forward pass
# ----------------------------------------------------------------------------
def cnn_forward(prepared, x_nchw):
    """x_nchw: [N, 1, 28, 28] f32 (PyTorch layout) -> logits [N, 10] f32."""
    n = x_nchw.shape[0]
    x = x_nchw.transpose(0, 2, 3, 1).astype(jnp.bfloat16)                # NHWC, once
    x = conv2d_relu_nhwc(x, prepared["c1_w"], prepared["c1_b"], k=5, out_c=16)   # [N,24,24,16]
    x = conv2d_relu_nhwc(x, prepared["c2_w"], prepared["c2_b"], k=5, out_c=32)   # [N,20,20,32]
    x = maxpool2x2_nhwc(x)                                                       # [N,10,10,32]
    # conv3 carries its zero lane-padding (64->128) through pool/flatten;
    # fc1 weights have zero rows for those padded channels.
    x = conv2d_relu_nhwc(x, prepared["c3_w"], prepared["c3_b"], k=5, out_c=LANES)  # [N,6,6,128]
    x = maxpool2x2_nhwc(x)                                                       # [N,3,3,128]
    x = x.reshape(n, 3 * 3 * LANES)                                              # [N,1152]
    logits = mlp_head(x, prepared["fc1_w"], prepared["fc1_b"],
                      prepared["fc2_w"], prepared["fc2_b"])                      # [N,128]
    return logits[:, :10]


# ----------------------------------------------------------------------------
# Pure-JAX f32 reference (mirrors the PyTorch module exactly) for validation
# ----------------------------------------------------------------------------
def _ref_forward(params, x):
    def conv(h, w, b):
        y = lax.conv_general_dilated(h, w, (1, 1), "VALID",
                                     dimension_numbers=("NCHW", "OIHW", "NCHW"))
        return jax.nn.relu(y + b[None, :, None, None])

    def pool(h):
        return lax.reduce_window(h, -jnp.inf, lax.max,
                                 (1, 1, 2, 2), (1, 1, 2, 2), "VALID")

    h = conv(x, params["conv1_w"], params["conv1_b"])
    h = conv(h, params["conv2_w"], params["conv2_b"])
    h = pool(h)
    h = conv(h, params["conv3_w"], params["conv3_b"])
    h = pool(h)
    h = h.reshape(x.shape[0], -1)
    h = jax.nn.relu(h @ params["fc1_w"].T + params["fc1_b"])
    return h @ params["fc2_w"].T + params["fc2_b"]


if __name__ == "__main__":
    key = jax.random.PRNGKey(0)
    k_params, k_x = jax.random.split(key)

    batch = 2
    x = jax.random.normal(k_x, (batch, 1, 28, 28), jnp.float32)
    params = init_params(k_params)
    prepared = prepare_params(params)          # one-time weight re-layout / cast

    logits = jax.jit(cnn_forward)(prepared, x)
    logits = jax.block_until_ready(logits)

    assert logits.shape == (batch, 10)
    assert logits.dtype == jnp.float32
    assert bool(jnp.all(jnp.isfinite(logits)))

    ref = _ref_forward(params, x)
    assert bool(jnp.allclose(logits, ref, atol=3e-1, rtol=1e-1)), (
        "Pallas forward diverged from f32 reference")

    print("KERNEL_OK")
</pallas_src>

<mosaic_0001>
module attributes {stable_mosaic.version = 11 : i64} {
  func.func @_matmul_bias_act_kernel(%arg0: i32, %arg1: memref<512x32xbf16, #tpu.memory_space<vmem>>, %arg2: memref<32x128xbf16, #tpu.memory_space<vmem>>, %arg3: memref<1x128xf32, #tpu.memory_space<vmem>>, %arg4: memref<512x128xbf16, #tpu.memory_space<vmem>>) attributes {dimension_semantics = [#tpu.dimension_semantics<parallel>], iteration_bounds = array<i64: 3>, scalar_prefetch = 0 : i64, scratch_operands = 0 : i64, tpu.core_type = #tpu.core_type<tc>, window_params = [{transform_indices = @transform_0, window_bounds = array<i64: 512, 32>}, {pipeline_mode = #tpu.pipeline_mode<synchronous>, transform_indices = @transform_1, window_bounds = array<i64: 32, 128>}, {pipeline_mode = #tpu.pipeline_mode<synchronous>, transform_indices = @transform_2, window_bounds = array<i64: 1, 128>}, {transform_indices = @transform_3, window_bounds = array<i64: 512, 128>}]} {
    %c0 = arith.constant 0 : index
    %c0_0 = arith.constant 0 : index
    %0 = vector.load %arg1[%c0, %c0_0] : memref<512x32xbf16, #tpu.memory_space<vmem>>, vector<512x32xbf16>
    %c0_1 = arith.constant 0 : index
    %c0_2 = arith.constant 0 : index
    %1 = vector.load %arg2[%c0_1, %c0_2] : memref<32x128xbf16, #tpu.memory_space<vmem>>, vector<32x128xbf16>
    %cst = arith.constant dense<0.000000e+00> : vector<512x128xf32>
    %2 = tpu.matmul %0, %1, %cst {dimension_numbers = #tpu.dot_dimension_numbers<[1], [0], [0], [1], [0, 0, 1, 1], [], []>} : vector<512x32xbf16>, vector<32x128xbf16>, vector<512x128xf32> -> vector<512x128xf32>
    %c0_3 = arith.constant 0 : index
    %c0_4 = arith.constant 0 : index
    %3 = vector.load %arg3[%c0_3, %c0_4] : memref<1x128xf32, #tpu.memory_space<vmem>>, vector<1x128xf32>
    %4 = vector.broadcast %3 : vector<1x128xf32> to vector<512x128xf32>
    %5 = arith.addf %2, %4 : vector<512x128xf32>
    %cst_5 = arith.constant 0.000000e+00 : f32
    %6 = vector.broadcast %cst_5 : f32 to vector<512x128xf32>
    %7 = arith.maximumf %5, %6 : vector<512x128xf32>
    %8 = arith.truncf %7 : vector<512x128xf32> to vector<512x128xbf16>
    %c0_6 = arith.constant 0 : index
    %c0_7 = arith.constant 0 : index
    %9 = vector.load %arg4[%c0_6, %c0_7] : memref<512x128xbf16, #tpu.memory_space<vmem>>, vector<512x128xbf16>
    tpu.vector_store %arg4[%c0_6, %c0_7], %8 {strides = array<i32>} : memref<512x128xbf16, #tpu.memory_space<vmem>>, vector<512x128xbf16>,
    return
  }
  func.func @transform_0(%arg0: i32) -> (i32, i32) {
    %c0_i32 = arith.constant 0 : i32
    %c0_i32_0 = arith.constant 0 : i32
    return %arg0, %c0_i32 : i32, i32
  }
  func.func @transform_1(%arg0: i32) -> (i32, i32) {
    %c0_i32 = arith.constant 0 : i32
    %c0_i32_0 = arith.constant 0 : i32
    %c0_i32_1 = arith.constant 0 : i32
    return %c0_i32, %c0_i32_0 : i32, i32
  }
  func.func @transform_2(%arg0: i32) -> (i32, i32) {
    %c0_i32 = arith.constant 0 : i32
    %c0_i32_0 = arith.constant 0 : i32
    %c0_i32_1 = arith.constant 0 : i32
    return %c0_i32, %c0_i32_0 : i32, i32
  }
  func.func @transform_3(%arg0: i32) -> (i32, i32) {
    %c0_i32 = arith.constant 0 : i32
    %c0_i32_0 = arith.constant 0 : i32
    return %arg0, %c0_i32 : i32, i32
  }
}

module attributes {stable_mosaic.version = 11 : i64} {
  func.func @_matmul_bias_act_kernel(%arg0: i32, %arg1: memref<512x400xbf16, #tpu.memory_space<vmem>>, %arg2: memref<400x128xbf16, #tpu.memory_space<vmem>>, %arg3: memref<1x128xf32, #tpu.memory_space<vmem>>, %arg4: memref<512x128xbf16, #tpu.memory_space<vmem>>) attributes {dimension_semantics = [#tpu.dimension_semantics<parallel>], iteration_bounds = array<i64: 2>, scalar_prefetch = 0 : i64, scratch_operands = 0 : i64, tpu.core_type = #tpu.core_type<tc>, window_params = [{transform_indices = @transform_0, window_bounds = array<i64: 512, 400>}, {pipeline_mode = #tpu.pipeline_mode<synchronous>, transform_indices = @transform_1, window_bounds = array<i64: 400, 128>}, {pipeline_mode = #tpu.pipeline_mode<synchronous>, transform_indices = @transform_2, window_bounds = array<i64: 1, 128>}, {transform_indices = @transform_3, window_bounds = array<i64: 512, 128>}]} {
    %c0 = arith.constant 0 : index
    %c0_0 = arith.constant 0 : index
    %0 = vector.load %arg1[%c0, %c0_0] : memref<512x400xbf16, #tpu.memory_space<vmem>>, vector<512x400xbf16>
    %c0_1 = arith.constant 0 : index
    %c0_2 = arith.constant 0 : index
    %1 = vector.load %arg2[%c0_1, %c0_2] : memref<400x128xbf16, #tpu.memory_space<vmem>>, vector<400x128xbf16>
    %cst = arith.constant dense<0.000000e+00> : vector<512x128xf32>
    %2 = tpu.matmul %0, %1, %cst {dimension_numbers = #tpu.dot_dimension_numbers<[1], [0], [0], [1], [0, 0, 1, 1], [], []>} : vector<512x400xbf16>, vector<400x128xbf16>, vector<512x128xf32> -> vector<512x128xf32>
    %c0_3 = arith.constant 0 : index
    %c0_4 = arith.constant 0 : index
    %3 = vector.load %arg3[%c0_3, %c0_4] : memref<1x128xf32, #tpu.memory_space<vmem>>, vector<1x128xf32>
    %4 = vector.broadcast %3 : vector<1x128xf32> to vector<512x128xf32>
    %5 = arith.addf %2, %4 : vector<512x128xf32>
    %cst_5 = arith.constant 0.000000e+00 : f32
    %6 = vector.broadcast %cst_5 : f32 to vector<512x128xf32>
    %7 = arith.maximumf %5, %6 : vector<512x128xf32>
    %8 = arith.truncf %7 : vector<512x128xf32> to vector<512x128xbf16>
    %c0_6 = arith.constant 0 : index
    %c0_7 = arith.constant 0 : index
    %9 = vector.load %arg4[%c0_6, %c0_7] : memref<512x128xbf16, #tpu.memory_space<vmem>>, vector<512x128xbf16>
    tpu.vector_store %arg4[%c0_6, %c0_7], %8 {strides = array<i32>} : memref<512x128xbf16, #tpu.memory_space<vmem>>, vector<512x128xbf16>,
    return
  }
  func.func @transform_0(%arg0: i32) -> (i32, i32) {
    %c0_i32 = arith.constant 0 : i32
    %c0_i32_0 = arith.constant 0 : i32
    return %arg0, %c0_i32 : i32, i32
  }
  func.func @transform_1(%arg0: i32) -> (i32, i32) {
    %c0_i32 = arith.constant 0 : i32
    %c0_i32_0 = arith.constant 0 : i32
    %c0_i32_1 = arith.constant 0 : i32
    return %c0_i32, %c0_i32_0 : i32, i32
  }
  func.func @transform_2(%arg0: i32) -> (i32, i32) {
    %c0_i32 = arith.constant 0 : i32
    %c0_i32_0 = arith.constant 0 : i32
    %c0_i32_1 = arith.constant 0 : i32
    return %c0_i32, %c0_i32_0 : i32, i32
  }
  func.func @transform_3(%arg0: i32) -> (i32, i32) {
    %c0_i32 = arith.constant 0 : i32
    %c0_i32_0 = arith.constant 0 : i32
    return %arg0, %c0_i32 : i32, i32
  }
}

module attributes {stable_mosaic.version = 11 : i64} {
  func.func @_matmul_bias_act_kernel(%arg0: i32, %arg1: memref<72x800xbf16, #tpu.memory_space<vmem>>, %arg2: memref<800x128xbf16, #tpu.memory_space<vmem>>, %arg3: memref<1x128xf32, #tpu.memory_space<vmem>>, %arg4: memref<72x128xbf16, #tpu.memory_space<vmem>>) attributes {dimension_semantics = [#tpu.dimension_semantics<parallel>], iteration_bounds = array<i64: 1>, scalar_prefetch = 0 : i64, scratch_operands = 0 : i64, tpu.core_type = #tpu.core_type<tc>, window_params = [{transform_indices = @transform_0, window_bounds = array<i64: 72, 800>}, {pipeline_mode = #tpu.pipeline_mode<synchronous>, transform_indices = @transform_1, window_bounds = array<i64: 800, 128>}, {pipeline_mode = #tpu.pipeline_mode<synchronous>, transform_indices = @transform_2, window_bounds = array<i64: 1, 128>}, {transform_indices = @transform_3, window_bounds = array<i64: 72, 128>}]} {
    %c0 = arith.constant 0 : index
    %c0_0 = arith.constant 0 : index
    %0 = vector.load %arg1[%c0, %c0_0] : memref<72x800xbf16, #tpu.memory_space<vmem>>, vector<72x800xbf16>
    %c0_1 = arith.constant 0 : index
    %c0_2 = arith.constant 0 : index
    %1 = vector.load %arg2[%c0_1, %c0_2] : memref<800x128xbf16, #tpu.memory_space<vmem>>, vector<800x128xbf16>
    %cst = arith.constant dense<0.000000e+00> : vector<72x128xf32>
    %2 = tpu.matmul %0, %1, %cst {dimension_numbers = #tpu.dot_dimension_numbers<[1], [0], [0], [1], [0, 0, 1, 1], [], []>} : vector<72x800xbf16>, vector<800x128xbf16>, vector<72x128xf32> -> vector<72x128xf32>
    %c0_3 = arith.constant 0 : index
    %c0_4 = arith.constant 0 : index
    %3 = vector.load %arg3[%c0_3, %c0_4] : memref<1x128xf32, #tpu.memory_space<vmem>>, vector<1x128xf32>
    %4 = vector.broadcast %3 : vector<1x128xf32> to vector<72x128xf32>
    %5 = arith.addf %2, %4 : vector<72x128xf32>
    %cst_5 = arith.constant 0.000000e+00 : f32
    %6 = vector.broadcast %cst_5 : f32 to vector<72x128xf32>
    %7 = arith.maximumf %5, %6 : vector<72x128xf32>
    %8 = arith.truncf %7 : vector<72x128xf32> to vector<72x128xbf16>
    %c0_6 = arith.constant 0 : index
    %c0_7 = arith.constant 0 : index
    %9 = vector.load %arg4[%c0_6, %c0_7] : memref<72x128xbf16, #tpu.memory_space<vmem>>, vector<72x128xbf16>
    tpu.vector_store %arg4[%c0_6, %c0_7], %8 {strides = array<i32>} : memref<72x128xbf16, #tpu.memory_space<vmem>>, vector<72x128xbf16>,
    return
  }
  func.func @transform_0(%arg0: i32) -> (i32, i32) {
    %c0_i32 = arith.constant 0 : i32
    %c0_i32_0 = arith.constant 0 : i32
    return %arg0, %c0_i32 : i32, i32
  }
  func.func @transform_1(%arg0: i32) -> (i32, i32) {
    %c0_i32 = arith.constant 0 : i32
    %c0_i32_0 = arith.constant 0 : i32
    %c0_i32_1 = arith.constant 0 : i32
    return %c0_i32, %c0_i32_0 : i32, i32
  }
  func.func @transform_2(%arg0: i32) -> (i32, i32) {
    %c0_i32 = arith.constant 0 : i32
    %c0_i32_0 = arith.constant 0 : i32
    %c0_i32_1 = arith.constant 0 : i32
    return %c0_i32, %c0_i32_0 : i32, i32
  }
  func.func @transform_3(%arg0: i32) -> (i32, i32) {
    %c0_i32 = arith.constant 0 : i32
    %c0_i32_0 = arith.constant 0 : i32
    return %arg0, %c0_i32 : i32, i32
  }
}

module attributes {stable_mosaic.version = 11 : i64} {
  func.func @_mlp_kernel(%arg0: i32, %arg1: memref<2x1152xbf16, #tpu.memory_space<vmem>>, %arg2: memref<1152x128xbf16, #tpu.memory_space<vmem>>, %arg3: memref<1x128xf32, #tpu.memory_space<vmem>>, %arg4: memref<128x128xbf16, #tpu.memory_space<vmem>>, %arg5: memref<1x128xf32, #tpu.memory_space<vmem>>, %arg6: memref<2x128xf32, #tpu.memory_space<vmem>>) attributes {dimension_semantics = [#tpu.dimension_semantics<parallel>], iteration_bounds = array<i64: 1>, scalar_prefetch = 0 : i64, scratch_operands = 0 : i64, tpu.core_type = #tpu.core_type<tc>, window_params = [{transform_indices = @transform_0, window_bounds = array<i64: 2, 1152>}, {pipeline_mode = #tpu.pipeline_mode<synchronous>, transform_indices = @transform_1, window_bounds = array<i64: 1152, 128>}, {pipeline_mode = #tpu.pipeline_mode<synchronous>, transform_indices = @transform_2, window_bounds = array<i64: 1, 128>}, {pipeline_mode = #tpu.pipeline_mode<synchronous>, transform_indices = @transform_3, window_bounds = array<i64: 128, 128>}, {pipeline_mode = #tpu.pipeline_mode<synchronous>, transform_indices = @transform_4, window_bounds = array<i64: 1, 128>}, {transform_indices = @transform_5, window_bounds = array<i64: 2, 128>}]} {
    %c0 = arith.constant 0 : index
    %c0_0 = arith.constant 0 : index
    %0 = vector.load %arg1[%c0, %c0_0] : memref<2x1152xbf16, #tpu.memory_space<vmem>>, vector<2x1152xbf16>
    %c0_1 = arith.constant 0 : index
    %c0_2 = arith.constant 0 : index
    %1 = vector.load %arg2[%c0_1, %c0_2] : memref<1152x128xbf16, #tpu.memory_space<vmem>>, vector<1152x128xbf16>
    %cst = arith.constant dense<0.000000e+00> : vector<2x128xf32>
    %2 = tpu.matmul %0, %1, %cst {dimension_numbers = #tpu.dot_dimension_numbers<[1], [0], [0], [1], [0, 0, 1, 1], [], []>} : vector<2x1152xbf16>, vector<1152x128xbf16>, vector<2x128xf32> -> vector<2x128xf32>
    %c0_3 = arith.constant 0 : index
    %c0_4 = arith.constant 0 : index
    %3 = vector.load %arg3[%c0_3, %c0_4] : memref<1x128xf32, #tpu.memory_space<vmem>>, vector<1x128xf32>
    %4 = vector.broadcast %3 : vector<1x128xf32> to vector<2x128xf32>
    %5 = arith.addf %2, %4 : vector<2x128xf32>
    %cst_5 = arith.constant 0.000000e+00 : f32
    %6 = vector.broadcast %cst_5 : f32 to vector<2x128xf32>
    %7 = arith.maximumf %5, %6 : vector<2x128xf32>
    %8 = arith.truncf %7 : vector<2x128xf32> to vector<2x128xbf16>
    %c0_6 = arith.constant 0 : index
    %c0_7 = arith.constant 0 : index
    %9 = vector.load %arg4[%c0_6, %c0_7] : memref<128x128xbf16, #tpu.memory_space<vmem>>, vector<128x128xbf16>
    %cst_8 = arith.constant dense<0.000000e+00> : vector<2x128xf32>
    %10 = tpu.matmul %8, %9, %cst_8 {dimension_numbers = #tpu.dot_dimension_numbers<[1], [0], [0], [1], [0, 0, 1, 1], [], []>} : vector<2x128xbf16>, vector<128x128xbf16>, vector<2x128xf32> -> vector<2x128xf32>
    %c0_9 = arith.constant 0 : index
    %c0_10 = arith.constant 0 : index
    %11 = vector.load %arg5[%c0_9, %c0_10] : memref<1x128xf32, #tpu.memory_space<vmem>>, vector<1x128xf32>
    %12 = vector.broadcast %11 : vector<1x128xf32> to vector<2x128xf32>
    %13 = arith.addf %10, %12 : vector<2x128xf32>
    %c0_11 = arith.constant 0 : index
    %c0_12 = arith.constant 0 : index
    %14 = vector.load %arg6[%c0_11, %c0_12] : memref<2x128xf32, #tpu.memory_space<vmem>>, vector<2x128xf32>
    tpu.vector_store %arg6[%c0_11, %c0_12], %13 {strides = array<i32>} : memref<2x128xf32, #tpu.memory_space<vmem>>, vector<2x128xf32>,
    return
  }
  func.func @transform_0(%arg0: i32) -> (i32, i32) {
    %c0_i32 = arith.constant 0 : i32
    %c0_i32_0 = arith.constant 0 : i32
    return %arg0, %c0_i32 : i32, i32
  }
  func.func @transform_1(%arg0: i32) -> (i32, i32) {
    %c0_i32 = arith.constant 0 : i32
    %c0_i32_0 = arith.constant 0 : i32
    %c0_i32_1 = arith.constant 0 : i32
    return %c0_i32, %c0_i32_0 : i32, i32
  }
  func.func @transform_2(%arg0: i32) -> (i32, i32) {
    %c0_i32 = arith.constant 0 : i32
    %c0_i32_0 = arith.constant 0 : i32
    %c0_i32_1 = arith.constant 0 : i32
    return %c0_i32, %c0_i32_0 : i32, i32
  }
  func.func @transform_3(%arg0: i32) -> (i32, i32) {
    %c0_i32 = arith.constant 0 : i32
    %c0_i32_0 = arith.constant 0 : i32
    %c0_i32_1 = arith.constant 0 : i32
    return %c0_i32, %c0_i32_0 : i32, i32
  }
  func.func @transform_4(%arg0: i32) -> (i32, i32) {
    %c0_i32 = arith.constant 0 : i32
    %c0_i32_0 = arith.constant 0 : i32
    %c0_i32_1 = arith.constant 0 : i32
    return %c0_i32, %c0_i32_0 : i32, i32
  }
  func.func @transform_5(%arg0: i32) -> (i32, i32) {
    %c0_i32 = arith.constant 0 : i32
    %c0_i32_0 = arith.constant 0 : i32
    return %arg0, %c0_i32 : i32, i32
  }
}

</mosaic_0001>

<bundles_post_ra>
// kernel: cnn_forward.4
= control target key start
LH: loop header
LB: loop body
LE: loop exit
PB: predicated region body
PF: predicated region fallthrough
CT: control target
= control target key end

     0   :  { %8 = vsyncpa [#allocation3], 0  ;;  %s2382_s0 = inlined_call_operand.vmem [shape: bf16[1152,32], index: 0, kind: input, shape index: {}]   ;;  %s2383_s1 = inlined_call_operand.hbm [shape: bf16[32,128], index: 1, kind: input, shape index: {}]   ;;  %s2384_s2 = inlined_call_operand.hbm [shape: f32[1,128], index: 2, kind: input, shape index: {}]   ;;  %s2385_s3 = inlined_call_operand.vmem [shape: bf16[1152,128], index: 3, kind: output, shape index: {}]  }
   0x1   :  { %9 = vsyncpa [#allocation5], 0  ;;  %s2011_s12 = smov 0   ;;  %s2013_s13 = smov 0  }
   0x2   :  { %s2015_s14 = smov 0  }
   0x3 LB: > { %s2024_s15 = sadd.s32 4294967295, %s1953_s14   ;;  %s2026_s16 = sadd.s32 1, %s1953_s14   ;;  %s1953_s14 = sphi %s2015_s14, %s2395_s14   ;;  %s1949_s13 = sphi %s2013_s13, %s2394_s13   ;;  %s1945_s12 = sphi %s2011_s12, %s2393_s12  }
   0x4   : > { %s87_s17 = ssub.s32 %s1953_s14, %s2026_s16  ;;  %s90_s18 = sadd.s32 1, %s1949_s13 }
   0x5   : > { %p88_p0 = scmp.eq.s32.totalorder %s87_s17, 0  ;;  %p100_p1 = scmp.ne.s32.totalorder %s1949_s13, %s1945_s12 }
   0x6   : > { %p101_p2 = scmp.eq.s32.totalorder %s2024_s15, 2  ;;  %p1290_p3 = scmp.ge.s32.totalorder %s1953_s14, 1 }
   0x7   : > { %s2034_s19 = scalar_select %p88_p0, %s1949_s13, %s90_s18  }
   0x8   : > { %p2036_p4 = por %p101_p2, %p100_p1  ;;  %p114_p5 = scmp.lt.s32.totalorder %s1953_s14, 4 }
   0x9   : > { %p1734_p6 = scmp.eq.s32.totalorder %s2024_s15, 0  ;;  %s125_s24 = sshll.u32 %s2383_s1, 4  ;;  %s126_s24 = int_to_ptr.hbm [resolvable:$true] %s125_s24 }
   0xa   : > { %p2041_p7 = pnand %p1290_p3, %p114_p5  ;;  %s1987_s25 = smov [#allocation2]  }
   0xb   : > { %s127_s26 = sshll.u32 %s1987_s25, 4  ;;  %s140_s29 = sshll.u32 %s2384_s2, 4  ;;  %s128_s26 = int_to_ptr.vmem [resolvable:$true] %s127_s26  ;;  %s141_s29 = int_to_ptr.hbm [resolvable:$true] %s140_s29 }
   0xc   : > { %p1727_p8 = pneg %p2041_p7  ;;  %s1988_s30 = smov 64  }
   0xd   : > { %s1989_s4 = smov 4   ;;  %s1990_s5 = smov [#allocation4]  }
   0xe   : > { %p1728_p9 = pnand %p1734_p6, %p1727_p8  ;;  %s142_s6 = sshll.u32 %s1990_s5, 4  ;;  %s143_s6 = int_to_ptr.vmem [resolvable:$true] %s142_s6 }
   0xf   : > { %172 = sbr.rel (%p2041_p7) target bundleno = 357 (0x165), region = 32 }
  0x10   : > { %1730 = dma.hbm_to_vmem [thread:$0]  (!%p1728_p9), %s126_s24, 256, %s128_s26, [#allocation3], %s1988_s30, %s1988_s30, %s1989_s4  }
  0x11   : > { %1733 = dma.hbm_to_vmem [thread:$0]  (!%p1728_p9), %s141_s29, 16, %s143_s6, [#allocation5]  }
  0x14   : > { %1936 = dma.done.wait (%p1734_p6), [#allocation3], 256  }
  0x15   : > { %1938 = vsyncadd (%p1734_p6), [#allocation3], 4294967040 }
  0x16   : > { %1940 = dma.done.wait (%p1734_p6), [#allocation5], 16  }
  0x17   : > { %1942 = vsyncadd (%p1734_p6), [#allocation5], 4294967280  ;;  %s2066_s7 = sshll.u32 %s2024_s15, 6  ;;  %v1518_v0 = vld [vmem:[#allocation2 + $0x8] sm:$0xff]  ;;  %v1517_v1 = vld [vmem:[#allocation2] sm:$0xff]  ;;  %vm469_vm0 = vcmask 261120  }
  0x18   : > { %p210_p10 = scmp.lt.s32.totalorder %s2066_s7, 143  ;;  %572 = vmatpush.bf16.msra.mxu0 %v1518_v0  ;;  %1713 = vmatpush.bf16.msra.mxu1 %v1518_v0  ;;  %v2139_v36 = vld [vmem:[#allocation4] ss:$0 sm:$0xff]  ;;  %s202_s17 = sand.u32 1, %s1945_s12  }
  0x19   : > { %1714 = vmatpush.bf16.msra.mxu2 %v1518_v0  ;;  %1715 = vmatpush.bf16.msra.mxu3 %v1518_v0  ;;  %s1297_s18 = sshll.u32 %s202_s17, 8  ;;  %s935_s21 = ssub.s32 (%p2036_p4), 144, %s2066_s7 }
  0x1a   : > { %s211_s8 = scalar_select %p210_p10, %s2066_s7, 143 }
  0x1b   : > { %s2148_s12 = scalar_lea.vmem [#allocation6], %s1297_s18   ;;  %s1519_s22 = sshll.u32 (%p2036_p4), %s2024_s15, 8 }
  0x1c   : > { %s1299_s9 = sshll.u32 %s211_s8, 2  ;;  %573 = vmatpush.bf16.msra.mxu0 %v1517_v1  ;;  %1716 = vmatpush.bf16.msra.mxu1 %v1517_v1  ;;  %p936_p11 = scmp.lt.s32.totalorder (%p2036_p4), %s935_s21, 64 }
  0x1d   : > { %s2073_s14 = scalar_lea.vmem %s2382_s0, %s1299_s9  ;;  %1717 = vmatpush.bf16.msra.mxu2 %v1517_v1  ;;  %1718 = vmatpush.bf16.msra.mxu3 %v1517_v1  ;;  %s2247_s25 = scalar_lea.vmem (%p2036_p4), %s2385_s3, %s1519_s22  }
  0x1e   : > { %v1485_v2 = vld [vmem:[%s2073_s14] sm:$0xff]  ;;  %v1486_v6 = vld [vmem:[%s2073_s14 + $0x8] sm:$0xff]  ;;  %v1487_v10 = vld [vmem:[%s2073_s14 + $0x10] sm:$0xff] }
  0x1f   : > { %v1493_v3 = vld [vmem:[%s2073_s14 + $0x40] sm:$0xff]  ;;  %1436 = vmatmul.msk.bf16.vlgmr.msra.gmra.mxu0 %vm469_vm0, %v1485_v2  ;;  %v1494_v7 = vld [vmem:[%s2073_s14 + $0x48] sm:$0xff]  ;;  %v1495_v11 = vld [vmem:[%s2073_s14 + $0x50] sm:$0xff] }
  0x20   : > { %v1501_v4 = vld [vmem:[%s2073_s14 + $0x80] sm:$0xff]  ;;  %1444 = vmatmul.msk.bf16.vlgmr.msra.gmra.mxu1 %vm469_vm0, %v1493_v3  ;;  %v1502_v8 = vld [vmem:[%s2073_s14 + $0x88] sm:$0xff]  ;;  %v1503_v12 = vld [vmem:[%s2073_s14 + $0x90] sm:$0xff] }
  0x21   : > { %v1509_v5 = vld [vmem:[%s2073_s14 + $0xc0] sm:$0xff]  ;;  %1452 = vmatmul.msk.bf16.vlgmr.msra.gmra.mxu2 %vm469_vm0, %v1501_v4  ;;  %v1510_v9 = vld [vmem:[%s2073_s14 + $0xc8] sm:$0xff]  ;;  %v1511_v13 = vld [vmem:[%s2073_s14 + $0xd0] sm:$0xff] }
  0x22   : > { %1460 = vmatmul.msk.bf16.vlgmr.msra.gmra.mxu3 %vm469_vm0, %v1509_v5  ;;  %v1488_v14 = vld [vmem:[%s2073_s14 + $0x18] sm:$0xff]  ;;  %v1489_v18 = vld [vmem:[%s2073_s14 + $0x20] sm:$0xff]  ;;  %v1490_v22 = vld [vmem:[%s2073_s14 + $0x28] sm:$0xff] }
  0x23   : > { %v1496_v15 = vld [vmem:[%s2073_s14 + $0x58] sm:$0xff]  ;;  %v1497_v19 = vld [vmem:[%s2073_s14 + $0x60] sm:$0xff]  ;;  %v1498_v23 = vld [vmem:[%s2073_s14 + $0x68] sm:$0xff] }
  0x24   : > { %v1504_v16 = vld [vmem:[%s2073_s14 + $0x98] sm:$0xff]  ;;  %v1505_v20 = vld [vmem:[%s2073_s14 + $0xa0] sm:$0xff]  ;;  %v1506_v24 = vld [vmem:[%s2073_s14 + $0xa8] sm:$0xff] }
  0x25   : > { %v1512_v17 = vld [vmem:[%s2073_s14 + $0xd8] sm:$0xff]  ;;  %v1513_v21 = vld [vmem:[%s2073_s14 + $0xe0] sm:$0xff]  ;;  %v1514_v25 = vld [vmem:[%s2073_s14 + $0xe8] sm:$0xff] }
  0x26   : > { %v1491_v26 = vld [vmem:[%s2073_s14 + $0x30] sm:$0xff]  ;;  %v1492_v30 = vld [vmem:[%s2073_s14 + $0x38] sm:$0xff] }
  0x27   : > { %v1499_v27 = vld [vmem:[%s2073_s14 + $0x70] sm:$0xff]  ;;  %v1500_v31 = vld [vmem:[%s2073_s14 + $0x78] sm:$0xff] }
  0x28   : > { %v1507_v28 = vld [vmem:[%s2073_s14 + $0xb0] sm:$0xff]  ;;  %v1508_v32 = vld [vmem:[%s2073_s14 + $0xb8] sm:$0xff] }
  0x29   : > { %v1515_v29 = vld [vmem:[%s2073_s14 + $0xf0] sm:$0xff]  ;;  %v1516_v33 = vld [vmem:[%s2073_s14 + $0xf8] sm:$0xff] }
  0x2f   : > { %1437 = vmatmul.msk.bf16.gmra.mxu0 %vm469_vm0, %v1486_v6 }
  0x30   : > { %1445 = vmatmul.msk.bf16.gmra.mxu1 %vm469_vm0, %v1494_v7 }
  0x31   : > { %1453 = vmatmul.msk.bf16.gmra.mxu2 %vm469_vm0, %v1502_v8 }
  0x32   : > { %1461 = vmatmul.msk.bf16.gmra.mxu3 %vm469_vm0, %v1510_v9 }
  0x3f   : > { %1438 = vmatmul.msk.bf16.gmra.mxu0 %vm469_vm0, %v1487_v10 }
  0x40   : > { %1446 = vmatmul.msk.bf16.gmra.mxu1 %vm469_vm0, %v1495_v11 }
  0x41   : > { %1454 = vmatmul.msk.bf16.gmra.mxu2 %vm469_vm0, %v1503_v12 }
  0x42   : > { %1462 = vmatmul.msk.bf16.gmra.mxu3 %vm469_vm0, %v1511_v13 }
  0x4f   : > { %1439 = vmatmul.msk.bf16.gmra.mxu0 %vm469_vm0, %v1488_v14 }
  0x50   : > { %1447 = vmatmul.msk.bf16.gmra.mxu1 %vm469_vm0, %v1496_v15 }
  0x51   : > { %1455 = vmatmul.msk.bf16.gmra.mxu2 %vm469_vm0, %v1504_v16 }
  0x52   : > { %1463 = vmatmul.msk.bf16.gmra.mxu3 %vm469_vm0, %v1512_v17 }
  0x5f   : > { %1440 = vmatmul.msk.bf16.gmra.mxu0 %vm469_vm0, %v1489_v18 }
  0x60   : > { %1448 = vmatmul.msk.bf16.gmra.mxu1 %vm469_vm0, %v1497_v19 }
  0x61   : > { %1456 = vmatmul.msk.bf16.gmra.mxu2 %vm469_vm0, %v1505_v20 }
  0x62   : > { %1464 = vmatmul.msk.bf16.gmra.mxu3 %vm469_vm0, %v1513_v21 }
  0x6f   : > { %1441 = vmatmul.msk.bf16.gmra.mxu0 %vm469_vm0, %v1490_v22 }
  0x70   : > { %1449 = vmatmul.msk.bf16.gmra.mxu1 %vm469_vm0, %v1498_v23 }
  0x71   : > { %1457 = vmatmul.msk.bf16.gmra.mxu2 %vm469_vm0, %v1506_v24 }
  0x72   : > { %1465 = vmatmul.msk.bf16.gmra.mxu3 %vm469_vm0, %v1514_v25 }
  0x7f   : > { %1442 = vmatmul.msk.bf16.gmra.mxu0 %vm469_vm0, %v1491_v26 }
  0x80   : > { %1450 = vmatmul.msk.bf16.gmra.mxu1 %vm469_vm0, %v1499_v27 }
  0x81   : > { %1458 = vmatmul.msk.bf16.gmra.mxu2 %vm469_vm0, %v1507_v28 }
  0x82   : > { %1466 = vmatmul.msk.bf16.gmra.mxu3 %vm469_vm0, %v1515_v29 }
  0x8f   : > { %1443 = vmatmul.msk.bf16.gmra.mxu0 %vm469_vm0, %v1492_v30 }
  0x90   : > { %1451 = vmatmul.msk.bf16.gmra.mxu1 %vm469_vm0, %v1500_v31 }
  0x91   : > { %1459 = vmatmul.msk.bf16.gmra.mxu2 %vm469_vm0, %v1508_v32 }
  0x92   : > { %1467 = vmatmul.msk.bf16.gmra.mxu3 %vm469_vm0, %v1516_v33 }
  0x9c   : > { %v575_v34 = vpop.f32.mrf.mxu0 }
  0x9d   : > { %v615_v35 = vpop.f32.mrf.mxu1  ;;  %v576_v37 = vadd.f32 %v2139_v36, %v575_v34 }
  0x9e   : > { %v616_v38 = vadd.f32 %v2139_v36, %v615_v35 }
  0x9f   : > { %v735_v45 = vmax.f32 %v576_v37, 0.0 }
  0xa0   : > { %v751_v46 = vmax.f32 %v616_v38, 0.0 }
  0xa4   : > { %v655_v39 = vpop.f32.mrf.mxu2  ;;  %v577_v41 = vpop.f32.mrf.mxu0 }
  0xa5   : > { %v695_v40 = vpop.f32.mrf.mxu3  ;;  %v617_v42 = vpop.f32.mrf.mxu1  ;;  %v578_v43 = vadd.f32 %v2139_v36, %v577_v41  ;;  %v656_v51 = vadd.f32 %v2139_v36, %v655_v39 }
  0xa6   : > { %v618_v44 = vadd.f32 %v2139_v36, %v617_v42  ;;  %v696_v52 = vadd.f32 %v2139_v36, %v695_v40 }
  0xa7   : > { %v736_v47 = vmax.f32 %v578_v43, 0.0  ;;  %v767_v59 = vmax.f32 %v656_v51, 0.0 }
  0xa8   : > { %v752_v48 = vmax.f32 %v618_v44, 0.0  ;;  %v783_v60 = vmax.f32 %v696_v52, 0.0 }
  0xa9   : > { %v1525_v49 = vpack.c.bf16 %v736_v47, %v735_v45 }
  0xaa   : > { %v1565_v50 = vpack.c.bf16 %v752_v48, %v751_v46 }
  0xab   : > { %1526 = vst [vmem:[%s2148_s12] sm:$0xff] %v1525_v49  }
  0xac   : > { %v657_v53 = vpop.f32.mrf.mxu2  ;;  %1689 = vst [vmem:[%s2148_s12 + $0x40] sm:$0xff] %v1565_v50   ;;  %v580_v57 = vpop.f32.mrf.mxu0 }
  0xad   : > { %v697_v54 = vpop.f32.mrf.mxu3  ;;  %v658_v55 = vadd.f32 %v2139_v36, %v657_v53  ;;  %v620_v58 = vpop.f32.mrf.mxu1  ;;  %v581_v1 = vadd.f32 %v2139_v36, %v580_v57 }
  0xae   : > { %v698_v56 = vadd.f32 %v2139_v36, %v697_v54  ;;  %v621_v2 = vadd.f32 %v2139_v36, %v620_v58 }
  0xaf   : > { %v768_v61 = vmax.f32 %v658_v55, 0.0  ;;  %v737_v9 = vmax.f32 %v581_v1, 0.0 }
  0xb0   : > { %v784_v62 = vmax.f32 %v698_v56, 0.0  ;;  %v753_v10 = vmax.f32 %v621_v2, 0.0 }
  0xb1   : > { %v1605_v63 = vpack.c.bf16 %v768_v61, %v767_v59 }
  0xb2   : > { %v1645_v0 = vpack.c.bf16 %v784_v62, %v783_v60 }
  0xb3   : > { %1697 = vst [vmem:[%s2148_s12 + $0x80] sm:$0xff] %v1605_v63  }
  0xb4   : > { %1705 = vst [vmem:[%s2148_s12 + $0xc0] sm:$0xff] %v1645_v0   ;;  %v660_v3 = vpop.f32.mrf.mxu2  ;;  %v582_v5 = vpop.f32.mrf.mxu0 }
  0xb5   : > { %v700_v4 = vpop.f32.mrf.mxu3  ;;  %v622_v6 = vpop.f32.mrf.mxu1  ;;  %v583_v7 = vadd.f32 %v2139_v36, %v582_v5  ;;  %v661_v15 = vadd.f32 %v2139_v36, %v660_v3 }
  0xb6   : > { %v623_v8 = vadd.f32 %v2139_v36, %v622_v6  ;;  %v701_v16 = vadd.f32 %v2139_v36, %v700_v4 }
  0xb7   : > { %v738_v11 = vmax.f32 %v583_v7, 0.0  ;;  %v769_v23 = vmax.f32 %v661_v15, 0.0 }
  0xb8   : > { %v754_v12 = vmax.f32 %v623_v8, 0.0  ;;  %v785_v24 = vmax.f32 %v701_v16, 0.0 }
  0xb9   : > { %v1530_v13 = vpack.c.bf16 %v738_v11, %v737_v9 }
  0xba   : > { %v1570_v14 = vpack.c.bf16 %v754_v12, %v753_v10 }
  0xbb   : > { %1682 = vst [vmem:[%s2148_s12 + $0x8] sm:$0xff] %v1530_v13  }
  0xbc   : > { %v662_v17 = vpop.f32.mrf.mxu2  ;;  %1690 = vst [vmem:[%s2148_s12 + $0x48] sm:$0xff] %v1570_v14   ;;  %v585_v21 = vpop.f32.mrf.mxu0 }
  0xbd   : > { %v702_v18 = vpop.f32.mrf.mxu3  ;;  %v663_v19 = vadd.f32 %v2139_v36, %v662_v17  ;;  %v625_v22 = vpop.f32.mrf.mxu1  ;;  %v586_v29 = vadd.f32 %v2139_v36, %v585_v21 }
  0xbe   : > { %v703_v20 = vadd.f32 %v2139_v36, %v702_v18  ;;  %v626_v30 = vadd.f32 %v2139_v36, %v625_v22 }
  0xbf   : > { %v770_v25 = vmax.f32 %v663_v19, 0.0  ;;  %v739_v38 = vmax.f32 %v586_v29, 0.0 }
  0xc0   : > { %v786_v26 = vmax.f32 %v703_v20, 0.0  ;;  %v755_v39 = vmax.f32 %v626_v30, 0.0 }
  0xc1   : > { %v1610_v27 = vpack.c.bf16 %v770_v25, %v769_v23 }
  0xc2   : > { %v1650_v28 = vpack.c.bf16 %v786_v26, %v785_v24 }
  0xc3   : > { %1698 = vst [vmem:[%s2148_s12 + $0x88] sm:$0xff] %v1610_v27  }
  0xc4   : > { %1706 = vst [vmem:[%s2148_s12 + $0xc8] sm:$0xff] %v1650_v28   ;;  %v665_v31 = vpop.f32.mrf.mxu2  ;;  %v587_v33 = vpop.f32.mrf.mxu0 }
  0xc5   : > { %v705_v32 = vpop.f32.mrf.mxu3  ;;  %v627_v34 = vpop.f32.mrf.mxu1  ;;  %v588_v35 = vadd.f32 %v2139_v36, %v587_v33  ;;  %v666_v44 = vadd.f32 %v2139_v36, %v665_v31 }
  0xc6   : > { %v628_v37 = vadd.f32 %v2139_v36, %v627_v34  ;;  %v706_v45 = vadd.f32 %v2139_v36, %v705_v32 }
  0xc7   : > { %v740_v40 = vmax.f32 %v588_v35, 0.0  ;;  %v771_v52 = vmax.f32 %v666_v44, 0.0 }
  0xc8   : > { %v756_v41 = vmax.f32 %v628_v37, 0.0  ;;  %v787_v53 = vmax.f32 %v706_v45, 0.0 }
  0xc9   : > { %v1535_v42 = vpack.c.bf16 %v740_v40, %v739_v38 }
  0xca   : > { %v1575_v43 = vpack.c.bf16 %v756_v41, %v755_v39 }
  0xcb   : > { %1683 = vst [vmem:[%s2148_s12 + $0x10] sm:$0xff] %v1535_v42  }
  0xcc   : > { %v667_v46 = vpop.f32.mrf.mxu2  ;;  %1691 = vst [vmem:[%s2148_s12 + $0x50] sm:$0xff] %v1575_v43   ;;  %v590_v50 = vpop.f32.mrf.mxu0 }
  0xcd   : > { %v707_v47 = vpop.f32.mrf.mxu3  ;;  %v668_v48 = vadd.f32 %v2139_v36, %v667_v46  ;;  %v630_v51 = vpop.f32.mrf.mxu1  ;;  %v591_v58 = vadd.f32 %v2139_v36, %v590_v50 }
  0xce   : > { %v708_v49 = vadd.f32 %v2139_v36, %v707_v47  ;;  %v631_v59 = vadd.f32 %v2139_v36, %v630_v51 }
  0xcf   : > { %v772_v54 = vmax.f32 %v668_v48, 0.0  ;;  %v741_v2 = vmax.f32 %v591_v58, 0.0 }
  0xd0   : > { %v788_v55 = vmax.f32 %v708_v49, 0.0  ;;  %v757_v3 = vmax.f32 %v631_v59, 0.0 }
  0xd1   : > { %v1615_v56 = vpack.c.bf16 %v772_v54, %v771_v52 }
  0xd2   : > { %v1655_v57 = vpack.c.bf16 %v788_v55, %v787_v53 }
  0xd3   : > { %1699 = vst [vmem:[%s2148_s12 + $0x90] sm:$0xff] %v1615_v56  }
  0xd4   : > { %1707 = vst [vmem:[%s2148_s12 + $0xd0] sm:$0xff] %v1655_v57   ;;  %v670_v60 = vpop.f32.mrf.mxu2  ;;  %v592_v62 = vpop.f32.mrf.mxu0 }
  0xd5   : > { %v710_v61 = vpop.f32.mrf.mxu3  ;;  %v632_v63 = vpop.f32.mrf.mxu1  ;;  %v593_v0 = vadd.f32 %v2139_v36, %v592_v62  ;;  %v671_v8 = vadd.f32 %v2139_v36, %v670_v60 }
  0xd6   : > { %v633_v1 = vadd.f32 %v2139_v36, %v632_v63  ;;  %v711_v9 = vadd.f32 %v2139_v36, %v710_v61 }
  0xd7   : > { %v742_v4 = vmax.f32 %v593_v0, 0.0  ;;  %v773_v16 = vmax.f32 %v671_v8, 0.0 }
  0xd8   : > { %v758_v5 = vmax.f32 %v633_v1, 0.0  ;;  %v789_v17 = vmax.f32 %v711_v9, 0.0 }
  0xd9   : > { %v1540_v6 = vpack.c.bf16 %v742_v4, %v741_v2 }
  0xda   : > { %v1580_v7 = vpack.c.bf16 %v758_v5, %v757_v3 }
  0xdb   : > { %1684 = vst [vmem:[%s2148_s12 + $0x18] sm:$0xff] %v1540_v6  }
  0xdc   : > { %v672_v10 = vpop.f32.mrf.mxu2  ;;  %1692 = vst [vmem:[%s2148_s12 + $0x58] sm:$0xff] %v1580_v7   ;;  %v595_v14 = vpop.f32.mrf.mxu0 }
  0xdd   : > { %v712_v11 = vpop.f32.mrf.mxu3  ;;  %v673_v12 = vadd.f32 %v2139_v36, %v672_v10  ;;  %v635_v15 = vpop.f32.mrf.mxu1  ;;  %v596_v22 = vadd.f32 %v2139_v36, %v595_v14 }
  0xde   : > { %v713_v13 = vadd.f32 %v2139_v36, %v712_v11  ;;  %v636_v23 = vadd.f32 %v2139_v36, %v635_v15 }
  0xdf   : > { %v774_v18 = vmax.f32 %v673_v12, 0.0  ;;  %v743_v30 = vmax.f32 %v596_v22, 0.0 }
  0xe0   : > { %v790_v19 = vmax.f32 %v713_v13, 0.0  ;;  %v759_v31 = vmax.f32 %v636_v23, 0.0 }
  0xe1   : > { %v1620_v20 = vpack.c.bf16 %v774_v18, %v773_v16 }
  0xe2   : > { %v1660_v21 = vpack.c.bf16 %v790_v19, %v789_v17 }
  0xe3   : > { %1700 = vst [vmem:[%s2148_s12 + $0x98] sm:$0xff] %v1620_v20  }
  0xe4   : > { %1708 = vst [vmem:[%s2148_s12 + $0xd8] sm:$0xff] %v1660_v21   ;;  %v675_v24 = vpop.f32.mrf.mxu2  ;;  %v597_v26 = vpop.f32.mrf.mxu0 }
  0xe5   : > { %v715_v25 = vpop.f32.mrf.mxu3  ;;  %v637_v27 = vpop.f32.mrf.mxu1  ;;  %v598_v28 = vadd.f32 %v2139_v36, %v597_v26  ;;  %v676_v37 = vadd.f32 %v2139_v36, %v675_v24 }
  0xe6   : > { %v638_v29 = vadd.f32 %v2139_v36, %v637_v27  ;;  %v716_v38 = vadd.f32 %v2139_v36, %v715_v25 }
  0xe7   : > { %v744_v32 = vmax.f32 %v598_v28, 0.0  ;;  %v775_v45 = vmax.f32 %v676_v37, 0.0 }
  0xe8   : > { %v760_v33 = vmax.f32 %v638_v29, 0.0  ;;  %v791_v46 = vmax.f32 %v716_v38, 0.0 }
  0xe9   : > { %v1545_v34 = vpack.c.bf16 %v744_v32, %v743_v30 }
  0xea   : > { %v1585_v35 = vpack.c.bf16 %v760_v33, %v759_v31 }
  0xeb   : > { %1685 = vst [vmem:[%s2148_s12 + $0x20] sm:$0xff] %v1545_v34  }
  0xec   : > { %v677_v39 = vpop.f32.mrf.mxu2  ;;  %1693 = vst [vmem:[%s2148_s12 + $0x60] sm:$0xff] %v1585_v35   ;;  %v600_v43 = vpop.f32.mrf.mxu0 }
  0xed   : > { %v717_v40 = vpop.f32.mrf.mxu3  ;;  %v678_v41 = vadd.f32 %v2139_v36, %v677_v39  ;;  %v640_v44 = vpop.f32.mrf.mxu1  ;;  %v601_v51 = vadd.f32 %v2139_v36, %v600_v43 }
  0xee   : > { %v718_v42 = vadd.f32 %v2139_v36, %v717_v40  ;;  %v641_v52 = vadd.f32 %v2139_v36, %v640_v44 }
  0xef   : > { %v776_v47 = vmax.f32 %v678_v41, 0.0  ;;  %v745_v59 = vmax.f32 %v601_v51, 0.0 }
  0xf0   : > { %v792_v48 = vmax.f32 %v718_v42, 0.0  ;;  %v761_v60 = vmax.f32 %v641_v52, 0.0 }
  0xf1   : > { %v1625_v49 = vpack.c.bf16 %v776_v47, %v775_v45 }
  0xf2   : > { %v1665_v50 = vpack.c.bf16 %v792_v48, %v791_v46 }
  0xf3   : > { %1701 = vst [vmem:[%s2148_s12 + $0xa0] sm:$0xff] %v1625_v49  }
  0xf4   : > { %1709 = vst [vmem:[%s2148_s12 + $0xe0] sm:$0xff] %v1665_v50   ;;  %v680_v53 = vpop.f32.mrf.mxu2  ;;  %v602_v55 = vpop.f32.mrf.mxu0 }
  0xf5   : > { %v720_v54 = vpop.f32.mrf.mxu3  ;;  %v642_v56 = vpop.f32.mrf.mxu1  ;;  %v603_v57 = vadd.f32 %v2139_v36, %v602_v55  ;;  %v681_v1 = vadd.f32 %v2139_v36, %v680_v53 }
  0xf6   : > { %v643_v58 = vadd.f32 %v2139_v36, %v642_v56  ;;  %v721_v2 = vadd.f32 %v2139_v36, %v720_v54 }
  0xf7   : > { %v746_v61 = vmax.f32 %v603_v57, 0.0  ;;  %v777_v9 = vmax.f32 %v681_v1, 0.0 }
  0xf8   : > { %v762_v62 = vmax.f32 %v643_v58, 0.0  ;;  %v793_v10 = vmax.f32 %v721_v2, 0.0 }
  0xf9   : > { %v1550_v63 = vpack.c.bf16 %v746_v61, %v745_v59 }
  0xfa   : > { %v1590_v0 = vpack.c.bf16 %v762_v62, %v761_v60 }
  0xfb   : > { %1686 = vst [vmem:[%s2148_s12 + $0x28] sm:$0xff] %v1550_v63  }
  0xfc   : > { %v682_v3 = vpop.f32.mrf.mxu2  ;;  %1694 = vst [vmem:[%s2148_s12 + $0x68] sm:$0xff] %v1590_v0   ;;  %v605_v7 = vpop.f32.mrf.mxu0 }
  0xfd   : > { %v722_v4 = vpop.f32.mrf.mxu3  ;;  %v683_v5 = vadd.f32 %v2139_v36, %v682_v3  ;;  %v645_v8 = vpop.f32.mrf.mxu1  ;;  %v606_v15 = vadd.f32 %v2139_v36, %v605_v7 }
  0xfe   : > { %v723_v6 = vadd.f32 %v2139_v36, %v722_v4  ;;  %v646_v16 = vadd.f32 %v2139_v36, %v645_v8 }
  0xff   : > { %v778_v11 = vmax.f32 %v683_v5, 0.0  ;;  %v747_v23 = vmax.f32 %v606_v15, 0.0 }
 0x100   : > { %v794_v12 = vmax.f32 %v723_v6, 0.0  ;;  %v763_v24 = vmax.f32 %v646_v16, 0.0 }
 0x101   : > { %v1630_v13 = vpack.c.bf16 %v778_v11, %v777_v9 }
 0x102   : > { %v1670_v14 = vpack.c.bf16 %v794_v12, %v793_v10 }
 0x103   : > { %1702 = vst [vmem:[%s2148_s12 + $0xa8] sm:$0xff] %v1630_v13  }
 0x104   : > { %1710 = vst [vmem:[%s2148_s12 + $0xe8] sm:$0xff] %v1670_v14   ;;  %v685_v17 = vpop.f32.mrf.mxu2  ;;  %v607_v19 = vpop.f32.mrf.mxu0 }
 0x105   : > { %v725_v18 = vpop.f32.mrf.mxu3  ;;  %v647_v20 = vpop.f32.mrf.mxu1  ;;  %v608_v21 = vadd.f32 %v2139_v36, %v607_v19  ;;  %v686_v29 = vadd.f32 %v2139_v36, %v685_v17 }
 0x106   : > { %v648_v22 = vadd.f32 %v2139_v36, %v647_v20  ;;  %v726_v30 = vadd.f32 %v2139_v36, %v725_v18 }
 0x107   : > { %v748_v25 = vmax.f32 %v608_v21, 0.0  ;;  %v779_v38 = vmax.f32 %v686_v29, 0.0 }
 0x108   : > { %v764_v26 = vmax.f32 %v648_v22, 0.0  ;;  %v795_v39 = vmax.f32 %v726_v30, 0.0 }
 0x109   : > { %v1555_v27 = vpack.c.bf16 %v748_v25, %v747_v23 }
 0x10a   : > { %v1595_v28 = vpack.c.bf16 %v764_v26, %v763_v24 }
 0x10b   : > { %1687 = vst [vmem:[%s2148_s12 + $0x30] sm:$0xff] %v1555_v27  }
 0x10c   : > { %v687_v31 = vpop.f32.mrf.mxu2  ;;  %1695 = vst [vmem:[%s2148_s12 + $0x70] sm:$0xff] %v1595_v28   ;;  %v610_v35 = vpop.f32.mrf.mxu0 }
 0x10d   : > { %v727_v32 = vpop.f32.mrf.mxu3  ;;  %v688_v33 = vadd.f32 %v2139_v36, %v687_v31  ;;  %v650_v37 = vpop.f32.mrf.mxu1  ;;  %v611_v44 = vadd.f32 %v2139_v36, %v610_v35 }
 0x10e   : > { %v728_v34 = vadd.f32 %v2139_v36, %v727_v32  ;;  %v651_v45 = vadd.f32 %v2139_v36, %v650_v37 }
 0x10f   : > { %v780_v40 = vmax.f32 %v688_v33, 0.0  ;;  %v749_v52 = vmax.f32 %v611_v44, 0.0 }
 0x110   : > { %v796_v41 = vmax.f32 %v728_v34, 0.0  ;;  %v765_v53 = vmax.f32 %v651_v45, 0.0 }
 0x111   : > { %v1635_v42 = vpack.c.bf16 %v780_v40, %v779_v38 }
 0x112   : > { %v1675_v43 = vpack.c.bf16 %v796_v41, %v795_v39 }
 0x113   : > { %1703 = vst [vmem:[%s2148_s12 + $0xb0] sm:$0xff] %v1635_v42  }
 0x114   : > { %1711 = vst [vmem:[%s2148_s12 + $0xf0] sm:$0xff] %v1675_v43   ;;  %v690_v46 = vpop.f32.mrf.mxu2  ;;  %v612_v48 = vpop.f32.mrf.mxu0 }
 0x115   : > { %v730_v47 = vpop.f32.mrf.mxu3  ;;  %v652_v49 = vpop.f32.mrf.mxu1  ;;  %v613_v50 = vadd.f32 %v2139_v36, %v612_v48  ;;  %v691_v58 = vadd.f32 %v2139_v36, %v690_v46 }
 0x116   : > { %v653_v51 = vadd.f32 %v2139_v36, %v652_v49  ;;  %v731_v59 = vadd.f32 %v2139_v36, %v730_v47 }
 0x117   : > { %v750_v54 = vmax.f32 %v613_v50, 0.0  ;;  %v781_v0 = vmax.f32 %v691_v58, 0.0 }
 0x118   : > { %v766_v55 = vmax.f32 %v653_v51, 0.0  ;;  %v797_v1 = vmax.f32 %v731_v59, 0.0 }
 0x119   : > { %v1560_v56 = vpack.c.bf16 %v750_v54, %v749_v52 }
 0x11a   : > { %v1600_v57 = vpack.c.bf16 %v766_v55, %v765_v53 }
 0x11b   : > { %1688 = vst [vmem:[%s2148_s12 + $0x38] sm:$0xff] %v1560_v56  }
 0x11c   : > { %v692_v60 = vpop.f32.mrf.mxu2  ;;  %1696 = vst [vmem:[%s2148_s12 + $0x78] sm:$0xff] %v1600_v57  }
 0x11d   : > { %v732_v61 = vpop.f32.mrf.mxu3  ;;  %v693_v62 = vadd.f32 %v2139_v36, %v692_v60 }
 0x11e   : > { %v733_v63 = vadd.f32 %v2139_v36, %v732_v61 }
 0x11f   : > { %v782_v2 = vmax.f32 %v693_v62, 0.0 }
 0x120   : > { %v798_v3 = vmax.f32 %v733_v63, 0.0  ;;  %933 = sbr.rel (!%p2036_p4) target bundleno = 357 (0x165), region = 44 }
 0x121   : > { %v1640_v4 = vpack.c.bf16 %v782_v2, %v781_v0 }
 0x122   : > { %v1680_v5 = vpack.c.bf16 %v798_v3, %v797_v1 }
 0x123   : > { %1704 = vst [vmem:[%s2148_s12 + $0xb8] sm:$0xff] %v1640_v4  }
 0x124   : > { %1712 = vst [vmem:[%s2148_s12 + $0xf8] sm:$0xff] %v1680_v5  }
 0x125   : > { %s2397_s21 = smov (!%p936_p11, %s935_s21), 64 }
 0x126   : > { %s1470_s26 = sshll.u32 %s2397_s21, 2 }
 0x127   : > { %p1473_p12 = scmp.eq.s32.totalorder %s1470_s26, 0 }
 0x128   : > { %s2253_s27 = sshrl.u32 (!%p1473_p12), %s2397_s21, 5 }
 0x129   : > { %944 = sbr.rel (%p1473_p12) target bundleno = 357 (0x165), region = 48  ;;  %p1474_p13 = scmp.le.s32.totalorder (!%p1473_p12), %s2253_s27, 0 }
 0x12e   : > { %1227 = sbr.rel (%p1474_p13) target bundleno = 340 (0x154), region = 121  ;;  %s2388_s15 = smov (!%p1474_p13), %s2247_s25 }
 0x12f   : > { %s2389_s20 = smov (!%p1474_p13), %s2148_s12  ;;  %s2262_s28 = smov (!%p1474_p13), 0  }
 0x130   : > { %s2264_s29 = smov (!%p1474_p13), 0  }
 0x133 LB: >> { %v961_v36 = vld [vmem:[%s1961_s20] sm:$0xf]  ;;  %v963_v6 = vld [vmem:[%s1961_s20 + $0x4] sm:$0xf]  ;;  %v965_v7 = vld [vmem:[%s1961_s20 + $0x8] sm:$0xf]  ;;  %s1969_s29 = sphi %s2264_s29, %s955_s29   ;;  %s1965_s28 = sphi %s2262_s28, %s2392_s28   ;;  %s1961_s20 = sphi %s2389_s20, %s2391_s20   ;;  %s1957_s15 = sphi %s2388_s15, %s2390_s15  }
 0x134   : >> { %962 = vst [vmem:[%s1957_s15] sm:$0xf] %v961_v36  ;;  %v967_v8 = vld [vmem:[%s1961_s20 + $0xc] sm:$0xf]  ;;  %v969_v9 = vld [vmem:[%s1961_s20 + $0x10] sm:$0xf]  ;;  %s1025_s30 = sadd.s32 1, %s1965_s28 }
 0x135   : >> { %964 = vst [vmem:[%s1957_s15 + $0x4] sm:$0xf] %v963_v6  ;;  %v971_v10 = vld [vmem:[%s1961_s20 + $0x14] sm:$0xf]  ;;  %v973_v11 = vld [vmem:[%s1961_s20 + $0x18] sm:$0xf]  ;;  %p1026_p0 = scmp.ge.s32.totalorder %s1025_s30, %s2253_s27 }
 0x136   : >> { %966 = vst [vmem:[%s1957_s15 + $0x8] sm:$0xf] %v965_v7  ;;  %v975_v12 = vld [vmem:[%s1961_s20 + $0x1c] sm:$0xf]  ;;  %v977_v13 = vld [vmem:[%s1961_s20 + $0x20] sm:$0xf] }
 0x137   : >> { %968 = vst [vmem:[%s1957_s15 + $0xc] sm:$0xf] %v967_v8  ;;  %v979_v14 = vld [vmem:[%s1961_s20 + $0x24] sm:$0xf]  ;;  %v981_v15 = vld [vmem:[%s1961_s20 + $0x28] sm:$0xf] }
 0x138   : >> { %970 = vst [vmem:[%s1957_s15 + $0x10] sm:$0xf] %v969_v9  ;;  %v983_v16 = vld [vmem:[%s1961_s20 + $0x2c] sm:$0xf]  ;;  %v985_v17 = vld [vmem:[%s1961_s20 + $0x30] sm:$0xf] }
 0x139   : >> { %972 = vst [vmem:[%s1957_s15 + $0x14] sm:$0xf] %v971_v10  ;;  %v987_v18 = vld [vmem:[%s1961_s20 + $0x34] sm:$0xf]  ;;  %v989_v19 = vld [vmem:[%s1961_s20 + $0x38] sm:$0xf] }
 0x13a   : >> { %974 = vst [vmem:[%s1957_s15 + $0x18] sm:$0xf] %v973_v11  ;;  %v991_v20 = vld [vmem:[%s1961_s20 + $0x3c] sm:$0xf]  ;;  %v993_v21 = vld [vmem:[%s1961_s20 + $0x40] sm:$0xf] }
 0x13b   : >> { %976 = vst [vmem:[%s1957_s15 + $0x1c] sm:$0xf] %v975_v12  ;;  %v995_v22 = vld [vmem:[%s1961_s20 + $0x44] sm:$0xf]  ;;  %s2399_s30 = smov (%p1026_p0, %s1025_s30), 0  ;;  %s955_s29 = sadd.s32 1, %s1969_s29  }
 0x13c   : >> { %978 = vst [vmem:[%s1957_s15 + $0x20] sm:$0xf] %v977_v13  ;;  %v997_v23 = vld [vmem:[%s1961_s20 + $0x48] sm:$0xf]  ;;  %v999_v24 = vld [vmem:[%s1961_s20 + $0x4c] sm:$0xf]  ;;  %p954_p1 = scmp.ge.s32.totalorder %s955_s29, %s2253_s27  ;;  %s2392_s28 = smov %s2399_s30 }
 0x13d   : >> { %980 = vst [vmem:[%s1957_s15 + $0x24] sm:$0xf] %v979_v14  ;;  %s1475_s4 = sshll.u32 %s2399_s30, 7  ;;  %v1001_v25 = vld [vmem:[%s1961_s20 + $0x50] sm:$0xf] }
 0x13e   : >> { %982 = vst [vmem:[%s1957_s15 + $0x28] sm:$0xf] %v981_v15  ;;  %s2323_s5 = scalar_lea.vmem %s2148_s12, %s1475_s4 [#allocation6]   ;;  %s1031_s6 = scalar_lea.vmem %s2247_s25, %s1475_s4   ;;  %v1003_v26 = vld [vmem:[%s1961_s20 + $0x54] sm:$0xf]  ;;  %v1005_v27 = vld [vmem:[%s1961_s20 + $0x58] sm:$0xf] }
 0x13f   : >> { %984 = vst [vmem:[%s1957_s15 + $0x2c] sm:$0xf] %v983_v16  ;;  %v1007_v28 = vld [vmem:[%s1961_s20 + $0x5c] sm:$0xf]  ;;  %v1009_v29 = vld [vmem:[%s1961_s20 + $0x60] sm:$0xf] }
 0x140   : >> { %986 = vst [vmem:[%s1957_s15 + $0x30] sm:$0xf] %v985_v17  ;;  %v1011_v30 = vld [vmem:[%s1961_s20 + $0x64] sm:$0xf]  ;;  %v1013_v31 = vld [vmem:[%s1961_s20 + $0x68] sm:$0xf] }
 0x141   : >> { %988 = vst [vmem:[%s1957_s15 + $0x34] sm:$0xf] %v987_v18  ;;  %v1015_v32 = vld [vmem:[%s1961_s20 + $0x6c] sm:$0xf]  ;;  %v1017_v33 = vld [vmem:[%s1961_s20 + $0x70] sm:$0xf] }
 0x142   : >> { %990 = vst [vmem:[%s1957_s15 + $0x38] sm:$0xf] %v989_v19  ;;  %v1019_v34 = vld [vmem:[%s1961_s20 + $0x74] sm:$0xf]  ;;  %v1021_v35 = vld [vmem:[%s1961_s20 + $0x78] sm:$0xf] }
 0x143   : >> { %992 = vst [vmem:[%s1957_s15 + $0x3c] sm:$0xf] %v991_v20  ;;  %v1023_v37 = vld [vmem:[%s1961_s20 + $0x7c] sm:$0xf]  ;;  %s2391_s20 = smov %s2323_s5 }
 0x144   : >> { %994 = vst [vmem:[%s1957_s15 + $0x40] sm:$0xf] %v993_v21 }
 0x145   : >> { %996 = vst [vmem:[%s1957_s15 + $0x44] sm:$0xf] %v995_v22 }
 0x146   : >> { %998 = vst [vmem:[%s1957_s15 + $0x48] sm:$0xf] %v997_v23 }
 0x147   : >> { %1000 = vst [vmem:[%s1957_s15 + $0x4c] sm:$0xf] %v999_v24 }
 0x148   : >> { %1002 = vst [vmem:[%s1957_s15 + $0x50] sm:$0xf] %v1001_v25 }
 0x149   : >> { %1004 = vst [vmem:[%s1957_s15 + $0x54] sm:$0xf] %v1003_v26 }
 0x14a   : >> { %1006 = vst [vmem:[%s1957_s15 + $0x58] sm:$0xf] %v1005_v27 }
 0x14b   : >> { %1008 = vst [vmem:[%s1957_s15 + $0x5c] sm:$0xf] %v1007_v28 }
 0x14c   : >> { %1010 = vst [vmem:[%s1957_s15 + $0x60] sm:$0xf] %v1009_v29 }
 0x14d   : >> { %1012 = vst [vmem:[%s1957_s15 + $0x64] sm:$0xf] %v1011_v30 }
 0x14e   : >> { %1014 = vst [vmem:[%s1957_s15 + $0x68] sm:$0xf] %v1013_v31 }
 0x14f   : >> { %1016 = vst [vmem:[%s1957_s15 + $0x6c] sm:$0xf] %v1015_v32  ;;  %957 = sbr.rel (!%p954_p1) target bundleno = 307 (0x133), region = 127 }
 0x150   : >> { %1018 = vst [vmem:[%s1957_s15 + $0x70] sm:$0xf] %v1017_v33 }
 0x151   : >> { %1020 = vst [vmem:[%s1957_s15 + $0x74] sm:$0xf] %v1019_v34 }
 0x152   : >> { %1022 = vst [vmem:[%s1957_s15 + $0x78] sm:$0xf] %v1021_v35 }
 0x153   : >> { %1024 = vst [vmem:[%s1957_s15 + $0x7c] sm:$0xf] %v1023_v37  ;;  %s2390_s15 = smov %s1031_s6 }
 0x154 PF: > { %s2364_s7 = sand.u32 31, %s2397_s21   ;;  %s1520_s8 = sshll.u32 %s2253_s27, 7 }
 0x155   : > { %s1036_s9 = scalar_lea.vmem %s2148_s12, %s1520_s8 [#allocation6]   ;;  %s1038_s10 = scalar_lea.vmem %s2247_s25, %s1520_s8  }
 0x156   : > { %p1480_p2 = scmp.le.s32.totalorder %s2364_s7, 0 }
 0x157   : > { %s1971_s11 = smov (!%p1480_p2), %s1038_s10   ;;  %s1975_s14 = smov (!%p1480_p2), %s1036_s9  }
 0x158   : > { %1241 = sbr.rel (%p1480_p2) target bundleno = 357 (0x165), region = 132  ;;  %s1979_s17 = smov (!%p1480_p2), 0  }
 0x159   : > { %s1983_s18 = smov (!%p1480_p2), 0  }
 0x15d LB: >> { %v1048_v38 = vld [vmem:[%s1977_s14] sm:$0xf]  ;;  %s1050_s21 = sadd.s32 1, %s1981_s17  ;;  %s1042_s18 = sadd.s32 1, %s1985_s18   ;;  %s1985_s18 = sphi %s1983_s18, %s1042_s18   ;;  %s1981_s17 = sphi %s1979_s17, %s1980_s17   ;;  %s1977_s14 = sphi %s1975_s14, %s1055_s14   ;;  %s1973_s11 = sphi %s1971_s11, %s1056_s11  }
 0x15e   : >> { %1049 = vst [vmem:[%s1973_s11] sm:$0xf] %v1048_v38  ;;  %p1051_p3 = scmp.ge.s32.totalorder %s1050_s21, %s2364_s7  ;;  %p1041_p4 = scmp.ge.s32.totalorder %s1042_s18, %s2364_s7 }
 0x160   : >> { %s2401_s21 = smov (%p1051_p3, %s1050_s21), 0  ;;  %1044 = sbr.rel (!%p1041_p4) target bundleno = 349 (0x15d), region = 138 }
 0x161   : >> { %s1481_s12 = sshll.u32 %s2401_s21, 2  ;;  %s1980_s17 = smov %s2401_s21  }
 0x162   : >> { %s1055_s14 = scalar_lea.vmem %s1036_s9, %s1481_s12 [#allocation6]   ;;  %s1056_s11 = scalar_lea.vmem %s1038_s10, %s1481_s12  }
 0x165 PF: > { %p12_p5 = scmp.ge.s32.totalorder %s2026_s16, 5   ;;  %s2393_s12 = smov %s1949_s13 }
 0x166   : > { %s2394_s13 = smov %s2034_s19  ;;  %s2395_s14 = smov %s2026_s16 }
 0x167   :  { %14 = sbr.rel (!%p12_p5) target bundleno = 3 (0x3), region = 149 }
 0x16c   :  { %1180 = vsyncpa [#allocation3], 1 }
 0x16d   :  { %1182 = vsyncpa [#allocation3 + $0x1], 1 }
 0x16e   :  { %1183 = vsyncpa [#allocation5], 1 }

// kernel: cnn_forward.5
= control target key start
LH: loop header
LB: loop body
LE: loop exit
PB: predicated region body
PF: predicated region fallthrough
CT: control target
= control target key end

     0   :  { %s3661_s12 = smov 0   ;;  %s3663_s13 = smov 0   ;;  %s4380_s0 = inlined_call_operand.vmem [shape: bf16[800,400], index: 0, kind: input, shape index: {}]   ;;  %s4381_s1 = inlined_call_operand.vmem [shape: bf16[400,128], index: 1, kind: input, shape index: {}]   ;;  %s4382_s2 = inlined_call_operand.vmem [shape: f32[1,128], index: 2, kind: input, shape index: {}]   ;;  %s4383_s3 = inlined_call_operand.vmem [shape: bf16[800,128], index: 3, kind: output, shape index: {}]  }
   0x1   :  { %s3665_s14 = smov 0  }
   0x2 LB: > { %s3674_s15 = sadd.s32 4294967295, %s3607_s14   ;;  %s3676_s16 = sadd.s32 1, %s3607_s14   ;;  %s3607_s14 = sphi %s3665_s14, %s4392_s14   ;;  %s3603_s13 = sphi %s3663_s13, %s4391_s13   ;;  %s3599_s12 = sphi %s3661_s12, %s4390_s12  }
   0x3   : > { %s85_s17 = ssub.s32 %s3607_s14, %s3676_s16  ;;  %s88_s18 = sadd.s32 1, %s3603_s13 }
   0x4   : > { %p86_p0 = scmp.eq.s32.totalorder %s85_s17, 0  ;;  %p98_p1 = scmp.ne.s32.totalorder %s3603_s13, %s3599_s12 }
   0x5   : > { %p99_p2 = scmp.eq.s32.totalorder %s3674_s15, 1  ;;  %p2449_p3 = scmp.ge.s32.totalorder %s3607_s14, 1 }
   0x6   : > { %s3684_s19 = scalar_select %p86_p0, %s3603_s13, %s88_s18  }
   0x7   : > { %p3686_p4 = por %p99_p2, %p98_p1  ;;  %p149_p5 = scmp.lt.s32.totalorder %s3607_s14, 3 }
   0x9   : > { %p150_p6 = pnand %p2449_p3, %p149_p5 }
   0xa   : > { %s3700_s27 = sshll.u32 (!%p150_p6), %s3674_s15, 6  ;;  %s175_s17 = sand.u32 (!%p150_p6), 1, %s3599_s12  }
   0xb   : > { %153 = sbr.rel (%p150_p6) target bundleno = 759 (0x2f7), region = 32  ;;  %p184_p7 = scmp.lt.s32.totalorder (!%p150_p6), %s3700_s27, 99 }
   0xc   : > { %s2450_s18 = sshll.u32 (!%p150_p6), %s175_s17, 8 }
   0xd   : > { %s3883_s12 = scalar_lea.vmem (!%p150_p6), [#allocation2], %s2450_s18  }
  0x10   : > { %v3251_v0 = vld [vmem:[%s4381_s1 + $0x38] sm:$0xff]  ;;  %v3250_v3 = vld [vmem:[%s4381_s1 + $0x30] sm:$0xff]  ;;  %s185_s7 = scalar_select %p184_p7, %s3700_s27, 99  ;;  %v3249_v6 = vld [vmem:[%s4381_s1 + $0x28] sm:$0xff]  ;;  %vm1141_vm0 = vcmask 130048  }
  0x11   : > { %v3259_v1 = vld [vmem:[%s4381_s1 + $0x78] sm:$0xff]  ;;  %1238 = vmatpush.bf16.msra.mxu0 %v3251_v0  ;;  %v3258_v4 = vld [vmem:[%s4381_s1 + $0x70] sm:$0xff]  ;;  %v3257_v7 = vld [vmem:[%s4381_s1 + $0x68] sm:$0xff]  ;;  %s3269_s24 = sshll.u32 (%p3686_p4), %s3674_s15, 8 }
  0x12   : > { %v3267_v2 = vld [vmem:[%s4381_s1 + $0xb8] sm:$0xff]  ;;  %1407 = vmatpush.bf16.msra.mxu1 %v3259_v1  ;;  %v3266_v5 = vld [vmem:[%s4381_s1 + $0xb0] sm:$0xff]  ;;  %s3115_s8 = sshll.u32 %s185_s7, 4  ;;  %v3268_v8 = vld [vmem:[%s4381_s1 + $0xc0] sm:$0xff]  ;;  %s4245_s28 = scalar_lea.vmem (%p3686_p4), %s4383_s3, %s3269_s24  }
  0x13   : > { %1576 = vmatpush.bf16.msra.mxu2 %v3267_v2  ;;  %s3725_s23 = scalar_lea.vmem %s4380_s0, %s3115_s8  ;;  %v3265_v9 = vld [vmem:[%s4381_s1 + $0xa8] sm:$0xff]  ;;  %1752 = vmatpush.bf16.msra.mxu3 %v3268_v8  ;;  %v3248_v13 = vld [vmem:[%s4381_s1 + $0x20] sm:$0xff]  ;;  %v3247_v16 = vld [vmem:[%s4381_s1 + $0x18] sm:$0xff] }
  0x14   : > { %v3117_v10 = vld [vmem:[%s3725_s23 + $0xc] sm:$0xf]  ;;  %v2466_v11 = vld [vmem:[%s3725_s23 + $0x18] sm:$0xf0]  ;;  %v3256_v14 = vld [vmem:[%s4381_s1 + $0x60] sm:$0xff] }
  0x15   : > { %1239 = vmatpush.bf16.msra.mxu0 %v3250_v3  ;;  %v2469_v12 = vor.u32 %v3117_v10, %v2466_v11  ;;  %v3264_v15 = vld [vmem:[%s4381_s1 + $0xa0] sm:$0xff]  ;;  %v3255_v17 = vld [vmem:[%s4381_s1 + $0x58] sm:$0xff]  ;;  %v3246_v19 = vld [vmem:[%s4381_s1 + $0x10] sm:$0xff] }
  0x16   : > { %1408 = vmatpush.bf16.msra.mxu1 %v3258_v4  ;;  %v3263_v18 = vld [vmem:[%s4381_s1 + $0x98] sm:$0xff]  ;;  %v3254_v20 = vld [vmem:[%s4381_s1 + $0x50] sm:$0xff]  ;;  %v3121_v22 = vld [vmem:[%s3725_s23 + $0x2c] sm:$0xf] }
  0x17   : > { %1577 = vmatpush.bf16.msra.mxu2 %v3266_v5  ;;  %3066 = vmatmul.msk.bf16.vlgmr.msra.gmra.mxu3 %vm1141_vm0, %v2469_v12  ;;  %v3262_v21 = vld [vmem:[%s4381_s1 + $0x90] sm:$0xff]  ;;  %v2482_v23 = vld [vmem:[%s3725_s23 + $0x38] sm:$0xf0]  ;;  %v3245_v24 = vld [vmem:[%s4381_s1 + $0x8] sm:$0xff] }
  0x18   : > { %v3253_v25 = vld [vmem:[%s4381_s1 + $0x48] sm:$0xff]  ;;  %v2485_v27 = vor.u32 %v3121_v22, %v2482_v23  ;;  %v3244_v28 = vld [vmem:[%s4381_s1] sm:$0xff]  ;;  %v3118_v31 = vld [vmem:[%s3725_s23 + $0xc] sm:$0xf0] }
  0x19   : > { %1240 = vmatpush.bf16.msra.mxu0 %v3249_v6  ;;  %v3261_v26 = vld [vmem:[%s4381_s1 + $0x88] sm:$0xff]  ;;  %v3252_v29 = vld [vmem:[%s4381_s1 + $0x40] sm:$0xff]  ;;  %v2458_v33 = vld [vmem:[%s3725_s23 + $0x10] sm:$0xf0] }
  0x1a   : > { %1409 = vmatpush.bf16.msra.mxu1 %v3257_v7  ;;  %v2456_v30 = vld [vmem:[%s3725_s23] sm:$0xf]  ;;  %v3116_v32 = vld [vmem:[%s3725_s23 + $0x4] sm:$0xf]  ;;  %v2464_v35 = vld [vmem:[%s3725_s23 + $0x8] sm:$0xf] }
  0x1b   : > { %1578 = vmatpush.bf16.msra.mxu2 %v3265_v9  ;;  %v3260_v34 = vld [vmem:[%s4381_s1 + $0x80] sm:$0xff]  ;;  %v3119_v36 = vld [vmem:[%s3725_s23 + $0x14] sm:$0xf0]  ;;  %v2457_v37 = vor.u32 %v3118_v31, %v2456_v30  ;;  %v2461_v38 = vor.u32 %v3116_v32, %v2458_v33  ;;  %v3125_v40 = vld [vmem:[%s3725_s23 + $0x4c] sm:$0xf] }
  0x1c   : > { %v2465_v39 = vor.u32 %v3119_v36, %v2464_v35  ;;  %v2498_v41 = vld [vmem:[%s3725_s23 + $0x58] sm:$0xf0]  ;;  %v2472_v43 = vld [vmem:[%s3725_s23 + $0x20] sm:$0xf]  ;;  %v3122_v44 = vld [vmem:[%s3725_s23 + $0x2c] sm:$0xf0] }
  0x1d   : > { %1241 = vmatpush.bf16.msra.mxu0 %v3248_v13  ;;  %v2501_v42 = vor.u32 %v3125_v40, %v2498_v41  ;;  %v3120_v45 = vld [vmem:[%s3725_s23 + $0x24] sm:$0xf]  ;;  %v2474_v46 = vld [vmem:[%s3725_s23 + $0x30] sm:$0xf0]  ;;  %v2480_v47 = vld [vmem:[%s3725_s23 + $0x28] sm:$0xf]  ;;  %v2473_v49 = vor.u32 %v3122_v44, %v2472_v43 }
  0x1e   : > { %1410 = vmatpush.bf16.msra.mxu1 %v3256_v14  ;;  %v3123_v48 = vld [vmem:[%s3725_s23 + $0x34] sm:$0xf0]  ;;  %v2477_v50 = vor.u32 %v3120_v45, %v2474_v46  ;;  %v3129_v52 = vld [vmem:[%s3725_s23 + $0x6c] sm:$0xf]  ;;  %v2514_v53 = vld [vmem:[%s3725_s23 + $0x78] sm:$0xf0] }
  0x1f   : > { %1579 = vmatpush.bf16.msra.mxu2 %v3264_v15  ;;  %v2481_v51 = vor.u32 %v3123_v48, %v2480_v47  ;;  %v2517_v54 = vor.u32 %v3129_v52, %v2514_v53  ;;  %v2488_v55 = vld [vmem:[%s3725_s23 + $0x40] sm:$0xf]  ;;  %v3126_v56 = vld [vmem:[%s3725_s23 + $0x4c] sm:$0xf0]  ;;  %v3124_v57 = vld [vmem:[%s3725_s23 + $0x44] sm:$0xf] }
  0x20   : > { %v2490_v58 = vld [vmem:[%s3725_s23 + $0x50] sm:$0xf0]  ;;  %v2496_v59 = vld [vmem:[%s3725_s23 + $0x48] sm:$0xf]  ;;  %v3127_v60 = vld [vmem:[%s3725_s23 + $0x54] sm:$0xf0]  ;;  %v2489_v61 = vor.u32 %v3126_v56, %v2488_v55 }
  0x21   : > { %1242 = vmatpush.bf16.msra.mxu0 %v3247_v16  ;;  %v2493_v62 = vor.u32 %v3124_v57, %v2490_v58  ;;  %v2497_v63 = vor.u32 %v3127_v60, %v2496_v59  ;;  %v3133_v0 = vld [vmem:[%s3725_s23 + $0x8c] sm:$0xf]  ;;  %v2530_v1 = vld [vmem:[%s3725_s23 + $0x98] sm:$0xf0]  ;;  %v2504_v3 = vld [vmem:[%s3725_s23 + $0x60] sm:$0xf] }
  0x22   : > { %1411 = vmatpush.bf16.msra.mxu1 %v3255_v17  ;;  %v2533_v2 = vor.u32 %v3133_v0, %v2530_v1  ;;  %v3130_v4 = vld [vmem:[%s3725_s23 + $0x6c] sm:$0xf0]  ;;  %v3128_v5 = vld [vmem:[%s3725_s23 + $0x64] sm:$0xf]  ;;  %v2506_v6 = vld [vmem:[%s3725_s23 + $0x70] sm:$0xf0] }
  0x23   : > { %1580 = vmatpush.bf16.msra.mxu2 %v3263_v18  ;;  %v2512_v7 = vld [vmem:[%s3725_s23 + $0x68] sm:$0xf]  ;;  %v3131_v8 = vld [vmem:[%s3725_s23 + $0x74] sm:$0xf0]  ;;  %v2505_v9 = vor.u32 %v3130_v4, %v2504_v3  ;;  %v2509_v10 = vor.u32 %v3128_v5, %v2506_v6  ;;  %v3137_v12 = vld [vmem:[%s3725_s23 + $0xac] sm:$0xf] }
  0x24   : > { %v2513_v11 = vor.u32 %v3131_v8, %v2512_v7  ;;  %v2546_v13 = vld [vmem:[%s3725_s23 + $0xb8] sm:$0xf0]  ;;  %v2520_v15 = vld [vmem:[%s3725_s23 + $0x80] sm:$0xf]  ;;  %v3134_v16 = vld [vmem:[%s3725_s23 + $0x8c] sm:$0xf0] }
  0x25   : > { %1243 = vmatpush.bf16.msra.mxu0 %v3246_v19  ;;  %v2549_v14 = vor.u32 %v3137_v12, %v2546_v13  ;;  %v3132_v17 = vld [vmem:[%s3725_s23 + $0x84] sm:$0xf]  ;;  %v2522_v18 = vld [vmem:[%s3725_s23 + $0x90] sm:$0xf0]  ;;  %v2528_v19 = vld [vmem:[%s3725_s23 + $0x88] sm:$0xf] }
  0x26   : > { %1412 = vmatpush.bf16.msra.mxu1 %v3254_v20  ;;  %v3135_v20 = vld [vmem:[%s3725_s23 + $0x94] sm:$0xf0]  ;;  %v2525_v22 = vor.u32 %v3132_v17, %v2522_v18  ;;  %v2538_v30 = vld [vmem:[%s3725_s23 + $0xb0] sm:$0xf0]  ;;  %v2544_v31 = vld [vmem:[%s3725_s23 + $0xa8] sm:$0xf] }
  0x27   : > { %1581 = vmatpush.bf16.msra.mxu2 %v3262_v21  ;;  %3067 = vmatmul.msk.bf16.gmra.mxu3 %vm1141_vm0, %v2485_v27  ;;  %v2521_v21 = vor.u32 %v3134_v16, %v2520_v15  ;;  %v2529_v23 = vor.u32 %v3135_v20, %v2528_v19  ;;  %v2536_v27 = vld [vmem:[%s3725_s23 + $0xa0] sm:$0xf]  ;;  %v3139_v32 = vld [vmem:[%s3725_s23 + $0xb4] sm:$0xf0]  ;;  %v3145_v36 = vld [vmem:[%s3725_s23 + $0xec] sm:$0xf] }
  0x28   : > { %v2545_v35 = vor.u32 %v3139_v32, %v2544_v31  ;;  %v3142_v40 = vld [vmem:[%s3725_s23 + $0xcc] sm:$0xf0]  ;;  %v3140_v41 = vld [vmem:[%s3725_s23 + $0xc4] sm:$0xf]  ;;  %v2560_v43 = vld [vmem:[%s3725_s23 + $0xc8] sm:$0xf] }
  0x29   : > { %1244 = vmatpush.bf16.msra.mxu0 %v3245_v24  ;;  %v3141_v24 = vld [vmem:[%s3725_s23 + $0xcc] sm:$0xf]  ;;  %v3143_v44 = vld [vmem:[%s3725_s23 + $0xd4] sm:$0xf0]  ;;  %v3146_v52 = vld [vmem:[%s3725_s23 + $0xec] sm:$0xf0] }
  0x2a   : > { %1413 = vmatpush.bf16.msra.mxu1 %v3253_v25  ;;  %v2562_v25 = vld [vmem:[%s3725_s23 + $0xd8] sm:$0xf0]  ;;  %v2561_v47 = vor.u32 %v3143_v44, %v2560_v43  ;;  %v3149_v48 = vld [vmem:[%s3725_s23 + $0x10c] sm:$0xf]  ;;  %v3144_v53 = vld [vmem:[%s3725_s23 + $0xe4] sm:$0xf] }
  0x2b   : > { %1582 = vmatpush.bf16.msra.mxu2 %v3261_v26  ;;  %v2565_v26 = vor.u32 %v3141_v24, %v2562_v25  ;;  %v2576_v55 = vld [vmem:[%s3725_s23 + $0xe8] sm:$0xf]  ;;  %v3147_v56 = vld [vmem:[%s3725_s23 + $0xf4] sm:$0xf0]  ;;  %v2584_v1 = vld [vmem:[%s3725_s23 + $0x100] sm:$0xf] }
  0x2c   : > { %v2577_v59 = vor.u32 %v3147_v56, %v2576_v55  ;;  %v3148_v3 = vld [vmem:[%s3725_s23 + $0x104] sm:$0xf]  ;;  %v2586_v4 = vld [vmem:[%s3725_s23 + $0x110] sm:$0xf0]  ;;  %v2592_v5 = vld [vmem:[%s3725_s23 + $0x108] sm:$0xf] }
  0x2d   : > { %1245 = vmatpush.bf16.msra.mxu0 %v3244_v28  ;;  %v3138_v28 = vld [vmem:[%s3725_s23 + $0xac] sm:$0xf0]  ;;  %v3151_v6 = vld [vmem:[%s3725_s23 + $0x114] sm:$0xf0]  ;;  %v2589_v8 = vor.u32 %v3148_v3, %v2586_v4  ;;  %v3157_v15 = vld [vmem:[%s3725_s23 + $0x14c] sm:$0xf] }
  0x2e   : > { %1414 = vmatpush.bf16.msra.mxu1 %v3252_v29  ;;  %v3136_v29 = vld [vmem:[%s3725_s23 + $0xa4] sm:$0xf]  ;;  %v2537_v33 = vor.u32 %v3138_v28, %v2536_v27  ;;  %v2593_v12 = vor.u32 %v3151_v6, %v2592_v5  ;;  %v2626_v16 = vld [vmem:[%s3725_s23 + $0x158] sm:$0xf0]  ;;  %v2600_v24 = vld [vmem:[%s3725_s23 + $0x120] sm:$0xf] }
  0x2f   : > { %1583 = vmatpush.bf16.msra.mxu2 %v3260_v34  ;;  %v2541_v34 = vor.u32 %v3136_v29, %v2538_v30  ;;  %v3152_v27 = vld [vmem:[%s3725_s23 + $0x124] sm:$0xf]  ;;  %v2602_v28 = vld [vmem:[%s3725_s23 + $0x130] sm:$0xf0]  ;;  %v2608_v29 = vld [vmem:[%s3725_s23 + $0x128] sm:$0xf] }
  0x30   : > { %1246 = vmatmul.bf16.vlgmr.msra.gmra.mxu0 %v2457_v37  ;;  %v2578_v37 = vld [vmem:[%s3725_s23 + $0xf8] sm:$0xf0]  ;;  %v3155_v30 = vld [vmem:[%s3725_s23 + $0x134] sm:$0xf0]  ;;  %v2616_v55 = vld [vmem:[%s3725_s23 + $0x140] sm:$0xf] }
  0x31   : > { %1415 = vmatmul.bf16.vlgmr.msra.gmra.mxu1 %v2461_v38  ;;  %v2581_v38 = vor.u32 %v3145_v36, %v2578_v37 }
  0x32   : > { %1584 = vmatmul.bf16.vlgmr.msra.gmra.mxu2 %v2465_v39  ;;  %v2552_v39 = vld [vmem:[%s3725_s23 + $0xc0] sm:$0xf] }
  0x33   : > { %v2553_v45 = vor.u32 %v3142_v40, %v2552_v39  ;;  %v2609_v39 = vor.u32 %v3155_v30, %v2608_v29  ;;  %v3163_v29 = vld [vmem:[%s3725_s23 + $0x174] sm:$0xf0] }
  0x37   : > { %3068 = vmatmul.msk.bf16.gmra.mxu3 %vm1141_vm0, %v2501_v42  ;;  %v2554_v42 = vld [vmem:[%s3725_s23 + $0xd0] sm:$0xf0] }
  0x38   : > { %v2557_v46 = vor.u32 %v3140_v41, %v2554_v42 }
  0x40   : > { %1251 = vmatmul.bf16.gmra.mxu0 %v2473_v49  ;;  %v2594_v49 = vld [vmem:[%s3725_s23 + $0x118] sm:$0xf0] }
  0x41   : > { %1420 = vmatmul.bf16.gmra.mxu1 %v2477_v50  ;;  %v2597_v50 = vor.u32 %v3149_v48, %v2594_v49 }
  0x42   : > { %1589 = vmatmul.bf16.gmra.mxu2 %v2481_v51  ;;  %v2568_v51 = vld [vmem:[%s3725_s23 + $0xe0] sm:$0xf] }
  0x43   : > { %v2569_v57 = vor.u32 %v3146_v52, %v2568_v51 }
  0x47   : > { %3069 = vmatmul.msk.bf16.gmra.mxu3 %vm1141_vm0, %v2517_v54  ;;  %v2570_v54 = vld [vmem:[%s3725_s23 + $0xf0] sm:$0xf0] }
  0x48   : > { %v2573_v58 = vor.u32 %v3144_v53, %v2570_v54 }
  0x50   : > { %1256 = vmatmul.bf16.gmra.mxu0 %v2489_v61  ;;  %v3153_v61 = vld [vmem:[%s3725_s23 + $0x12c] sm:$0xf] }
  0x51   : > { %1425 = vmatmul.bf16.gmra.mxu1 %v2493_v62  ;;  %v2610_v62 = vld [vmem:[%s3725_s23 + $0x138] sm:$0xf0] }
  0x52   : > { %1594 = vmatmul.bf16.gmra.mxu2 %v2497_v63  ;;  %v2613_v0 = vor.u32 %v3153_v61, %v2610_v62  ;;  %v3159_v61 = vld [vmem:[%s3725_s23 + $0x154] sm:$0xf0] }
  0x57   : > { %3070 = vmatmul.msk.bf16.gmra.mxu3 %vm1141_vm0, %v2533_v2  ;;  %v3150_v2 = vld [vmem:[%s3725_s23 + $0x10c] sm:$0xf0] }
  0x58   : > { %v2585_v7 = vor.u32 %v3150_v2, %v2584_v1 }
  0x60   : > { %1261 = vmatmul.bf16.gmra.mxu0 %v2505_v9  ;;  %v3862_v9 = vld [vmem:[%s4382_s2] ss:$0 sm:$0xff] }
  0x61   : > { %1430 = vmatmul.bf16.gmra.mxu1 %v2509_v10 }
  0x62   : > { %1599 = vmatmul.bf16.gmra.mxu2 %v2513_v11 }
  0x67   : > { %3071 = vmatmul.msk.bf16.gmra.mxu3 %vm1141_vm0, %v2549_v14 }
  0x70   : > { %1266 = vmatmul.bf16.gmra.mxu0 %v2521_v21 }
  0x71   : > { %1435 = vmatmul.bf16.gmra.mxu1 %v2525_v22  ;;  %v2629_v22 = vor.u32 %v3157_v15, %v2626_v16  ;;  %v2658_v15 = vld [vmem:[%s3725_s23 + $0x198] sm:$0xf0] }
  0x72   : > { %1604 = vmatmul.bf16.gmra.mxu2 %v2529_v23 }
  0x77   : > { %3072 = vmatmul.msk.bf16.gmra.mxu3 %vm1141_vm0, %v2565_v26  ;;  %v3154_v26 = vld [vmem:[%s3725_s23 + $0x12c] sm:$0xf0] }
  0x80   : > { %1271 = vmatmul.bf16.gmra.mxu0 %v2537_v33  ;;  %v2601_v33 = vor.u32 %v3154_v26, %v2600_v24  ;;  %v3160_v26 = vld [vmem:[%s3725_s23 + $0x164] sm:$0xf] }
  0x81   : > { %1440 = vmatmul.bf16.gmra.mxu1 %v2541_v34  ;;  %v2605_v34 = vor.u32 %v3152_v27, %v2602_v28  ;;  %v2634_v27 = vld [vmem:[%s3725_s23 + $0x170] sm:$0xf0]  ;;  %v2640_v28 = vld [vmem:[%s3725_s23 + $0x168] sm:$0xf] }
  0x82   : > { %1609 = vmatmul.bf16.gmra.mxu2 %v2545_v35 }
  0x87   : > { %3073 = vmatmul.msk.bf16.gmra.mxu3 %vm1141_vm0, %v2581_v38 }
  0x90   : > { %1276 = vmatmul.bf16.gmra.mxu0 %v2553_v45 }
  0x91   : > { %1445 = vmatmul.bf16.gmra.mxu1 %v2557_v46  ;;  %v3161_v46 = vld [vmem:[%s3725_s23 + $0x16c] sm:$0xf] }
  0x92   : > { %1614 = vmatmul.bf16.gmra.mxu2 %v2561_v47  ;;  %v2642_v47 = vld [vmem:[%s3725_s23 + $0x178] sm:$0xf0] }
  0x93   : > { %v2645_v53 = vor.u32 %v3161_v46, %v2642_v47  ;;  %v2674_v46 = vld [vmem:[%s3725_s23 + $0x1b8] sm:$0xf0] }
  0x97   : > { %3074 = vmatmul.msk.bf16.gmra.mxu3 %vm1141_vm0, %v2597_v50 }
  0x9a   : > { %v1754_v60 = vpop.f32.mrf.mxu3 }
  0xa0   : > { %1281 = vmatmul.bf16.gmra.mxu0 %v2569_v57  ;;  %v3158_v57 = vld [vmem:[%s3725_s23 + $0x14c] sm:$0xf0] }
  0xa1   : > { %1450 = vmatmul.bf16.gmra.mxu1 %v2573_v58  ;;  %v3156_v58 = vld [vmem:[%s3725_s23 + $0x144] sm:$0xf] }
  0xa2   : > { %1619 = vmatmul.bf16.gmra.mxu2 %v2577_v59  ;;  %v1756_v63 = vpop.f32.mrf.mxu3  ;;  %v2618_v59 = vld [vmem:[%s3725_s23 + $0x150] sm:$0xf0] }
  0xa3   : > { %v2621_v1 = vor.u32 %v3156_v58, %v2618_v59  ;;  %v2650_v58 = vld [vmem:[%s3725_s23 + $0x190] sm:$0xf0]  ;;  %v2656_v59 = vld [vmem:[%s3725_s23 + $0x188] sm:$0xf] }
  0xa7   : > { %3075 = vmatmul.msk.bf16.gmra.mxu3 %vm1141_vm0, %v2613_v0  ;;  %v2617_v0 = vor.u32 %v3158_v57, %v2616_v55  ;;  %v3164_v57 = vld [vmem:[%s3725_s23 + $0x184] sm:$0xf] }
  0xaa   : > { %v3864_v13 = vpop.f32.mrf.mxu3 }
  0xad   : > { %v1247_v10 = vpop.f32.mrf.mxu0 }
  0xae   : > { %v1416_v11 = vpop.f32.mrf.mxu1  ;;  %v1248_v14 = vadd.f32 %v3862_v9, %v1247_v10 }
  0xb0   : > { %1286 = vmatmul.bf16.gmra.mxu0 %v2585_v7  ;;  %v1417_v18 = vadd.f32 %v1416_v11, %v1248_v14  ;;  %v3165_v14 = vld [vmem:[%s3725_s23 + $0x18c] sm:$0xf] }
  0xb1   : > { %1455 = vmatmul.bf16.gmra.mxu1 %v2589_v8 }
  0xb2   : > { %1624 = vmatmul.bf16.gmra.mxu2 %v2593_v12  ;;  %v1761_v21 = vpop.f32.mrf.mxu3 }
  0xb5   : > { %v1585_v17 = vpop.f32.mrf.mxu2  ;;  %v1249_v19 = vpop.f32.mrf.mxu0 }
  0xb6   : > { %v1418_v20 = vpop.f32.mrf.mxu1  ;;  %v1250_v23 = vadd.f32 %v3862_v9, %v1249_v19  ;;  %v1586_v25 = vadd.f32 %v1585_v17, %v1417_v18 }
  0xb7   : > { %3076 = vmatmul.msk.bf16.gmra.mxu3 %vm1141_vm0, %v2629_v22 }
  0xb8   : > { %v1419_v31 = vadd.f32 %v1418_v20, %v1250_v23  ;;  %v1755_v35 = vadd.f32 %v1754_v60, %v1586_v25  ;;  %v2624_v60 = vld [vmem:[%s3725_s23 + $0x148] sm:$0xf]  ;;  %v2632_v23 = vld [vmem:[%s3725_s23 + $0x160] sm:$0xf]  ;;  %v3162_v25 = vld [vmem:[%s3725_s23 + $0x16c] sm:$0xf0] }
  0xb9   : > { %v2625_v6 = vor.u32 %v3159_v61, %v2624_v60  ;;  %v3167_v60 = vld [vmem:[%s3725_s23 + $0x194] sm:$0xf0] }
  0xba   : > { %v3878_v40 = vpop.f32.mrf.mxu3  ;;  %v1914_v42 = vmax.f32 %v1755_v35, 0.0 }
  0xbd   : > { %v1587_v32 = vpop.f32.mrf.mxu2  ;;  %v1252_v37 = vpop.f32.mrf.mxu0 }
  0xbe   : > { %v1588_v36 = vadd.f32 %v1587_v32, %v1419_v31  ;;  %v1421_v38 = vpop.f32.mrf.mxu1  ;;  %v1253_v44 = vadd.f32 %v3862_v9, %v1252_v37  ;;  %v2633_v32 = vor.u32 %v3162_v25, %v2632_v23  ;;  %v3168_v25 = vld [vmem:[%s3725_s23 + $0x1a4] sm:$0xf] }
  0xc0   : > { %v1757_v41 = vadd.f32 %v1756_v63, %v1588_v36  ;;  %1291 = vmatmul.bf16.gmra.mxu0 %v2601_v33  ;;  %v1422_v49 = vadd.f32 %v1421_v38, %v1253_v44  ;;  %v2637_v33 = vor.u32 %v3160_v26, %v2634_v27  ;;  %v2641_v38 = vor.u32 %v3163_v29, %v2640_v28  ;;  %v2666_v26 = vld [vmem:[%s3725_s23 + $0x1b0] sm:$0xf0]  ;;  %v2672_v27 = vld [vmem:[%s3725_s23 + $0x1a8] sm:$0xf]  ;;  %v3171_v28 = vld [vmem:[%s3725_s23 + $0x1b4] sm:$0xf0] }
  0xc1   : > { %1460 = vmatmul.bf16.gmra.mxu1 %v2605_v34 }
  0xc2   : > { %v1915_v43 = vmax.f32 %v1757_v41, 0.0  ;;  %1629 = vmatmul.bf16.gmra.mxu2 %v2609_v39  ;;  %v1766_v52 = vpop.f32.mrf.mxu3 }
  0xc4   : > { %v3275_v45 = vpack.c.bf16 %v1915_v43, %v1914_v42 }
  0xc5   : > { %v1590_v48 = vpop.f32.mrf.mxu2  ;;  %v1254_v50 = vpop.f32.mrf.mxu0 }
  0xc6   : > { %3276 = vst [vmem:[%s3883_s12] sm:$0xff] %v3275_v45   ;;  %v1423_v51 = vpop.f32.mrf.mxu1  ;;  %v1255_v54 = vadd.f32 %v3862_v9, %v1254_v50  ;;  %v1591_v56 = vadd.f32 %v1590_v48, %v1422_v49  ;;  %v3169_v45 = vld [vmem:[%s3725_s23 + $0x1ac] sm:$0xf] }
  0xc7   : > { %3077 = vmatmul.msk.bf16.gmra.mxu3 %vm1141_vm0, %v2645_v53 }
  0xc8   : > { %v1424_v62 = vadd.f32 %v1423_v51, %v1255_v54  ;;  %v1760_v2 = vadd.f32 %v3864_v13, %v1591_v56  ;;  %v2648_v54 = vld [vmem:[%s3725_s23 + $0x180] sm:$0xf]  ;;  %v3166_v56 = vld [vmem:[%s3725_s23 + $0x18c] sm:$0xf0] }
  0xca   : > { %v3895_v7 = vpop.f32.mrf.mxu3  ;;  %v1916_v10 = vmax.f32 %v1760_v2, 0.0 }
  0xcd   : > { %v1592_v63 = vpop.f32.mrf.mxu2  ;;  %v1257_v4 = vpop.f32.mrf.mxu0 }
  0xce   : > { %v1593_v3 = vadd.f32 %v1592_v63, %v1424_v62  ;;  %v1426_v5 = vpop.f32.mrf.mxu1  ;;  %v1258_v12 = vadd.f32 %v3862_v9, %v1257_v4  ;;  %v2649_v63 = vor.u32 %v3166_v56, %v2648_v54  ;;  %v3172_v56 = vld [vmem:[%s3725_s23 + $0x1c4] sm:$0xf] }
  0xd0   : > { %v1762_v8 = vadd.f32 %v1761_v21, %v1593_v3  ;;  %1296 = vmatmul.bf16.gmra.mxu0 %v2617_v0  ;;  %v1427_v17 = vadd.f32 %v1426_v5, %v1258_v12  ;;  %v2661_v21 = vor.u32 %v3165_v14, %v2658_v15  ;;  %v2653_v0 = vor.u32 %v3164_v57, %v2650_v58  ;;  %v2690_v14 = vld [vmem:[%s3725_s23 + $0x1d8] sm:$0xf0]  ;;  %v2682_v57 = vld [vmem:[%s3725_s23 + $0x1d0] sm:$0xf0]  ;;  %v2688_v58 = vld [vmem:[%s3725_s23 + $0x1c8] sm:$0xf] }
  0xd1   : > { %1465 = vmatmul.bf16.gmra.mxu1 %v2621_v1  ;;  %v2657_v5 = vor.u32 %v3167_v60, %v2656_v59  ;;  %v3175_v59 = vld [vmem:[%s3725_s23 + $0x1d4] sm:$0xf0] }
  0xd2   : > { %v1917_v11 = vmax.f32 %v1762_v8, 0.0  ;;  %1634 = vmatmul.bf16.gmra.mxu2 %v2625_v6  ;;  %v1771_v20 = vpop.f32.mrf.mxu3 }
  0xd4   : > { %v3280_v13 = vpack.c.bf16 %v1917_v11, %v1916_v10 }
  0xd5   : > { %v1595_v16 = vpop.f32.mrf.mxu2  ;;  %v1259_v18 = vpop.f32.mrf.mxu0 }
  0xd6   : > { %3432 = vst [vmem:[%s3883_s12 + $0x8] sm:$0xff] %v3280_v13   ;;  %v1428_v19 = vpop.f32.mrf.mxu1  ;;  %v1260_v22 = vadd.f32 %v3862_v9, %v1259_v18  ;;  %v1596_v24 = vadd.f32 %v1595_v16, %v1427_v17  ;;  %v3173_v13 = vld [vmem:[%s3725_s23 + $0x1cc] sm:$0xf] }
  0xd7   : > { %3078 = vmatmul.msk.bf16.gmra.mxu3 %vm1141_vm0, %v2661_v21 }
  0xd8   : > { %v1429_v30 = vadd.f32 %v1428_v19, %v1260_v22  ;;  %v1765_v34 = vadd.f32 %v3878_v40, %v1596_v24  ;;  %v2664_v22 = vld [vmem:[%s3725_s23 + $0x1a0] sm:$0xf]  ;;  %v3170_v24 = vld [vmem:[%s3725_s23 + $0x1ac] sm:$0xf0] }
  0xda   : > { %v3910_v39 = vpop.f32.mrf.mxu3  ;;  %v1918_v42 = vmax.f32 %v1765_v34, 0.0 }
  0xdd   : > { %v1597_v31 = vpop.f32.mrf.mxu2  ;;  %v1262_v36 = vpop.f32.mrf.mxu0 }
  0xde   : > { %v1598_v35 = vadd.f32 %v1597_v31, %v1429_v30  ;;  %v1431_v37 = vpop.f32.mrf.mxu1  ;;  %v1263_v44 = vadd.f32 %v3862_v9, %v1262_v36  ;;  %v2665_v31 = vor.u32 %v3170_v24, %v2664_v22  ;;  %v3176_v24 = vld [vmem:[%s3725_s23 + $0x1e4] sm:$0xf] }
  0xe0   : > { %v1767_v41 = vadd.f32 %v1766_v52, %v1598_v35  ;;  %1301 = vmatmul.bf16.gmra.mxu0 %v2633_v32  ;;  %v1432_v48 = vadd.f32 %v1431_v37, %v1263_v44  ;;  %v2677_v52 = vor.u32 %v3169_v45, %v2674_v46  ;;  %v2669_v32 = vor.u32 %v3168_v25, %v2666_v26  ;;  %v2706_v45 = vld [vmem:[%s3725_s23 + $0x1f8] sm:$0xf0]  ;;  %v2698_v25 = vld [vmem:[%s3725_s23 + $0x1f0] sm:$0xf0]  ;;  %v2704_v26 = vld [vmem:[%s3725_s23 + $0x1e8] sm:$0xf] }
  0xe1   : > { %1470 = vmatmul.bf16.gmra.mxu1 %v2637_v33  ;;  %v2673_v37 = vor.u32 %v3171_v28, %v2672_v27  ;;  %v3179_v27 = vld [vmem:[%s3725_s23 + $0x1f4] sm:$0xf0] }
  0xe2   : > { %v1919_v43 = vmax.f32 %v1767_v41, 0.0  ;;  %1639 = vmatmul.bf16.gmra.mxu2 %v2641_v38  ;;  %v1776_v51 = vpop.f32.mrf.mxu3 }
  0xe4   : > { %v3285_v40 = vpack.c.bf16 %v1919_v43, %v1918_v42 }
  0xe5   : > { %v1600_v47 = vpop.f32.mrf.mxu2  ;;  %v1264_v49 = vpop.f32.mrf.mxu0 }
  0xe6   : > { %3433 = vst [vmem:[%s3883_s12 + $0x10] sm:$0xff] %v3285_v40   ;;  %v1433_v50 = vpop.f32.mrf.mxu1  ;;  %v1265_v53 = vadd.f32 %v3862_v9, %v1264_v49  ;;  %v1601_v55 = vadd.f32 %v1600_v47, %v1432_v48  ;;  %v3177_v40 = vld [vmem:[%s3725_s23 + $0x1ec] sm:$0xf] }
  0xe7   : > { %3079 = vmatmul.msk.bf16.gmra.mxu3 %vm1141_vm0, %v2677_v52 }
  0xe8   : > { %v1434_v61 = vadd.f32 %v1433_v50, %v1265_v53  ;;  %v1770_v1 = vadd.f32 %v3895_v7, %v1601_v55  ;;  %v2680_v53 = vld [vmem:[%s3725_s23 + $0x1c0] sm:$0xf]  ;;  %v3174_v55 = vld [vmem:[%s3725_s23 + $0x1cc] sm:$0xf0] }
  0xea   : > { %v3925_v6 = vpop.f32.mrf.mxu3  ;;  %v1920_v10 = vmax.f32 %v1770_v1, 0.0 }
  0xed   : > { %v1602_v62 = vpop.f32.mrf.mxu2  ;;  %v1267_v3 = vpop.f32.mrf.mxu0 }
  0xee   : > { %v1603_v2 = vadd.f32 %v1602_v62, %v1434_v61  ;;  %v1436_v4 = vpop.f32.mrf.mxu1  ;;  %v1268_v12 = vadd.f32 %v3862_v9, %v1267_v3  ;;  %v2681_v62 = vor.u32 %v3174_v55, %v2680_v53  ;;  %v3180_v55 = vld [vmem:[%s3725_s23 + $0x204] sm:$0xf] }
  0xf0   : > { %v1772_v8 = vadd.f32 %v1771_v20, %v1603_v2  ;;  %1306 = vmatmul.bf16.gmra.mxu0 %v2649_v63  ;;  %v1437_v16 = vadd.f32 %v1436_v4, %v1268_v12  ;;  %v2693_v20 = vor.u32 %v3173_v13, %v2690_v14  ;;  %v2685_v63 = vor.u32 %v3172_v56, %v2682_v57  ;;  %v2722_v13 = vld [vmem:[%s3725_s23 + $0x218] sm:$0xf0]  ;;  %v2714_v56 = vld [vmem:[%s3725_s23 + $0x210] sm:$0xf0]  ;;  %v2720_v57 = vld [vmem:[%s3725_s23 + $0x208] sm:$0xf] }
  0xf1   : > { %1475 = vmatmul.bf16.gmra.mxu1 %v2653_v0  ;;  %v2689_v4 = vor.u32 %v3175_v59, %v2688_v58  ;;  %v3183_v58 = vld [vmem:[%s3725_s23 + $0x214] sm:$0xf0] }
  0xf2   : > { %v1921_v11 = vmax.f32 %v1772_v8, 0.0  ;;  %1644 = vmatmul.bf16.gmra.mxu2 %v2657_v5  ;;  %v1781_v19 = vpop.f32.mrf.mxu3 }
  0xf4   : > { %v3290_v7 = vpack.c.bf16 %v1921_v11, %v1920_v10 }
  0xf5   : > { %v1605_v15 = vpop.f32.mrf.mxu2  ;;  %v1269_v17 = vpop.f32.mrf.mxu0 }
  0xf6   : > { %3434 = vst [vmem:[%s3883_s12 + $0x18] sm:$0xff] %v3290_v7   ;;  %v1438_v18 = vpop.f32.mrf.mxu1  ;;  %v1270_v21 = vadd.f32 %v3862_v9, %v1269_v17  ;;  %v1606_v23 = vadd.f32 %v1605_v15, %v1437_v16  ;;  %v3181_v7 = vld [vmem:[%s3725_s23 + $0x20c] sm:$0xf] }
  0xf7   : > { %3080 = vmatmul.msk.bf16.gmra.mxu3 %vm1141_vm0, %v2693_v20 }
  0xf8   : > { %v1439_v29 = vadd.f32 %v1438_v18, %v1270_v21  ;;  %v1775_v33 = vadd.f32 %v3910_v39, %v1606_v23  ;;  %v2696_v21 = vld [vmem:[%s3725_s23 + $0x1e0] sm:$0xf]  ;;  %v3178_v23 = vld [vmem:[%s3725_s23 + $0x1ec] sm:$0xf0] }
  0xfa   : > { %v3940_v38 = vpop.f32.mrf.mxu3  ;;  %v1922_v42 = vmax.f32 %v1775_v33, 0.0 }
  0xfd   : > { %v1607_v30 = vpop.f32.mrf.mxu2  ;;  %v1272_v35 = vpop.f32.mrf.mxu0 }
  0xfe   : > { %v1608_v34 = vadd.f32 %v1607_v30, %v1439_v29  ;;  %v1441_v36 = vpop.f32.mrf.mxu1  ;;  %v1273_v44 = vadd.f32 %v3862_v9, %v1272_v35  ;;  %v2697_v30 = vor.u32 %v3178_v23, %v2696_v21  ;;  %v3184_v23 = vld [vmem:[%s3725_s23 + $0x224] sm:$0xf] }
 0x100   : > { %v1777_v41 = vadd.f32 %v1776_v51, %v1608_v34  ;;  %1311 = vmatmul.bf16.gmra.mxu0 %v2665_v31  ;;  %v1442_v47 = vadd.f32 %v1441_v36, %v1273_v44  ;;  %v2709_v51 = vor.u32 %v3177_v40, %v2706_v45  ;;  %v2701_v31 = vor.u32 %v3176_v24, %v2698_v25  ;;  %v2738_v40 = vld [vmem:[%s3725_s23 + $0x238] sm:$0xf0]  ;;  %v2730_v24 = vld [vmem:[%s3725_s23 + $0x230] sm:$0xf0]  ;;  %v2736_v25 = vld [vmem:[%s3725_s23 + $0x228] sm:$0xf] }
 0x101   : > { %1480 = vmatmul.bf16.gmra.mxu1 %v2669_v32  ;;  %v2705_v36 = vor.u32 %v3179_v27, %v2704_v26  ;;  %v3187_v26 = vld [vmem:[%s3725_s23 + $0x234] sm:$0xf0] }
 0x102   : > { %v1923_v43 = vmax.f32 %v1777_v41, 0.0  ;;  %1649 = vmatmul.bf16.gmra.mxu2 %v2673_v37  ;;  %v1786_v50 = vpop.f32.mrf.mxu3 }
 0x104   : > { %v3295_v39 = vpack.c.bf16 %v1923_v43, %v1922_v42 }
 0x105   : > { %v1610_v46 = vpop.f32.mrf.mxu2  ;;  %v1274_v48 = vpop.f32.mrf.mxu0 }
 0x106   : > { %3435 = vst [vmem:[%s3883_s12 + $0x20] sm:$0xff] %v3295_v39   ;;  %v1443_v49 = vpop.f32.mrf.mxu1  ;;  %v1275_v52 = vadd.f32 %v3862_v9, %v1274_v48  ;;  %v1611_v54 = vadd.f32 %v1610_v46, %v1442_v47  ;;  %v3185_v39 = vld [vmem:[%s3725_s23 + $0x22c] sm:$0xf] }
 0x107   : > { %3081 = vmatmul.msk.bf16.gmra.mxu3 %vm1141_vm0, %v2709_v51 }
 0x108   : > { %v1444_v60 = vadd.f32 %v1443_v49, %v1275_v52  ;;  %v1780_v0 = vadd.f32 %v3925_v6, %v1611_v54  ;;  %v2712_v52 = vld [vmem:[%s3725_s23 + $0x200] sm:$0xf]  ;;  %v3182_v54 = vld [vmem:[%s3725_s23 + $0x20c] sm:$0xf0] }
 0x10a   : > { %v3955_v5 = vpop.f32.mrf.mxu3  ;;  %v1924_v10 = vmax.f32 %v1780_v0, 0.0 }
 0x10d   : > { %v1612_v61 = vpop.f32.mrf.mxu2  ;;  %v1277_v2 = vpop.f32.mrf.mxu0 }
 0x10e   : > { %v1613_v1 = vadd.f32 %v1612_v61, %v1444_v60  ;;  %v1446_v3 = vpop.f32.mrf.mxu1  ;;  %v1278_v12 = vadd.f32 %v3862_v9, %v1277_v2  ;;  %v2713_v61 = vor.u32 %v3182_v54, %v2712_v52  ;;  %v3188_v54 = vld [vmem:[%s3725_s23 + $0x244] sm:$0xf] }
 0x110   : > { %v1782_v8 = vadd.f32 %v1781_v19, %v1613_v1  ;;  %1316 = vmatmul.bf16.gmra.mxu0 %v2681_v62  ;;  %v1447_v15 = vadd.f32 %v1446_v3, %v1278_v12  ;;  %v2725_v19 = vor.u32 %v3181_v7, %v2722_v13  ;;  %v2717_v62 = vor.u32 %v3180_v55, %v2714_v56  ;;  %v2754_v7 = vld [vmem:[%s3725_s23 + $0x258] sm:$0xf0]  ;;  %v2746_v55 = vld [vmem:[%s3725_s23 + $0x250] sm:$0xf0]  ;;  %v2752_v56 = vld [vmem:[%s3725_s23 + $0x248] sm:$0xf] }
 0x111   : > { %1485 = vmatmul.bf16.gmra.mxu1 %v2685_v63  ;;  %v2721_v3 = vor.u32 %v3183_v58, %v2720_v57  ;;  %v3191_v57 = vld [vmem:[%s3725_s23 + $0x254] sm:$0xf0] }
 0x112   : > { %v1925_v11 = vmax.f32 %v1782_v8, 0.0  ;;  %1654 = vmatmul.bf16.gmra.mxu2 %v2689_v4  ;;  %v1791_v18 = vpop.f32.mrf.mxu3 }
 0x114   : > { %v3300_v6 = vpack.c.bf16 %v1925_v11, %v1924_v10 }
 0x115   : > { %v1615_v14 = vpop.f32.mrf.mxu2  ;;  %v1279_v16 = vpop.f32.mrf.mxu0 }
 0x116   : > { %3436 = vst [vmem:[%s3883_s12 + $0x28] sm:$0xff] %v3300_v6   ;;  %v1448_v17 = vpop.f32.mrf.mxu1  ;;  %v1280_v20 = vadd.f32 %v3862_v9, %v1279_v16  ;;  %v1616_v22 = vadd.f32 %v1615_v14, %v1447_v15  ;;  %v3189_v6 = vld [vmem:[%s3725_s23 + $0x24c] sm:$0xf] }
 0x117   : > { %3082 = vmatmul.msk.bf16.gmra.mxu3 %vm1141_vm0, %v2725_v19 }
 0x118   : > { %v1449_v28 = vadd.f32 %v1448_v17, %v1280_v20  ;;  %v1785_v32 = vadd.f32 %v3940_v38, %v1616_v22  ;;  %v2728_v20 = vld [vmem:[%s3725_s23 + $0x220] sm:$0xf]  ;;  %v3186_v22 = vld [vmem:[%s3725_s23 + $0x22c] sm:$0xf0] }
 0x11a   : > { %v3970_v37 = vpop.f32.mrf.mxu3  ;;  %v1926_v42 = vmax.f32 %v1785_v32, 0.0 }
 0x11d   : > { %v1617_v29 = vpop.f32.mrf.mxu2  ;;  %v1282_v34 = vpop.f32.mrf.mxu0 }
 0x11e   : > { %v1618_v33 = vadd.f32 %v1617_v29, %v1449_v28  ;;  %v1451_v35 = vpop.f32.mrf.mxu1  ;;  %v1283_v44 = vadd.f32 %v3862_v9, %v1282_v34  ;;  %v2729_v29 = vor.u32 %v3186_v22, %v2728_v20  ;;  %v3192_v22 = vld [vmem:[%s3725_s23 + $0x264] sm:$0xf] }
 0x120   : > { %v1787_v41 = vadd.f32 %v1786_v50, %v1618_v33  ;;  %1321 = vmatmul.bf16.gmra.mxu0 %v2697_v30  ;;  %v1452_v46 = vadd.f32 %v1451_v35, %v1283_v44  ;;  %v2741_v50 = vor.u32 %v3185_v39, %v2738_v40  ;;  %v2733_v30 = vor.u32 %v3184_v23, %v2730_v24  ;;  %v2770_v39 = vld [vmem:[%s3725_s23 + $0x278] sm:$0xf0]  ;;  %v2762_v23 = vld [vmem:[%s3725_s23 + $0x270] sm:$0xf0]  ;;  %v2768_v24 = vld [vmem:[%s3725_s23 + $0x268] sm:$0xf] }
 0x121   : > { %1490 = vmatmul.bf16.gmra.mxu1 %v2701_v31  ;;  %v2737_v35 = vor.u32 %v3187_v26, %v2736_v25  ;;  %v3195_v25 = vld [vmem:[%s3725_s23 + $0x274] sm:$0xf0] }
 0x122   : > { %v1927_v43 = vmax.f32 %v1787_v41, 0.0  ;;  %1659 = vmatmul.bf16.gmra.mxu2 %v2705_v36  ;;  %v1796_v49 = vpop.f32.mrf.mxu3 }
 0x124   : > { %v3305_v38 = vpack.c.bf16 %v1927_v43, %v1926_v42 }
 0x125   : > { %v1620_v45 = vpop.f32.mrf.mxu2  ;;  %v1284_v47 = vpop.f32.mrf.mxu0 }
 0x126   : > { %3437 = vst [vmem:[%s3883_s12 + $0x30] sm:$0xff] %v3305_v38   ;;  %v1453_v48 = vpop.f32.mrf.mxu1  ;;  %v1285_v51 = vadd.f32 %v3862_v9, %v1284_v47  ;;  %v1621_v53 = vadd.f32 %v1620_v45, %v1452_v46  ;;  %v3193_v38 = vld [vmem:[%s3725_s23 + $0x26c] sm:$0xf] }
 0x127   : > { %3083 = vmatmul.msk.bf16.gmra.mxu3 %vm1141_vm0, %v2741_v50 }
 0x128   : > { %v1454_v59 = vadd.f32 %v1453_v48, %v1285_v51  ;;  %v1790_v63 = vadd.f32 %v3955_v5, %v1621_v53  ;;  %v2744_v51 = vld [vmem:[%s3725_s23 + $0x240] sm:$0xf]  ;;  %v3190_v53 = vld [vmem:[%s3725_s23 + $0x24c] sm:$0xf0] }
 0x12a   : > { %v3985_v4 = vpop.f32.mrf.mxu3  ;;  %v1928_v10 = vmax.f32 %v1790_v63, 0.0 }
 0x12d   : > { %v1622_v60 = vpop.f32.mrf.mxu2  ;;  %v1287_v1 = vpop.f32.mrf.mxu0 }
 0x12e   : > { %v1623_v0 = vadd.f32 %v1622_v60, %v1454_v59  ;;  %v1456_v2 = vpop.f32.mrf.mxu1  ;;  %v1288_v12 = vadd.f32 %v3862_v9, %v1287_v1  ;;  %v2745_v60 = vor.u32 %v3190_v53, %v2744_v51  ;;  %v3196_v53 = vld [vmem:[%s3725_s23 + $0x284] sm:$0xf] }
 0x130   : > { %v1792_v8 = vadd.f32 %v1791_v18, %v1623_v0  ;;  %1326 = vmatmul.bf16.gmra.mxu0 %v2713_v61  ;;  %v1457_v14 = vadd.f32 %v1456_v2, %v1288_v12  ;;  %v2757_v18 = vor.u32 %v3189_v6, %v2754_v7  ;;  %v2749_v61 = vor.u32 %v3188_v54, %v2746_v55  ;;  %v2786_v6 = vld [vmem:[%s3725_s23 + $0x298] sm:$0xf0]  ;;  %v2778_v54 = vld [vmem:[%s3725_s23 + $0x290] sm:$0xf0]  ;;  %v2784_v55 = vld [vmem:[%s3725_s23 + $0x288] sm:$0xf] }
 0x131   : > { %1495 = vmatmul.bf16.gmra.mxu1 %v2717_v62  ;;  %v2753_v2 = vor.u32 %v3191_v57, %v2752_v56  ;;  %v3199_v56 = vld [vmem:[%s3725_s23 + $0x294] sm:$0xf0] }
 0x132   : > { %v1929_v11 = vmax.f32 %v1792_v8, 0.0  ;;  %1664 = vmatmul.bf16.gmra.mxu2 %v2721_v3  ;;  %v1801_v17 = vpop.f32.mrf.mxu3 }
 0x134   : > { %v3310_v5 = vpack.c.bf16 %v1929_v11, %v1928_v10 }
 0x135   : > { %v1625_v13 = vpop.f32.mrf.mxu2  ;;  %v1289_v15 = vpop.f32.mrf.mxu0 }
 0x136   : > { %3438 = vst [vmem:[%s3883_s12 + $0x38] sm:$0xff] %v3310_v5   ;;  %v1458_v16 = vpop.f32.mrf.mxu1  ;;  %v1290_v19 = vadd.f32 %v3862_v9, %v1289_v15  ;;  %v1626_v21 = vadd.f32 %v1625_v13, %v1457_v14  ;;  %v3197_v5 = vld [vmem:[%s3725_s23 + $0x28c] sm:$0xf] }
 0x137   : > { %3084 = vmatmul.msk.bf16.gmra.mxu3 %vm1141_vm0, %v2757_v18 }
 0x138   : > { %v1459_v27 = vadd.f32 %v1458_v16, %v1290_v19  ;;  %v1795_v31 = vadd.f32 %v3970_v37, %v1626_v21  ;;  %v2760_v19 = vld [vmem:[%s3725_s23 + $0x260] sm:$0xf]  ;;  %v3194_v21 = vld [vmem:[%s3725_s23 + $0x26c] sm:$0xf0] }
 0x13a   : > { %v4000_v36 = vpop.f32.mrf.mxu3  ;;  %v1930_v42 = vmax.f32 %v1795_v31, 0.0 }
 0x13d   : > { %v1627_v28 = vpop.f32.mrf.mxu2  ;;  %v1292_v33 = vpop.f32.mrf.mxu0 }
 0x13e   : > { %v1628_v32 = vadd.f32 %v1627_v28, %v1459_v27  ;;  %v1461_v34 = vpop.f32.mrf.mxu1  ;;  %v1293_v44 = vadd.f32 %v3862_v9, %v1292_v33  ;;  %v2761_v28 = vor.u32 %v3194_v21, %v2760_v19  ;;  %v3200_v21 = vld [vmem:[%s3725_s23 + $0x2a4] sm:$0xf] }
 0x140   : > { %v1797_v41 = vadd.f32 %v1796_v49, %v1628_v32  ;;  %1331 = vmatmul.bf16.gmra.mxu0 %v2729_v29  ;;  %v1462_v45 = vadd.f32 %v1461_v34, %v1293_v44  ;;  %v2773_v49 = vor.u32 %v3193_v38, %v2770_v39  ;;  %v2765_v29 = vor.u32 %v3192_v22, %v2762_v23  ;;  %v2802_v38 = vld [vmem:[%s3725_s23 + $0x2b8] sm:$0xf0]  ;;  %v2794_v22 = vld [vmem:[%s3725_s23 + $0x2b0] sm:$0xf0]  ;;  %v2800_v23 = vld [vmem:[%s3725_s23 + $0x2a8] sm:$0xf] }
 0x141   : > { %1500 = vmatmul.bf16.gmra.mxu1 %v2733_v30  ;;  %v2769_v34 = vor.u32 %v3195_v25, %v2768_v24  ;;  %v3203_v24 = vld [vmem:[%s3725_s23 + $0x2b4] sm:$0xf0] }
 0x142   : > { %v1931_v43 = vmax.f32 %v1797_v41, 0.0  ;;  %1669 = vmatmul.bf16.gmra.mxu2 %v2737_v35  ;;  %v1806_v48 = vpop.f32.mrf.mxu3 }
 0x144   : > { %v3315_v37 = vpack.c.bf16 %v1931_v43, %v1930_v42 }
 0x145   : > { %v1630_v40 = vpop.f32.mrf.mxu2  ;;  %v1294_v46 = vpop.f32.mrf.mxu0 }
 0x146   : > { %3439 = vst [vmem:[%s3883_s12 + $0x40] sm:$0xff] %v3315_v37   ;;  %v1463_v47 = vpop.f32.mrf.mxu1  ;;  %v1295_v50 = vadd.f32 %v3862_v9, %v1294_v46  ;;  %v1631_v52 = vadd.f32 %v1630_v40, %v1462_v45  ;;  %v3201_v37 = vld [vmem:[%s3725_s23 + $0x2ac] sm:$0xf] }
 0x147   : > { %3085 = vmatmul.msk.bf16.gmra.mxu3 %vm1141_vm0, %v2773_v49 }
 0x148   : > { %v1464_v58 = vadd.f32 %v1463_v47, %v1295_v50  ;;  %v1800_v62 = vadd.f32 %v3985_v4, %v1631_v52  ;;  %v2776_v50 = vld [vmem:[%s3725_s23 + $0x280] sm:$0xf]  ;;  %v3198_v52 = vld [vmem:[%s3725_s23 + $0x28c] sm:$0xf0] }
 0x14a   : > { %v4015_v3 = vpop.f32.mrf.mxu3  ;;  %v1932_v10 = vmax.f32 %v1800_v62, 0.0 }
 0x14d   : > { %v1632_v59 = vpop.f32.mrf.mxu2  ;;  %v1297_v0 = vpop.f32.mrf.mxu0 }
 0x14e   : > { %v1633_v63 = vadd.f32 %v1632_v59, %v1464_v58  ;;  %v1466_v1 = vpop.f32.mrf.mxu1  ;;  %v1298_v12 = vadd.f32 %v3862_v9, %v1297_v0  ;;  %v2777_v59 = vor.u32 %v3198_v52, %v2776_v50  ;;  %v3204_v52 = vld [vmem:[%s3725_s23 + $0x2c4] sm:$0xf] }
 0x150   : > { %v1802_v8 = vadd.f32 %v1801_v17, %v1633_v63  ;;  %1336 = vmatmul.bf16.gmra.mxu0 %v2745_v60  ;;  %v1467_v13 = vadd.f32 %v1466_v1, %v1298_v12  ;;  %v2789_v17 = vor.u32 %v3197_v5, %v2786_v6  ;;  %v2781_v60 = vor.u32 %v3196_v53, %v2778_v54  ;;  %v2818_v5 = vld [vmem:[%s3725_s23 + $0x2d8] sm:$0xf0]  ;;  %v2810_v53 = vld [vmem:[%s3725_s23 + $0x2d0] sm:$0xf0]  ;;  %v2816_v54 = vld [vmem:[%s3725_s23 + $0x2c8] sm:$0xf] }
 0x151   : > { %1505 = vmatmul.bf16.gmra.mxu1 %v2749_v61  ;;  %v2785_v1 = vor.u32 %v3199_v56, %v2784_v55  ;;  %v3207_v55 = vld [vmem:[%s3725_s23 + $0x2d4] sm:$0xf0] }
 0x152   : > { %v1933_v11 = vmax.f32 %v1802_v8, 0.0  ;;  %1674 = vmatmul.bf16.gmra.mxu2 %v2753_v2  ;;  %v1811_v16 = vpop.f32.mrf.mxu3 }
 0x154   : > { %v3320_v4 = vpack.c.bf16 %v1933_v11, %v1932_v10 }
 0x155   : > { %v1635_v7 = vpop.f32.mrf.mxu2  ;;  %v1299_v14 = vpop.f32.mrf.mxu0 }
 0x156   : > { %3440 = vst [vmem:[%s3883_s12 + $0x48] sm:$0xff] %v3320_v4   ;;  %v1468_v15 = vpop.f32.mrf.mxu1  ;;  %v1300_v18 = vadd.f32 %v3862_v9, %v1299_v14  ;;  %v1636_v20 = vadd.f32 %v1635_v7, %v1467_v13  ;;  %v3205_v4 = vld [vmem:[%s3725_s23 + $0x2cc] sm:$0xf] }
 0x157   : > { %3086 = vmatmul.msk.bf16.gmra.mxu3 %vm1141_vm0, %v2789_v17 }
 0x158   : > { %v1469_v26 = vadd.f32 %v1468_v15, %v1300_v18  ;;  %v1805_v30 = vadd.f32 %v4000_v36, %v1636_v20  ;;  %v2792_v18 = vld [vmem:[%s3725_s23 + $0x2a0] sm:$0xf]  ;;  %v3202_v20 = vld [vmem:[%s3725_s23 + $0x2ac] sm:$0xf0] }
 0x15a   : > { %v4030_v35 = vpop.f32.mrf.mxu3  ;;  %v1934_v42 = vmax.f32 %v1805_v30, 0.0 }
 0x15d   : > { %v1637_v27 = vpop.f32.mrf.mxu2  ;;  %v1302_v32 = vpop.f32.mrf.mxu0 }
 0x15e   : > { %v1638_v31 = vadd.f32 %v1637_v27, %v1469_v26  ;;  %v1471_v33 = vpop.f32.mrf.mxu1  ;;  %v1303_v44 = vadd.f32 %v3862_v9, %v1302_v32  ;;  %v2793_v27 = vor.u32 %v3202_v20, %v2792_v18  ;;  %v3208_v20 = vld [vmem:[%s3725_s23 + $0x2e4] sm:$0xf] }
 0x160   : > { %v1807_v41 = vadd.f32 %v1806_v48, %v1638_v31  ;;  %1341 = vmatmul.bf16.gmra.mxu0 %v2761_v28  ;;  %v1472_v40 = vadd.f32 %v1471_v33, %v1303_v44  ;;  %v2805_v48 = vor.u32 %v3201_v37, %v2802_v38  ;;  %v2797_v28 = vor.u32 %v3200_v21, %v2794_v22  ;;  %v2834_v37 = vld [vmem:[%s3725_s23 + $0x2f8] sm:$0xf0]  ;;  %v2826_v21 = vld [vmem:[%s3725_s23 + $0x2f0] sm:$0xf0]  ;;  %v2832_v22 = vld [vmem:[%s3725_s23 + $0x2e8] sm:$0xf] }
 0x161   : > { %1510 = vmatmul.bf16.gmra.mxu1 %v2765_v29  ;;  %v2801_v33 = vor.u32 %v3203_v24, %v2800_v23  ;;  %v3211_v23 = vld [vmem:[%s3725_s23 + $0x2f4] sm:$0xf0] }
 0x162   : > { %v1935_v43 = vmax.f32 %v1807_v41, 0.0  ;;  %1679 = vmatmul.bf16.gmra.mxu2 %v2769_v34  ;;  %v1816_v47 = vpop.f32.mrf.mxu3 }
 0x164   : > { %v3325_v36 = vpack.c.bf16 %v1935_v43, %v1934_v42 }
 0x165   : > { %v1640_v39 = vpop.f32.mrf.mxu2  ;;  %v1304_v45 = vpop.f32.mrf.mxu0 }
 0x166   : > { %3441 = vst [vmem:[%s3883_s12 + $0x50] sm:$0xff] %v3325_v36   ;;  %v1473_v46 = vpop.f32.mrf.mxu1  ;;  %v1305_v49 = vadd.f32 %v3862_v9, %v1304_v45  ;;  %v1641_v51 = vadd.f32 %v1640_v39, %v1472_v40  ;;  %v3209_v36 = vld [vmem:[%s3725_s23 + $0x2ec] sm:$0xf] }
 0x167   : > { %3087 = vmatmul.msk.bf16.gmra.mxu3 %vm1141_vm0, %v2805_v48 }
 0x168   : > { %v1474_v57 = vadd.f32 %v1473_v46, %v1305_v49  ;;  %v1810_v61 = vadd.f32 %v4015_v3, %v1641_v51  ;;  %v2808_v49 = vld [vmem:[%s3725_s23 + $0x2c0] sm:$0xf]  ;;  %v3206_v51 = vld [vmem:[%s3725_s23 + $0x2cc] sm:$0xf0] }
 0x16a   : > { %v4045_v2 = vpop.f32.mrf.mxu3  ;;  %v1936_v10 = vmax.f32 %v1810_v61, 0.0 }
 0x16d   : > { %v1642_v58 = vpop.f32.mrf.mxu2  ;;  %v1307_v63 = vpop.f32.mrf.mxu0 }
 0x16e   : > { %v1643_v62 = vadd.f32 %v1642_v58, %v1474_v57  ;;  %v1476_v0 = vpop.f32.mrf.mxu1  ;;  %v1308_v12 = vadd.f32 %v3862_v9, %v1307_v63  ;;  %v2809_v58 = vor.u32 %v3206_v51, %v2808_v49  ;;  %v2817_v63 = vor.u32 %v3207_v55, %v2816_v54  ;;  %v3212_v51 = vld [vmem:[%s3725_s23 + $0x304] sm:$0xf]  ;;  %v3215_v54 = vld [vmem:[%s3725_s23 + $0x314] sm:$0xf0] }
 0x170   : > { %v1812_v8 = vadd.f32 %v1811_v16, %v1643_v62  ;;  %1346 = vmatmul.bf16.gmra.mxu0 %v2777_v59  ;;  %v1477_v7 = vadd.f32 %v1476_v0, %v1308_v12  ;;  %v2821_v16 = vor.u32 %v3205_v4, %v2818_v5  ;;  %v2813_v59 = vor.u32 %v3204_v52, %v2810_v53  ;;  %v2850_v4 = vld [vmem:[%s3725_s23 + $0x318] sm:$0xf0]  ;;  %v2842_v52 = vld [vmem:[%s3725_s23 + $0x310] sm:$0xf0]  ;;  %v2848_v53 = vld [vmem:[%s3725_s23 + $0x308] sm:$0xf] }
 0x171   : > { %1515 = vmatmul.bf16.gmra.mxu1 %v2781_v60 }
 0x172   : > { %v1937_v11 = vmax.f32 %v1812_v8, 0.0  ;;  %1684 = vmatmul.bf16.gmra.mxu2 %v2785_v1  ;;  %v1821_v15 = vpop.f32.mrf.mxu3 }
 0x174   : > { %v3330_v3 = vpack.c.bf16 %v1937_v11, %v1936_v10  ;;  %v4080_v11 = vld [vmem:[%s4382_s2] ss:$0 sm:$0xff] }
 0x175   : > { %v1645_v6 = vpop.f32.mrf.mxu2  ;;  %v1309_v13 = vpop.f32.mrf.mxu0 }
 0x176   : > { %3442 = vst [vmem:[%s3883_s12 + $0x58] sm:$0xff] %v3330_v3   ;;  %v1478_v14 = vpop.f32.mrf.mxu1  ;;  %v1310_v17 = vadd.f32 %v3862_v9, %v1309_v13  ;;  %v1646_v19 = vadd.f32 %v1645_v6, %v1477_v7  ;;  %v3213_v3 = vld [vmem:[%s3725_s23 + $0x30c] sm:$0xf] }
 0x177   : > { %3088 = vmatmul.msk.bf16.gmra.mxu3 %vm1141_vm0, %v2821_v16 }
 0x178   : > { %v1479_v25 = vadd.f32 %v1478_v14, %v1310_v17  ;;  %v1815_v29 = vadd.f32 %v4030_v35, %v1646_v19  ;;  %v2824_v17 = vld [vmem:[%s3725_s23 + $0x2e0] sm:$0xf]  ;;  %v3210_v19 = vld [vmem:[%s3725_s23 + $0x2ec] sm:$0xf0] }
 0x17a   : > { %v4060_v34 = vpop.f32.mrf.mxu3  ;;  %v1938_v42 = vmax.f32 %v1815_v29, 0.0 }
 0x17d   : > { %v1647_v26 = vpop.f32.mrf.mxu2  ;;  %v1312_v31 = vpop.f32.mrf.mxu0 }
 0x17e   : > { %v1648_v30 = vadd.f32 %v1647_v26, %v1479_v25  ;;  %v1481_v32 = vpop.f32.mrf.mxu1  ;;  %v1313_v44 = vadd.f32 %v3862_v9, %v1312_v31  ;;  %v2825_v26 = vor.u32 %v3210_v19, %v2824_v17  ;;  %v3216_v19 = vld [vmem:[%s3725_s23 + $0x324] sm:$0xf] }
 0x180   : > { %v1817_v41 = vadd.f32 %v1816_v47, %v1648_v30  ;;  %1351 = vmatmul.bf16.gmra.mxu0 %v2793_v27  ;;  %v1482_v39 = vadd.f32 %v1481_v32, %v1313_v44  ;;  %v2837_v47 = vor.u32 %v3209_v36, %v2834_v37  ;;  %v2829_v27 = vor.u32 %v3208_v20, %v2826_v21  ;;  %v2866_v36 = vld [vmem:[%s3725_s23 + $0x338] sm:$0xf0]  ;;  %v2858_v20 = vld [vmem:[%s3725_s23 + $0x330] sm:$0xf0]  ;;  %v2864_v21 = vld [vmem:[%s3725_s23 + $0x328] sm:$0xf] }
 0x181   : > { %1520 = vmatmul.bf16.gmra.mxu1 %v2797_v28  ;;  %v2833_v32 = vor.u32 %v3211_v23, %v2832_v22  ;;  %v3219_v22 = vld [vmem:[%s3725_s23 + $0x334] sm:$0xf0] }
 0x182   : > { %v1939_v43 = vmax.f32 %v1817_v41, 0.0  ;;  %1689 = vmatmul.bf16.gmra.mxu2 %v2801_v33  ;;  %v1826_v46 = vpop.f32.mrf.mxu3 }
 0x184   : > { %v3335_v35 = vpack.c.bf16 %v1939_v43, %v1938_v42 }
 0x185   : > { %v1650_v38 = vpop.f32.mrf.mxu2  ;;  %v1314_v40 = vpop.f32.mrf.mxu0 }
 0x186   : > { %3443 = vst [vmem:[%s3883_s12 + $0x60] sm:$0xff] %v3335_v35   ;;  %v1483_v45 = vpop.f32.mrf.mxu1  ;;  %v1315_v48 = vadd.f32 %v3862_v9, %v1314_v40  ;;  %v1651_v50 = vadd.f32 %v1650_v38, %v1482_v39  ;;  %v3217_v35 = vld [vmem:[%s3725_s23 + $0x32c] sm:$0xf] }
 0x187   : > { %3089 = vmatmul.msk.bf16.gmra.mxu3 %vm1141_vm0, %v2837_v47 }
 0x188   : > { %v1484_v56 = vadd.f32 %v1483_v45, %v1315_v48  ;;  %v1820_v60 = vadd.f32 %v4045_v2, %v1651_v50  ;;  %v2840_v48 = vld [vmem:[%s3725_s23 + $0x300] sm:$0xf]  ;;  %v3214_v50 = vld [vmem:[%s3725_s23 + $0x30c] sm:$0xf0] }
 0x18a   : > { %v4075_v0 = vpop.f32.mrf.mxu3  ;;  %v1940_v8 = vmax.f32 %v1820_v60, 0.0 }
 0x18d   : > { %v1652_v57 = vpop.f32.mrf.mxu2  ;;  %v1317_v62 = vpop.f32.mrf.mxu0 }
 0x18e   : > { %v1653_v61 = vadd.f32 %v1652_v57, %v1484_v56  ;;  %v1486_v9 = vpop.f32.mrf.mxu1  ;;  %v1318_v2 = vadd.f32 %v4080_v11, %v1317_v62  ;;  %v2841_v57 = vor.u32 %v3214_v50, %v2840_v48  ;;  %v3220_v50 = vld [vmem:[%s3725_s23 + $0x344] sm:$0xf] }
 0x190   : > { %v1822_v1 = vadd.f32 %v1821_v15, %v1653_v61  ;;  %1356 = vmatmul.bf16.gmra.mxu0 %v2809_v58  ;;  %v1487_v6 = vadd.f32 %v1486_v9, %v1318_v2  ;;  %v2853_v15 = vor.u32 %v3213_v3, %v2850_v4  ;;  %v2845_v58 = vor.u32 %v3212_v51, %v2842_v52  ;;  %v2882_v3 = vld [vmem:[%s3725_s23 + $0x358] sm:$0xf0]  ;;  %v2874_v51 = vld [vmem:[%s3725_s23 + $0x350] sm:$0xf0]  ;;  %v2880_v52 = vld [vmem:[%s3725_s23 + $0x348] sm:$0xf] }
 0x191   : > { %1525 = vmatmul.bf16.gmra.mxu1 %v2813_v59  ;;  %v2849_v9 = vor.u32 %v3215_v54, %v2848_v53  ;;  %v3223_v53 = vld [vmem:[%s3725_s23 + $0x354] sm:$0xf0] }
 0x192   : > { %v1941_v10 = vmax.f32 %v1822_v1, 0.0  ;;  %1694 = vmatmul.bf16.gmra.mxu2 %v2817_v63  ;;  %v1831_v14 = vpop.f32.mrf.mxu3 }
 0x194   : > { %v3340_v12 = vpack.c.bf16 %v1941_v10, %v1940_v8 }
 0x195   : > { %v1655_v5 = vpop.f32.mrf.mxu2  ;;  %v1319_v7 = vpop.f32.mrf.mxu0 }
 0x196   : > { %3444 = vst [vmem:[%s3883_s12 + $0x68] sm:$0xff] %v3340_v12   ;;  %v1488_v13 = vpop.f32.mrf.mxu1  ;;  %v1320_v16 = vadd.f32 %v4080_v11, %v1319_v7  ;;  %v1656_v18 = vadd.f32 %v1655_v5, %v1487_v6  ;;  %v3221_v12 = vld [vmem:[%s3725_s23 + $0x34c] sm:$0xf] }
 0x197   : > { %3090 = vmatmul.msk.bf16.gmra.mxu3 %vm1141_vm0, %v2853_v15 }
 0x198   : > { %v1489_v24 = vadd.f32 %v1488_v13, %v1320_v16  ;;  %v1825_v28 = vadd.f32 %v4060_v34, %v1656_v18  ;;  %v2856_v16 = vld [vmem:[%s3725_s23 + $0x320] sm:$0xf]  ;;  %v3218_v18 = vld [vmem:[%s3725_s23 + $0x32c] sm:$0xf0] }
 0x19a   : > { %v4095_v33 = vpop.f32.mrf.mxu3  ;;  %v1942_v42 = vmax.f32 %v1825_v28, 0.0 }
 0x19d   : > { %v1657_v25 = vpop.f32.mrf.mxu2  ;;  %v1322_v30 = vpop.f32.mrf.mxu0 }
 0x19e   : > { %v1658_v29 = vadd.f32 %v1657_v25, %v1489_v24  ;;  %v1491_v31 = vpop.f32.mrf.mxu1  ;;  %v1323_v44 = vadd.f32 %v4080_v11, %v1322_v30  ;;  %v2857_v25 = vor.u32 %v3218_v18, %v2856_v16  ;;  %v3224_v18 = vld [vmem:[%s3725_s23 + $0x364] sm:$0xf] }
 0x1a0   : > { %v1827_v41 = vadd.f32 %v1826_v46, %v1658_v29  ;;  %1361 = vmatmul.bf16.gmra.mxu0 %v2825_v26  ;;  %v1492_v38 = vadd.f32 %v1491_v31, %v1323_v44  ;;  %v2869_v46 = vor.u32 %v3217_v35, %v2866_v36  ;;  %v2861_v26 = vor.u32 %v3216_v19, %v2858_v20  ;;  %v2898_v35 = vld [vmem:[%s3725_s23 + $0x378] sm:$0xf0]  ;;  %v2890_v19 = vld [vmem:[%s3725_s23 + $0x370] sm:$0xf0]  ;;  %v2896_v20 = vld [vmem:[%s3725_s23 + $0x368] sm:$0xf] }
 0x1a1   : > { %1530 = vmatmul.bf16.gmra.mxu1 %v2829_v27  ;;  %v2865_v31 = vor.u32 %v3219_v22, %v2864_v21  ;;  %v3227_v21 = vld [vmem:[%s3725_s23 + $0x374] sm:$0xf0] }
 0x1a2   : > { %v1943_v43 = vmax.f32 %v1827_v41, 0.0  ;;  %1699 = vmatmul.bf16.gmra.mxu2 %v2833_v32  ;;  %v1836_v45 = vpop.f32.mrf.mxu3 }
 0x1a4   : > { %v3345_v34 = vpack.c.bf16 %v1943_v43, %v1942_v42 }
 0x1a5   : > { %v1660_v37 = vpop.f32.mrf.mxu2  ;;  %v1324_v39 = vpop.f32.mrf.mxu0 }
 0x1a6   : > { %3445 = vst [vmem:[%s3883_s12 + $0x70] sm:$0xff] %v3345_v34   ;;  %v1493_v40 = vpop.f32.mrf.mxu1  ;;  %v1325_v47 = vadd.f32 %v4080_v11, %v1324_v39  ;;  %v1661_v49 = vadd.f32 %v1660_v37, %v1492_v38  ;;  %v3225_v34 = vld [vmem:[%s3725_s23 + $0x36c] sm:$0xf] }
 0x1a7   : > { %3091 = vmatmul.msk.bf16.gmra.mxu3 %vm1141_vm0, %v2869_v46 }
 0x1a8   : > { %v1494_v55 = vadd.f32 %v1493_v40, %v1325_v47  ;;  %v1830_v59 = vadd.f32 %v4075_v0, %v1661_v49  ;;  %v2872_v47 = vld [vmem:[%s3725_s23 + $0x340] sm:$0xf]  ;;  %v3222_v49 = vld [vmem:[%s3725_s23 + $0x34c] sm:$0xf0] }
 0x1aa   : > { %v4110_v63 = vpop.f32.mrf.mxu3  ;;  %v1944_v8 = vmax.f32 %v1830_v59, 0.0 }
 0x1ad   : > { %v1662_v56 = vpop.f32.mrf.mxu2  ;;  %v1327_v61 = vpop.f32.mrf.mxu0 }
 0x1ae   : > { %v1663_v60 = vadd.f32 %v1662_v56, %v1494_v55  ;;  %v1496_v62 = vpop.f32.mrf.mxu1  ;;  %v1328_v2 = vadd.f32 %v4080_v11, %v1327_v61  ;;  %v2873_v56 = vor.u32 %v3222_v49, %v2872_v47  ;;  %v3228_v49 = vld [vmem:[%s3725_s23 + $0x384] sm:$0xf] }
 0x1b0   : > { %v1832_v1 = vadd.f32 %v1831_v14, %v1663_v60  ;;  %1366 = vmatmul.bf16.gmra.mxu0 %v2841_v57  ;;  %v1497_v5 = vadd.f32 %v1496_v62, %v1328_v2  ;;  %v2885_v14 = vor.u32 %v3221_v12, %v2882_v3  ;;  %v2877_v57 = vor.u32 %v3220_v50, %v2874_v51  ;;  %v2914_v12 = vld [vmem:[%s3725_s23 + $0x398] sm:$0xf0]  ;;  %v2906_v50 = vld [vmem:[%s3725_s23 + $0x390] sm:$0xf0]  ;;  %v2912_v51 = vld [vmem:[%s3725_s23 + $0x388] sm:$0xf] }
 0x1b1   : > { %1535 = vmatmul.bf16.gmra.mxu1 %v2845_v58  ;;  %v2881_v62 = vor.u32 %v3223_v53, %v2880_v52  ;;  %v3231_v52 = vld [vmem:[%s3725_s23 + $0x394] sm:$0xf0] }
 0x1b2   : > { %v1945_v10 = vmax.f32 %v1832_v1, 0.0  ;;  %1704 = vmatmul.bf16.gmra.mxu2 %v2849_v9  ;;  %v1841_v13 = vpop.f32.mrf.mxu3 }
 0x1b4   : > { %v3350_v0 = vpack.c.bf16 %v1945_v10, %v1944_v8 }
 0x1b5   : > { %v1665_v4 = vpop.f32.mrf.mxu2  ;;  %v1329_v6 = vpop.f32.mrf.mxu0 }
 0x1b6   : > { %3446 = vst [vmem:[%s3883_s12 + $0x78] sm:$0xff] %v3350_v0   ;;  %v1498_v7 = vpop.f32.mrf.mxu1  ;;  %v1330_v15 = vadd.f32 %v4080_v11, %v1329_v6  ;;  %v1666_v17 = vadd.f32 %v1665_v4, %v1497_v5  ;;  %v3229_v0 = vld [vmem:[%s3725_s23 + $0x38c] sm:$0xf] }
 0x1b7   : > { %3092 = vmatmul.msk.bf16.gmra.mxu3 %vm1141_vm0, %v2885_v14 }
 0x1b8   : > { %v1499_v23 = vadd.f32 %v1498_v7, %v1330_v15  ;;  %v1835_v27 = vadd.f32 %v4095_v33, %v1666_v17  ;;  %v2888_v15 = vld [vmem:[%s3725_s23 + $0x360] sm:$0xf]  ;;  %v3226_v17 = vld [vmem:[%s3725_s23 + $0x36c] sm:$0xf0] }
 0x1ba   : > { %v4125_v32 = vpop.f32.mrf.mxu3  ;;  %v1946_v42 = vmax.f32 %v1835_v27, 0.0 }
 0x1bd   : > { %v1667_v24 = vpop.f32.mrf.mxu2  ;;  %v1332_v29 = vpop.f32.mrf.mxu0 }
 0x1be   : > { %v1668_v28 = vadd.f32 %v1667_v24, %v1499_v23  ;;  %v1501_v30 = vpop.f32.mrf.mxu1  ;;  %v1333_v44 = vadd.f32 %v4080_v11, %v1332_v29  ;;  %v2889_v24 = vor.u32 %v3226_v17, %v2888_v15  ;;  %v3232_v17 = vld [vmem:[%s3725_s23 + $0x3a4] sm:$0xf] }
 0x1c0   : > { %v1837_v41 = vadd.f32 %v1836_v45, %v1668_v28  ;;  %1371 = vmatmul.bf16.gmra.mxu0 %v2857_v25  ;;  %v1502_v37 = vadd.f32 %v1501_v30, %v1333_v44  ;;  %v2901_v45 = vor.u32 %v3225_v34, %v2898_v35  ;;  %v2893_v25 = vor.u32 %v3224_v18, %v2890_v19  ;;  %v2930_v34 = vld [vmem:[%s3725_s23 + $0x3b8] sm:$0xf0]  ;;  %v2922_v18 = vld [vmem:[%s3725_s23 + $0x3b0] sm:$0xf0]  ;;  %v2928_v19 = vld [vmem:[%s3725_s23 + $0x3a8] sm:$0xf] }
 0x1c1   : > { %1540 = vmatmul.bf16.gmra.mxu1 %v2861_v26  ;;  %v2897_v30 = vor.u32 %v3227_v21, %v2896_v20  ;;  %v3235_v20 = vld [vmem:[%s3725_s23 + $0x3b4] sm:$0xf0] }
 0x1c2   : > { %v1947_v43 = vmax.f32 %v1837_v41, 0.0  ;;  %1709 = vmatmul.bf16.gmra.mxu2 %v2865_v31  ;;  %v1846_v40 = vpop.f32.mrf.mxu3 }
 0x1c4   : > { %v3355_v33 = vpack.c.bf16 %v1947_v43, %v1946_v42 }
 0x1c5   : > { %v1670_v36 = vpop.f32.mrf.mxu2  ;;  %v1334_v38 = vpop.f32.mrf.mxu0 }
 0x1c6   : > { %3447 = vst [vmem:[%s3883_s12 + $0x80] sm:$0xff] %v3355_v33   ;;  %v1503_v39 = vpop.f32.mrf.mxu1  ;;  %v1335_v46 = vadd.f32 %v4080_v11, %v1334_v38  ;;  %v1671_v48 = vadd.f32 %v1670_v36, %v1502_v37  ;;  %v3233_v33 = vld [vmem:[%s3725_s23 + $0x3ac] sm:$0xf] }
 0x1c7   : > { %3093 = vmatmul.msk.bf16.gmra.mxu3 %vm1141_vm0, %v2901_v45 }
 0x1c8   : > { %v1504_v54 = vadd.f32 %v1503_v39, %v1335_v46  ;;  %v1840_v58 = vadd.f32 %v4110_v63, %v1671_v48  ;;  %v2904_v46 = vld [vmem:[%s3725_s23 + $0x380] sm:$0xf]  ;;  %v3230_v48 = vld [vmem:[%s3725_s23 + $0x38c] sm:$0xf0] }
 0x1ca   : > { %v4140_v9 = vpop.f32.mrf.mxu3  ;;  %v1948_v8 = vmax.f32 %v1840_v58, 0.0 }
 0x1cd   : > { %v1672_v55 = vpop.f32.mrf.mxu2  ;;  %v1337_v60 = vpop.f32.mrf.mxu0 }
 0x1ce   : > { %v1673_v59 = vadd.f32 %v1672_v55, %v1504_v54  ;;  %v1506_v61 = vpop.f32.mrf.mxu1  ;;  %v1338_v2 = vadd.f32 %v4080_v11, %v1337_v60  ;;  %v2905_v55 = vor.u32 %v3230_v48, %v2904_v46  ;;  %v3236_v48 = vld [vmem:[%s3725_s23 + $0x3c4] sm:$0xf] }
 0x1d0   : > { %v1842_v1 = vadd.f32 %v1841_v13, %v1673_v59  ;;  %1376 = vmatmul.bf16.gmra.mxu0 %v2873_v56  ;;  %v1507_v4 = vadd.f32 %v1506_v61, %v1338_v2  ;;  %v2917_v13 = vor.u32 %v3229_v0, %v2914_v12  ;;  %v2909_v56 = vor.u32 %v3228_v49, %v2906_v50  ;;  %v2946_v0 = vld [vmem:[%s3725_s23 + $0x3d8] sm:$0xf0]  ;;  %v2938_v49 = vld [vmem:[%s3725_s23 + $0x3d0] sm:$0xf0]  ;;  %v2944_v50 = vld [vmem:[%s3725_s23 + $0x3c8] sm:$0xf] }
 0x1d1   : > { %1545 = vmatmul.bf16.gmra.mxu1 %v2877_v57  ;;  %v2913_v61 = vor.u32 %v3231_v52, %v2912_v51  ;;  %v3239_v51 = vld [vmem:[%s3725_s23 + $0x3d4] sm:$0xf0] }
 0x1d2   : > { %v1949_v10 = vmax.f32 %v1842_v1, 0.0  ;;  %1714 = vmatmul.bf16.gmra.mxu2 %v2881_v62  ;;  %v1851_v7 = vpop.f32.mrf.mxu3 }
 0x1d4   : > { %v3360_v63 = vpack.c.bf16 %v1949_v10, %v1948_v8 }
 0x1d5   : > { %v1675_v3 = vpop.f32.mrf.mxu2  ;;  %v1339_v5 = vpop.f32.mrf.mxu0 }
 0x1d6   : > { %3448 = vst [vmem:[%s3883_s12 + $0x88] sm:$0xff] %v3360_v63   ;;  %v1508_v6 = vpop.f32.mrf.mxu1  ;;  %v1340_v14 = vadd.f32 %v4080_v11, %v1339_v5  ;;  %v1676_v16 = vadd.f32 %v1675_v3, %v1507_v4  ;;  %v3237_v63 = vld [vmem:[%s3725_s23 + $0x3cc] sm:$0xf] }
 0x1d7   : > { %3094 = vmatmul.msk.bf16.gmra.mxu3 %vm1141_vm0, %v2917_v13 }
 0x1d8   : > { %v1509_v22 = vadd.f32 %v1508_v6, %v1340_v14  ;;  %v1845_v26 = vadd.f32 %v4125_v32, %v1676_v16  ;;  %v2920_v14 = vld [vmem:[%s3725_s23 + $0x3a0] sm:$0xf]  ;;  %v3234_v16 = vld [vmem:[%s3725_s23 + $0x3ac] sm:$0xf0] }
 0x1da   : > { %v4155_v31 = vpop.f32.mrf.mxu3  ;;  %v1950_v42 = vmax.f32 %v1845_v26, 0.0 }
 0x1dd   : > { %v1677_v23 = vpop.f32.mrf.mxu2  ;;  %v1342_v28 = vpop.f32.mrf.mxu0 }
 0x1de   : > { %v1678_v27 = vadd.f32 %v1677_v23, %v1509_v22  ;;  %v1511_v29 = vpop.f32.mrf.mxu1  ;;  %v1343_v44 = vadd.f32 %v4080_v11, %v1342_v28  ;;  %v2921_v23 = vor.u32 %v3234_v16, %v2920_v14  ;;  %v2954_v14 = vld [vmem:[%s3725_s23 + $0x3f0] sm:$0xf0]  ;;  %v3243_v16 = vld [vmem:[%s3725_s23 + $0x3f4] sm:$0xf0] }
 0x1e0   : > { %v1847_v41 = vadd.f32 %v1846_v40, %v1678_v27  ;;  %1381 = vmatmul.bf16.gmra.mxu0 %v2889_v24  ;;  %v1512_v36 = vadd.f32 %v1511_v29, %v1343_v44  ;;  %v2933_v40 = vor.u32 %v3233_v33, %v2930_v34  ;;  %v2925_v24 = vor.u32 %v3232_v17, %v2922_v18  ;;  %v2962_v33 = vld [vmem:[%s3725_s23 + $0x3f8] sm:$0xf0] }
 0x1e1   : > { %1550 = vmatmul.bf16.gmra.mxu1 %v2893_v25  ;;  %v2929_v29 = vor.u32 %v3235_v20, %v2928_v19 }
 0x1e2   : > { %v1951_v43 = vmax.f32 %v1847_v41, 0.0  ;;  %1719 = vmatmul.bf16.gmra.mxu2 %v2897_v30  ;;  %v1856_v39 = vpop.f32.mrf.mxu3 }
 0x1e4   : > { %v3365_v32 = vpack.c.bf16 %v1951_v43, %v1950_v42 }
 0x1e5   : > { %v1680_v35 = vpop.f32.mrf.mxu2  ;;  %v1344_v37 = vpop.f32.mrf.mxu0 }
 0x1e6   : > { %3449 = vst [vmem:[%s3883_s12 + $0x90] sm:$0xff] %v3365_v32   ;;  %v1513_v38 = vpop.f32.mrf.mxu1  ;;  %v1345_v45 = vadd.f32 %v4080_v11, %v1344_v37  ;;  %v1681_v47 = vadd.f32 %v1680_v35, %v1512_v36  ;;  %v3241_v32 = vld [vmem:[%s3725_s23 + $0x3ec] sm:$0xf] }
 0x1e7   : > { %3095 = vmatmul.msk.bf16.gmra.mxu3 %vm1141_vm0, %v2933_v40 }
 0x1e8   : > { %v1514_v53 = vadd.f32 %v1513_v38, %v1345_v45  ;;  %v1850_v57 = vadd.f32 %v4140_v9, %v1681_v47  ;;  %v2936_v45 = vld [vmem:[%s3725_s23 + $0x3c0] sm:$0xf]  ;;  %v3238_v47 = vld [vmem:[%s3725_s23 + $0x3cc] sm:$0xf0] }
 0x1ea   : > { %v4170_v62 = vpop.f32.mrf.mxu3  ;;  %v1952_v8 = vmax.f32 %v1850_v57, 0.0 }
 0x1ed   : > { %v1682_v54 = vpop.f32.mrf.mxu2  ;;  %v1347_v59 = vpop.f32.mrf.mxu0 }
 0x1ee   : > { %v1683_v58 = vadd.f32 %v1682_v54, %v1514_v53  ;;  %v1516_v60 = vpop.f32.mrf.mxu1  ;;  %v1348_v2 = vadd.f32 %v4080_v11, %v1347_v59  ;;  %v2937_v54 = vor.u32 %v3238_v47, %v2936_v45 }
 0x1f0   : > { %v1852_v1 = vadd.f32 %v1851_v7, %v1683_v58  ;;  %1386 = vmatmul.bf16.gmra.mxu0 %v2905_v55  ;;  %v1517_v3 = vadd.f32 %v1516_v60, %v1348_v2  ;;  %v2949_v7 = vor.u32 %v3237_v63, %v2946_v0  ;;  %v2941_v55 = vor.u32 %v3236_v48, %v2938_v49 }
 0x1f1   : > { %1555 = vmatmul.bf16.gmra.mxu1 %v2909_v56  ;;  %v2945_v60 = vor.u32 %v3239_v51, %v2944_v50 }
 0x1f2   : > { %v1953_v10 = vmax.f32 %v1852_v1, 0.0  ;;  %1724 = vmatmul.bf16.gmra.mxu2 %v2913_v61  ;;  %v1861_v6 = vpop.f32.mrf.mxu3 }
 0x1f4   : > { %v3370_v9 = vpack.c.bf16 %v1953_v10, %v1952_v8 }
 0x1f5   : > { %v1685_v12 = vpop.f32.mrf.mxu2  ;;  %v1349_v4 = vpop.f32.mrf.mxu0 }
 0x1f6   : > { %3450 = vst [vmem:[%s3883_s12 + $0x98] sm:$0xff] %v3370_v9   ;;  %v1518_v5 = vpop.f32.mrf.mxu1  ;;  %v1350_v13 = vadd.f32 %v4080_v11, %v1349_v4  ;;  %v1686_v15 = vadd.f32 %v1685_v12, %v1517_v3 }
 0x1f7   : > { %3096 = vmatmul.msk.bf16.gmra.mxu3 %vm1141_vm0, %v2949_v7  ;;  %v3242_v7 = vld [vmem:[%s3725_s23 + $0x3ec] sm:$0xf0] }
 0x1f8   : > { %v1519_v21 = vadd.f32 %v1518_v5, %v1350_v13  ;;  %v1855_v25 = vadd.f32 %v4155_v31, %v1686_v15  ;;  %v2952_v5 = vld [vmem:[%s3725_s23 + $0x3e0] sm:$0xf]  ;;  %v3240_v13 = vld [vmem:[%s3725_s23 + $0x3e4] sm:$0xf]  ;;  %v2960_v15 = vld [vmem:[%s3725_s23 + $0x3e8] sm:$0xf] }
 0x1f9   : > { %v2953_v19 = vor.u32 %v3242_v7, %v2952_v5  ;;  %v2957_v20 = vor.u32 %v3240_v13, %v2954_v14  ;;  %s2114_s23 = ssub.s32 (%p3686_p4), 100, %s3700_s27 }
 0x1fa   : > { %v4185_v30 = vpop.f32.mrf.mxu3  ;;  %v1954_v42 = vmax.f32 %v1855_v25, 0.0  ;;  %v2961_v25 = vor.u32 %v3243_v16, %v2960_v15  ;;  %p2115_p8 = scmp.lt.s32.totalorder (%p3686_p4), %s2114_s23, 64 }
 0x1fd   : > { %v1687_v22 = vpop.f32.mrf.mxu2  ;;  %v1352_v27 = vpop.f32.mrf.mxu0 }
 0x1fe   : > { %v1688_v26 = vadd.f32 %v1687_v22, %v1519_v21  ;;  %v1521_v28 = vpop.f32.mrf.mxu1  ;;  %v1353_v44 = vadd.f32 %v4080_v11, %v1352_v27 }
 0x200   : > { %v1857_v41 = vadd.f32 %v1856_v39, %v1688_v26  ;;  %1391 = vmatmul.bf16.gmra.mxu0 %v2921_v23  ;;  %v1522_v35 = vadd.f32 %v1521_v28, %v1353_v44  ;;  %v2965_v39 = vor.u32 %v3241_v32, %v2962_v33 }
 0x201   : > { %1560 = vmatmul.bf16.gmra.mxu1 %v2925_v24 }
 0x202   : > { %v1955_v43 = vmax.f32 %v1857_v41, 0.0  ;;  %1729 = vmatmul.bf16.gmra.mxu2 %v2929_v29  ;;  %v1866_v38 = vpop.f32.mrf.mxu3 }
 0x204   : > { %v3375_v31 = vpack.c.bf16 %v1955_v43, %v1954_v42 }
 0x205   : > { %v1690_v34 = vpop.f32.mrf.mxu2  ;;  %v1354_v36 = vpop.f32.mrf.mxu0 }
 0x206   : > { %3451 = vst [vmem:[%s3883_s12 + $0xa0] sm:$0xff] %v3375_v31   ;;  %v1523_v37 = vpop.f32.mrf.mxu1  ;;  %v1355_v40 = vadd.f32 %v4080_v11, %v1354_v36  ;;  %v1691_v46 = vadd.f32 %v1690_v34, %v1522_v35 }
 0x207   : > { %3097 = vmatmul.msk.bf16.gmra.mxu3 %vm1141_vm0, %v2965_v39 }
 0x208   : > { %v1524_v52 = vadd.f32 %v1523_v37, %v1355_v40  ;;  %v1860_v56 = vadd.f32 %v4170_v62, %v1691_v46 }
 0x20a   : > { %v1869_v61 = vpop.f32.mrf.mxu3  ;;  %v1956_v8 = vmax.f32 %v1860_v56, 0.0 }
 0x20d   : > { %v1692_v53 = vpop.f32.mrf.mxu2  ;;  %v1357_v58 = vpop.f32.mrf.mxu0 }
 0x20e   : > { %v1693_v57 = vadd.f32 %v1692_v53, %v1524_v52  ;;  %v1526_v59 = vpop.f32.mrf.mxu1  ;;  %v1358_v2 = vadd.f32 %v4080_v11, %v1357_v58 }
 0x210   : > { %v1862_v1 = vadd.f32 %v1861_v6, %v1693_v57  ;;  %1396 = vmatmul.bf16.gmra.mxu0 %v2937_v54  ;;  %v1527_v63 = vadd.f32 %v1526_v59, %v1358_v2 }
 0x211   : > { %1565 = vmatmul.bf16.gmra.mxu1 %v2941_v55 }
 0x212   : > { %v1957_v10 = vmax.f32 %v1862_v1, 0.0  ;;  %1734 = vmatmul.bf16.gmra.mxu2 %v2945_v60  ;;  %v1871_v3 = vpop.f32.mrf.mxu3 }
 0x214   : > { %v3380_v62 = vpack.c.bf16 %v1957_v10, %v1956_v8 }
 0x215   : > { %v1695_v9 = vpop.f32.mrf.mxu2  ;;  %v1359_v0 = vpop.f32.mrf.mxu0 }
 0x216   : > { %3452 = vst [vmem:[%s3883_s12 + $0xa8] sm:$0xff] %v3380_v62   ;;  %v1528_v12 = vpop.f32.mrf.mxu1  ;;  %v1360_v4 = vadd.f32 %v4080_v11, %v1359_v0  ;;  %v1696_v6 = vadd.f32 %v1695_v9, %v1527_v63 }
 0x218   : > { %v1529_v17 = vadd.f32 %v1528_v12, %v1360_v4  ;;  %v1865_v21 = vadd.f32 %v4185_v30, %v1696_v6 }
 0x21a   : > { %v1874_v26 = vpop.f32.mrf.mxu3  ;;  %v1958_v28 = vmax.f32 %v1865_v21, 0.0 }
 0x21d   : > { %v1697_v18 = vpop.f32.mrf.mxu2  ;;  %v1362_v23 = vpop.f32.mrf.mxu0 }
 0x21e   : > { %v1698_v22 = vadd.f32 %v1697_v18, %v1529_v17  ;;  %v1531_v24 = vpop.f32.mrf.mxu1  ;;  %v1363_v41 = vadd.f32 %v4080_v11, %v1362_v23 }
 0x220   : > { %v1867_v27 = vadd.f32 %v1866_v38, %v1698_v22  ;;  %1401 = vmatmul.bf16.gmra.mxu0 %v2953_v19  ;;  %v1532_v44 = vadd.f32 %v1531_v24, %v1363_v41 }
 0x221   : > { %1570 = vmatmul.bf16.gmra.mxu1 %v2957_v20 }
 0x222   : > { %v1959_v29 = vmax.f32 %v1867_v27, 0.0  ;;  %1739 = vmatmul.bf16.gmra.mxu2 %v2961_v25  ;;  %v1876_v30 = vpop.f32.mrf.mxu3 }
 0x224   : > { %v3385_v42 = vpack.c.bf16 %v1959_v29, %v1958_v28 }
 0x225   : > { %v1700_v43 = vpop.f32.mrf.mxu2  ;;  %v1364_v31 = vpop.f32.mrf.mxu0 }
 0x226   : > { %3453 = vst [vmem:[%s3883_s12 + $0xb0] sm:$0xff] %v3385_v42   ;;  %v1533_v32 = vpop.f32.mrf.mxu1  ;;  %v1365_v33 = vadd.f32 %v4080_v11, %v1364_v31  ;;  %v1701_v34 = vadd.f32 %v1700_v43, %v1532_v44 }
 0x228   : > { %v1534_v35 = vadd.f32 %v1533_v32, %v1365_v33  ;;  %v1870_v37 = vadd.f32 %v1869_v61, %v1701_v34 }
 0x22a   : > { %v1879_v45 = vpop.f32.mrf.mxu3  ;;  %v1960_v47 = vmax.f32 %v1870_v37, 0.0 }
 0x22d   : > { %v1702_v36 = vpop.f32.mrf.mxu2  ;;  %v1367_v39 = vpop.f32.mrf.mxu0 }
 0x22e   : > { %v1703_v38 = vadd.f32 %v1702_v36, %v1534_v35  ;;  %v1536_v40 = vpop.f32.mrf.mxu1  ;;  %v1368_v49 = vadd.f32 %v4080_v11, %v1367_v39 }
 0x230   : > { %v1872_v46 = vadd.f32 %v1871_v3, %v1703_v38  ;;  %v1537_v52 = vadd.f32 %v1536_v40, %v1368_v49 }
 0x232   : > { %v1961_v48 = vmax.f32 %v1872_v46, 0.0  ;;  %v1881_v55 = vpop.f32.mrf.mxu3 }
 0x234   : > { %v3390_v50 = vpack.c.bf16 %v1961_v48, %v1960_v47 }
 0x235   : > { %v1705_v51 = vpop.f32.mrf.mxu2  ;;  %v1369_v53 = vpop.f32.mrf.mxu0 }
 0x236   : > { %3454 = vst [vmem:[%s3883_s12 + $0xb8] sm:$0xff] %v3390_v50   ;;  %v1538_v54 = vpop.f32.mrf.mxu1  ;;  %v1370_v56 = vadd.f32 %v4080_v11, %v1369_v53  ;;  %v1706_v57 = vadd.f32 %v1705_v51, %v1537_v52 }
 0x238   : > { %v1539_v58 = vadd.f32 %v1538_v54, %v1370_v56  ;;  %v1875_v60 = vadd.f32 %v1874_v26, %v1706_v57 }
 0x23a   : > { %v1884_v2 = vpop.f32.mrf.mxu3  ;;  %v1962_v62 = vmax.f32 %v1875_v60, 0.0 }
 0x23d   : > { %v1707_v59 = vpop.f32.mrf.mxu2  ;;  %v1372_v1 = vpop.f32.mrf.mxu0 }
 0x23e   : > { %v1708_v61 = vadd.f32 %v1707_v59, %v1539_v58  ;;  %v1541_v8 = vpop.f32.mrf.mxu1  ;;  %v1373_v63 = vadd.f32 %v4080_v11, %v1372_v1 }
 0x240   : > { %v1877_v10 = vadd.f32 %v1876_v30, %v1708_v61  ;;  %v1542_v3 = vadd.f32 %v1541_v8, %v1373_v63 }
 0x242   : > { %v1963_v9 = vmax.f32 %v1877_v10, 0.0  ;;  %v1886_v13 = vpop.f32.mrf.mxu3 }
 0x244   : > { %v3395_v0 = vpack.c.bf16 %v1963_v9, %v1962_v62 }
 0x245   : > { %v1710_v12 = vpop.f32.mrf.mxu2  ;;  %v1374_v4 = vpop.f32.mrf.mxu0 }
 0x246   : > { %3455 = vst [vmem:[%s3883_s12 + $0xc0] sm:$0xff] %v3395_v0   ;;  %v1543_v5 = vpop.f32.mrf.mxu1  ;;  %v1375_v6 = vadd.f32 %v4080_v11, %v1374_v4  ;;  %v1711_v7 = vadd.f32 %v1710_v12, %v1542_v3 }
 0x248   : > { %v1544_v14 = vadd.f32 %v1543_v5, %v1375_v6  ;;  %v1880_v16 = vadd.f32 %v1879_v45, %v1711_v7 }
 0x24a   : > { %v1964_v21 = vmax.f32 %v1880_v16, 0.0  ;;  %v1889_v26 = vpop.f32.mrf.mxu3 }
 0x24d   : > { %v1712_v15 = vpop.f32.mrf.mxu2  ;;  %v1377_v18 = vpop.f32.mrf.mxu0 }
 0x24e   : > { %v1713_v17 = vadd.f32 %v1712_v15, %v1544_v14  ;;  %v1546_v19 = vpop.f32.mrf.mxu1  ;;  %v1378_v23 = vadd.f32 %v4080_v11, %v1377_v18 }
 0x250   : > { %v1882_v20 = vadd.f32 %v1881_v55, %v1713_v17  ;;  %v1547_v27 = vadd.f32 %v1546_v19, %v1378_v23 }
 0x252   : > { %v1965_v22 = vmax.f32 %v1882_v20, 0.0  ;;  %v1891_v34 = vpop.f32.mrf.mxu3 }
 0x254   : > { %v3400_v24 = vpack.c.bf16 %v1965_v22, %v1964_v21 }
 0x255   : > { %v1715_v25 = vpop.f32.mrf.mxu2  ;;  %v1379_v28 = vpop.f32.mrf.mxu0 }
 0x256   : > { %3456 = vst [vmem:[%s3883_s12 + $0xc8] sm:$0xff] %v3400_v24   ;;  %v1548_v29 = vpop.f32.mrf.mxu1  ;;  %v1380_v41 = vadd.f32 %v4080_v11, %v1379_v28  ;;  %v1716_v42 = vadd.f32 %v1715_v25, %v1547_v27 }
 0x258   : > { %v1549_v43 = vadd.f32 %v1548_v29, %v1380_v41  ;;  %v1885_v31 = vadd.f32 %v1884_v2, %v1716_v42 }
 0x25a   : > { %v1966_v36 = vmax.f32 %v1885_v31, 0.0  ;;  %v1894_v49 = vpop.f32.mrf.mxu3 }
 0x25d   : > { %v1717_v44 = vpop.f32.mrf.mxu2  ;;  %v1382_v30 = vpop.f32.mrf.mxu0 }
 0x25e   : > { %v1718_v32 = vadd.f32 %v1717_v44, %v1549_v43  ;;  %v1551_v33 = vpop.f32.mrf.mxu1  ;;  %v1383_v38 = vadd.f32 %v4080_v11, %v1382_v30 }
 0x260   : > { %v1887_v35 = vadd.f32 %v1886_v13, %v1718_v32  ;;  %v1552_v45 = vadd.f32 %v1551_v33, %v1383_v38 }
 0x262   : > { %v1967_v37 = vmax.f32 %v1887_v35, 0.0  ;;  %v1896_v61 = vpop.f32.mrf.mxu3 }
 0x264   : > { %v3405_v39 = vpack.c.bf16 %v1967_v37, %v1966_v36 }
 0x265   : > { %v1720_v40 = vpop.f32.mrf.mxu2  ;;  %v1384_v46 = vpop.f32.mrf.mxu0 }
 0x266   : > { %3457 = vst [vmem:[%s3883_s12 + $0xd0] sm:$0xff] %v3405_v39   ;;  %v1553_v47 = vpop.f32.mrf.mxu1  ;;  %v1385_v48 = vadd.f32 %v4080_v11, %v1384_v46  ;;  %v1721_v50 = vadd.f32 %v1720_v40, %v1552_v45 }
 0x268   : > { %v1554_v51 = vadd.f32 %v1553_v47, %v1385_v48  ;;  %v1890_v53 = vadd.f32 %v1889_v26, %v1721_v50 }
 0x26a   : > { %v1968_v58 = vmax.f32 %v1890_v53, 0.0  ;;  %v1899_v3 = vpop.f32.mrf.mxu3 }
 0x26d   : > { %v1722_v52 = vpop.f32.mrf.mxu2  ;;  %v1387_v55 = vpop.f32.mrf.mxu0 }
 0x26e   : > { %v1723_v54 = vadd.f32 %v1722_v52, %v1554_v51  ;;  %v1556_v56 = vpop.f32.mrf.mxu1  ;;  %v1388_v60 = vadd.f32 %v4080_v11, %v1387_v55 }
 0x270   : > { %v1892_v57 = vadd.f32 %v1891_v34, %v1723_v54  ;;  %v1557_v10 = vadd.f32 %v1556_v56, %v1388_v60 }
 0x272   : > { %v1969_v59 = vmax.f32 %v1892_v57, 0.0  ;;  %v1901_v22 = vpop.f32.mrf.mxu3 }
 0x274   : > { %v3410_v1 = vpack.c.bf16 %v1969_v59, %v1968_v58 }
 0x275   : > { %v1725_v8 = vpop.f32.mrf.mxu2  ;;  %v1389_v2 = vpop.f32.mrf.mxu0 }
 0x276   : > { %3458 = vst [vmem:[%s3883_s12 + $0xd8] sm:$0xff] %v3410_v1   ;;  %v1558_v62 = vpop.f32.mrf.mxu1  ;;  %v1390_v9 = vadd.f32 %v4080_v11, %v1389_v2  ;;  %v1726_v63 = vadd.f32 %v1725_v8, %v1557_v10 }
 0x278   : > { %v1559_v0 = vadd.f32 %v1558_v62, %v1390_v9  ;;  %v1895_v4 = vadd.f32 %v1894_v49, %v1726_v63 }
 0x27a   : > { %v1970_v14 = vmax.f32 %v1895_v4, 0.0  ;;  %v1904_v43 = vpop.f32.mrf.mxu3 }
 0x27d   : > { %v1727_v12 = vpop.f32.mrf.mxu2  ;;  %v1392_v6 = vpop.f32.mrf.mxu0 }
 0x27e   : > { %v1728_v5 = vadd.f32 %v1727_v12, %v1559_v0  ;;  %v1561_v7 = vpop.f32.mrf.mxu1  ;;  %v1393_v16 = vadd.f32 %v4080_v11, %v1392_v6 }
 0x280   : > { %v1897_v13 = vadd.f32 %v1896_v61, %v1728_v5  ;;  %v1562_v19 = vadd.f32 %v1561_v7, %v1393_v16 }
 0x282   : > { %v1971_v15 = vmax.f32 %v1897_v13, 0.0  ;;  %v1906_v39 = vpop.f32.mrf.mxu3 }
 0x284   : > { %v3415_v17 = vpack.c.bf16 %v1971_v15, %v1970_v14 }
 0x285   : > { %v1730_v18 = vpop.f32.mrf.mxu2  ;;  %v1394_v20 = vpop.f32.mrf.mxu0 }
 0x286   : > { %3459 = vst [vmem:[%s3883_s12 + $0xe0] sm:$0xff] %v3415_v17   ;;  %v1563_v21 = vpop.f32.mrf.mxu1  ;;  %v1395_v23 = vadd.f32 %v4080_v11, %v1394_v20  ;;  %v1731_v24 = vadd.f32 %v1730_v18, %v1562_v19 }
 0x288   : > { %v1564_v25 = vadd.f32 %v1563_v21, %v1395_v23  ;;  %v1900_v27 = vadd.f32 %v1899_v3, %v1731_v24 }
 0x28a   : > { %v1972_v44 = vmax.f32 %v1900_v27, 0.0  ;;  %v1909_v55 = vpop.f32.mrf.mxu3 }
 0x28d   : > { %v1732_v26 = vpop.f32.mrf.mxu2  ;;  %v1397_v29 = vpop.f32.mrf.mxu0 }
 0x28e   : > { %v1733_v28 = vadd.f32 %v1732_v26, %v1564_v25  ;;  %v1566_v41 = vpop.f32.mrf.mxu1  ;;  %v1398_v32 = vadd.f32 %v4080_v11, %v1397_v29 }
 0x290   : > { %v1902_v42 = vadd.f32 %v1901_v22, %v1733_v28  ;;  %v1567_v34 = vadd.f32 %v1566_v41, %v1398_v32 }
 0x292   : > { %v1973_v31 = vmax.f32 %v1902_v42, 0.0  ;;  %v1911_v62 = vpop.f32.mrf.mxu3 }
 0x294   : > { %v3420_v30 = vpack.c.bf16 %v1973_v31, %v1972_v44 }
 0x295   : > { %v1735_v33 = vpop.f32.mrf.mxu2  ;;  %v1399_v35 = vpop.f32.mrf.mxu0 }
 0x296   : > { %3460 = vst [vmem:[%s3883_s12 + $0xe8] sm:$0xff] %v3420_v30   ;;  %v1568_v36 = vpop.f32.mrf.mxu1  ;;  %v1400_v37 = vadd.f32 %v4080_v11, %v1399_v35  ;;  %v1736_v38 = vadd.f32 %v1735_v33, %v1567_v34 }
 0x298   : > { %v1569_v40 = vadd.f32 %v1568_v36, %v1400_v37  ;;  %v1905_v46 = vadd.f32 %v1904_v43, %v1736_v38 }
 0x29a   : > { %v1974_v51 = vmax.f32 %v1905_v46, 0.0 }
 0x29d   : > { %v1737_v45 = vpop.f32.mrf.mxu2  ;;  %v1402_v48 = vpop.f32.mrf.mxu0 }
 0x29e   : > { %v1738_v47 = vadd.f32 %v1737_v45, %v1569_v40  ;;  %v1571_v50 = vpop.f32.mrf.mxu1  ;;  %v1403_v53 = vadd.f32 %v4080_v11, %v1402_v48 }
 0x2a0   : > { %v1907_v49 = vadd.f32 %v1906_v39, %v1738_v47  ;;  %v1572_v57 = vadd.f32 %v1571_v50, %v1403_v53 }
 0x2a2   : > { %v1975_v52 = vmax.f32 %v1907_v49, 0.0 }
 0x2a4   : > { %v3425_v54 = vpack.c.bf16 %v1975_v52, %v1974_v51 }
 0x2a5   : > { %v1740_v56 = vpop.f32.mrf.mxu2  ;;  %v1404_v58 = vpop.f32.mrf.mxu0 }
 0x2a6   : > { %3461 = vst [vmem:[%s3883_s12 + $0xf0] sm:$0xff] %v3425_v54   ;;  %v1405_v59 = vadd.f32 %v4080_v11, %v1404_v58  ;;  %v1741_v60 = vadd.f32 %v1740_v56, %v1572_v57  ;;  %v1573_v61 = vpop.f32.mrf.mxu1 }
 0x2a8   : > { %v1574_v1 = vadd.f32 %v1573_v61, %v1405_v59  ;;  %v1910_v10 = vadd.f32 %v1909_v55, %v1741_v60 }
 0x2aa   : > { %v1976_v63 = vmax.f32 %v1910_v10, 0.0 }
 0x2ad   : > { %v1742_v8 = vpop.f32.mrf.mxu2 }
 0x2ae   : > { %v1743_v2 = vadd.f32 %v1742_v8, %v1574_v1 }
 0x2b0   : > { %v1912_v9 = vadd.f32 %v1911_v62, %v1743_v2 }
 0x2b2   : > { %v1977_v0 = vmax.f32 %v1912_v9, 0.0  ;;  %2112 = sbr.rel (!%p3686_p4) target bundleno = 759 (0x2f7), region = 36 }
 0x2b4   : > { %v3430_v12 = vpack.c.bf16 %v1977_v0, %v1976_v63 }
 0x2b6   : > { %3462 = vst [vmem:[%s3883_s12 + $0xf8] sm:$0xff] %v3430_v12  }
 0x2b7   : > { %s4394_s23 = smov (!%p2115_p8, %s2114_s23), 64 }
 0x2b8   : > { %s3100_s29 = sshll.u32 %s4394_s23, 2 }
 0x2b9   : > { %p3103_p9 = scmp.eq.s32.totalorder %s3100_s29, 0 }
 0x2ba   : > { %s4251_s30 = sshrl.u32 (!%p3103_p9), %s4394_s23, 5 }
 0x2bb   : > { %2123 = sbr.rel (%p3103_p9) target bundleno = 759 (0x2f7), region = 40  ;;  %p3104_p10 = scmp.le.s32.totalorder (!%p3103_p9), %s4251_s30, 0 }
 0x2c0   : > { %2402 = sbr.rel (%p3104_p10) target bundleno = 742 (0x2e6), region = 112  ;;  %s4385_s15 = smov (!%p3104_p10), %s4245_s28 }
 0x2c1   : > { %s4386_s20 = smov (!%p3104_p10), %s3883_s12  ;;  %s4260_s27 = smov (!%p3104_p10), 0  }
 0x2c2   : > { %s4262_s4 = smov (!%p3104_p10), 0  }
 0x2c5 LB: >> { %v2140_v11 = vld [vmem:[%s3615_s20] sm:$0xf]  ;;  %v2142_v3 = vld [vmem:[%s3615_s20 + $0x4] sm:$0xf]  ;;  %v2144_v4 = vld [vmem:[%s3615_s20 + $0x8] sm:$0xf]  ;;  %s3623_s4 = sphi %s4262_s4, %s2134_s4   ;;  %s3619_s27 = sphi %s4260_s27, %s4389_s27   ;;  %s3615_s20 = sphi %s4386_s20, %s4388_s20   ;;  %s3611_s15 = sphi %s4385_s15, %s4387_s15  }
 0x2c6   : >> { %2141 = vst [vmem:[%s3611_s15] sm:$0xf] %v2140_v11  ;;  %v2146_v5 = vld [vmem:[%s3615_s20 + $0xc] sm:$0xf]  ;;  %v2148_v6 = vld [vmem:[%s3615_s20 + $0x10] sm:$0xf]  ;;  %s2204_s5 = sadd.s32 1, %s3619_s27 }
 0x2c7   : >> { %2143 = vst [vmem:[%s3611_s15 + $0x4] sm:$0xf] %v2142_v3  ;;  %v2150_v7 = vld [vmem:[%s3615_s20 + $0x14] sm:$0xf]  ;;  %v2152_v13 = vld [vmem:[%s3615_s20 + $0x18] sm:$0xf]  ;;  %p2205_p11 = scmp.ge.s32.totalorder %s2204_s5, %s4251_s30 }
 0x2c8   : >> { %2145 = vst [vmem:[%s3611_s15 + $0x8] sm:$0xf] %v2144_v4  ;;  %v2154_v14 = vld [vmem:[%s3615_s20 + $0x1c] sm:$0xf]  ;;  %v2156_v15 = vld [vmem:[%s3615_s20 + $0x20] sm:$0xf] }
 0x2c9   : >> { %2147 = vst [vmem:[%s3611_s15 + $0xc] sm:$0xf] %v2146_v5  ;;  %v2158_v16 = vld [vmem:[%s3615_s20 + $0x24] sm:$0xf]  ;;  %v2160_v17 = vld [vmem:[%s3615_s20 + $0x28] sm:$0xf] }
 0x2ca   : >> { %2149 = vst [vmem:[%s3611_s15 + $0x10] sm:$0xf] %v2148_v6  ;;  %v2162_v18 = vld [vmem:[%s3615_s20 + $0x2c] sm:$0xf]  ;;  %v2164_v19 = vld [vmem:[%s3615_s20 + $0x30] sm:$0xf] }
 0x2cb   : >> { %2151 = vst [vmem:[%s3611_s15 + $0x14] sm:$0xf] %v2150_v7  ;;  %v2166_v20 = vld [vmem:[%s3615_s20 + $0x34] sm:$0xf]  ;;  %v2168_v21 = vld [vmem:[%s3615_s20 + $0x38] sm:$0xf] }
 0x2cc   : >> { %2153 = vst [vmem:[%s3611_s15 + $0x18] sm:$0xf] %v2152_v13  ;;  %v2170_v22 = vld [vmem:[%s3615_s20 + $0x3c] sm:$0xf]  ;;  %v2172_v23 = vld [vmem:[%s3615_s20 + $0x40] sm:$0xf] }
 0x2cd   : >> { %2155 = vst [vmem:[%s3611_s15 + $0x1c] sm:$0xf] %v2154_v14  ;;  %v2174_v24 = vld [vmem:[%s3615_s20 + $0x44] sm:$0xf]  ;;  %s4396_s5 = smov (%p2205_p11, %s2204_s5), 0  ;;  %s2134_s4 = sadd.s32 1, %s3623_s4  }
 0x2ce   : >> { %2157 = vst [vmem:[%s3611_s15 + $0x20] sm:$0xf] %v2156_v15  ;;  %v2176_v25 = vld [vmem:[%s3615_s20 + $0x48] sm:$0xf]  ;;  %v2178_v26 = vld [vmem:[%s3615_s20 + $0x4c] sm:$0xf]  ;;  %p2133_p12 = scmp.ge.s32.totalorder %s2134_s4, %s4251_s30  ;;  %s4389_s27 = smov %s4396_s5 }
 0x2cf   : >> { %2159 = vst [vmem:[%s3611_s15 + $0x24] sm:$0xf] %v2158_v16  ;;  %s3105_s6 = sshll.u32 %s4396_s5, 7  ;;  %v2180_v27 = vld [vmem:[%s3615_s20 + $0x50] sm:$0xf] }
 0x2d0   : >> { %2161 = vst [vmem:[%s3611_s15 + $0x28] sm:$0xf] %v2160_v17  ;;  %s4321_s7 = scalar_lea.vmem %s3883_s12, %s3105_s6 [#allocation2]   ;;  %s2210_s8 = scalar_lea.vmem %s4245_s28, %s3105_s6   ;;  %v2182_v28 = vld [vmem:[%s3615_s20 + $0x54] sm:$0xf]  ;;  %v2184_v29 = vld [vmem:[%s3615_s20 + $0x58] sm:$0xf] }
 0x2d1   : >> { %2163 = vst [vmem:[%s3611_s15 + $0x2c] sm:$0xf] %v2162_v18  ;;  %v2186_v41 = vld [vmem:[%s3615_s20 + $0x5c] sm:$0xf]  ;;  %v2188_v42 = vld [vmem:[%s3615_s20 + $0x60] sm:$0xf] }
 0x2d2   : >> { %2165 = vst [vmem:[%s3611_s15 + $0x30] sm:$0xf] %v2164_v19  ;;  %v2190_v43 = vld [vmem:[%s3615_s20 + $0x64] sm:$0xf]  ;;  %v2192_v44 = vld [vmem:[%s3615_s20 + $0x68] sm:$0xf] }
 0x2d3   : >> { %2167 = vst [vmem:[%s3611_s15 + $0x34] sm:$0xf] %v2166_v20  ;;  %v2194_v31 = vld [vmem:[%s3615_s20 + $0x6c] sm:$0xf]  ;;  %v2196_v32 = vld [vmem:[%s3615_s20 + $0x70] sm:$0xf] }
 0x2d4   : >> { %2169 = vst [vmem:[%s3611_s15 + $0x38] sm:$0xf] %v2168_v21  ;;  %v2198_v30 = vld [vmem:[%s3615_s20 + $0x74] sm:$0xf]  ;;  %v2200_v33 = vld [vmem:[%s3615_s20 + $0x78] sm:$0xf] }
 0x2d5   : >> { %2171 = vst [vmem:[%s3611_s15 + $0x3c] sm:$0xf] %v2170_v22  ;;  %v2202_v34 = vld [vmem:[%s3615_s20 + $0x7c] sm:$0xf]  ;;  %s4388_s20 = smov %s4321_s7 }
 0x2d6   : >> { %2173 = vst [vmem:[%s3611_s15 + $0x40] sm:$0xf] %v2172_v23 }
 0x2d7   : >> { %2175 = vst [vmem:[%s3611_s15 + $0x44] sm:$0xf] %v2174_v24 }
 0x2d8   : >> { %2177 = vst [vmem:[%s3611_s15 + $0x48] sm:$0xf] %v2176_v25 }
 0x2d9   : >> { %2179 = vst [vmem:[%s3611_s15 + $0x4c] sm:$0xf] %v2178_v26 }
 0x2da   : >> { %2181 = vst [vmem:[%s3611_s15 + $0x50] sm:$0xf] %v2180_v27 }
 0x2db   : >> { %2183 = vst [vmem:[%s3611_s15 + $0x54] sm:$0xf] %v2182_v28 }
 0x2dc   : >> { %2185 = vst [vmem:[%s3611_s15 + $0x58] sm:$0xf] %v2184_v29 }
 0x2dd   : >> { %2187 = vst [vmem:[%s3611_s15 + $0x5c] sm:$0xf] %v2186_v41 }
 0x2de   : >> { %2189 = vst [vmem:[%s3611_s15 + $0x60] sm:$0xf] %v2188_v42 }
 0x2df   : >> { %2191 = vst [vmem:[%s3611_s15 + $0x64] sm:$0xf] %v2190_v43 }
 0x2e0   : >> { %2193 = vst [vmem:[%s3611_s15 + $0x68] sm:$0xf] %v2192_v44 }
 0x2e1   : >> { %2195 = vst [vmem:[%s3611_s15 + $0x6c] sm:$0xf] %v2194_v31  ;;  %2136 = sbr.rel (!%p2133_p12) target bundleno = 709 (0x2c5), region = 118 }
 0x2e2   : >> { %2197 = vst [vmem:[%s3611_s15 + $0x70] sm:$0xf] %v2196_v32 }
 0x2e3   : >> { %2199 = vst [vmem:[%s3611_s15 + $0x74] sm:$0xf] %v2198_v30 }
 0x2e4   : >> { %2201 = vst [vmem:[%s3611_s15 + $0x78] sm:$0xf] %v2200_v33 }
 0x2e5   : >> { %2203 = vst [vmem:[%s3611_s15 + $0x7c] sm:$0xf] %v2202_v34  ;;  %s4387_s15 = smov %s2210_s8 }
 0x2e6 PF: > { %s4362_s9 = sand.u32 31, %s4394_s23   ;;  %s3270_s10 = sshll.u32 %s4251_s30, 7 }
 0x2e7   : > { %s2215_s11 = scalar_lea.vmem %s3883_s12, %s3270_s10 [#allocation2]   ;;  %s2217_s14 = scalar_lea.vmem %s4245_s28, %s3270_s10  }
 0x2e8   : > { %p3110_p13 = scmp.le.s32.totalorder %s4362_s9, 0 }
 0x2e9   : > { %s3625_s17 = smov (!%p3110_p13), %s2217_s14   ;;  %s3629_s18 = smov (!%p3110_p13), %s2215_s11  }
 0x2ea   : > { %2416 = sbr.rel (%p3110_p13) target bundleno = 759 (0x2f7), region = 123  ;;  %s3633_s21 = smov (!%p3110_p13), 0  }
 0x2eb   : > { %s3637_s22 = smov (!%p3110_p13), 0  }
 0x2ef LB: >> { %v2227_v35 = vld [vmem:[%s3631_s18] sm:$0xf]  ;;  %s2229_s23 = sadd.s32 1, %s3635_s21  ;;  %s2221_s22 = sadd.s32 1, %s3639_s22   ;;  %s3639_s22 = sphi %s3637_s22, %s2221_s22   ;;  %s3635_s21 = sphi %s3633_s21, %s3634_s21   ;;  %s3631_s18 = sphi %s3629_s18, %s2234_s18   ;;  %s3627_s17 = sphi %s3625_s17, %s2235_s17  }
 0x2f0   : >> { %2228 = vst [vmem:[%s3627_s17] sm:$0xf] %v2227_v35  ;;  %p2230_p0 = scmp.ge.s32.totalorder %s2229_s23, %s4362_s9  ;;  %p2220_p1 = scmp.ge.s32.totalorder %s2221_s22, %s4362_s9 }
 0x2f2   : >> { %s4398_s23 = smov (%p2230_p0, %s2229_s23), 0  ;;  %2223 = sbr.rel (!%p2220_p1) target bundleno = 751 (0x2ef), region = 129 }
 0x2f3   : >> { %s3111_s12 = sshll.u32 %s4398_s23, 2  ;;  %s3634_s21 = smov %s4398_s23  }
 0x2f4   : >> { %s2234_s18 = scalar_lea.vmem %s2215_s11, %s3111_s12 [#allocation2]   ;;  %s2235_s17 = scalar_lea.vmem %s2217_s14, %s3111_s12  }
 0x2f7 PF: > { %p10_p2 = scmp.ge.s32.totalorder %s3676_s16, 4   ;;  %s4390_s12 = smov %s3603_s13 }
 0x2f8   : > { %s4391_s13 = smov %s3684_s19  ;;  %s4392_s14 = smov %s3676_s16 }
 0x2f9   :  { %12 = sbr.rel (!%p10_p2) target bundleno = 2 (0x2), region = 140 }

// kernel: cnn_forward.6
= control target key start
LH: loop header
LB: loop body
LE: loop exit
PB: predicated region body
PF: predicated region fallthrough
CT: control target
= control target key end

     0   :  { %vm619_vm0 = vcmask 261120   ;;  %s1766_s1 = inlined_call_operand.vmem [shape: bf16[800,128], index: 1, kind: input, shape index: {}]   ;;  %s1767_s2 = inlined_call_operand.vmem [shape: f32[1,128], index: 2, kind: input, shape index: {}]   ;;  %s1768_s0 = inlined_call_operand.vmem [shape: bf16[72,800], index: 0, kind: input, shape index: {}]   ;;  %s1769_s3 = inlined_call_operand.vmem [shape: bf16[72,128], index: 3, kind: output, shape index: {}]  }
   0x1   :  { %v1249_v0 = vld [vmem:[%s1766_s1 + $0x38] sm:$0xff]  ;;  %v1248_v3 = vld [vmem:[%s1766_s1 + $0x30] sm:$0xff]  ;;  %v1247_v6 = vld [vmem:[%s1766_s1 + $0x28] sm:$0xff] }
   0x2   :  { %v1257_v1 = vld [vmem:[%s1766_s1 + $0x78] sm:$0xff]  ;;  %635 = vmatpush.bf16.msra.mxu0 %v1249_v0  ;;  %1315 = vmatpush.bf16.msra.mxu3 %v1249_v0  ;;  %v1256_v4 = vld [vmem:[%s1766_s1 + $0x70] sm:$0xff]  ;;  %v1255_v7 = vld [vmem:[%s1766_s1 + $0x68] sm:$0xff] }
   0x3   :  { %v1265_v2 = vld [vmem:[%s1766_s1 + $0xb8] sm:$0xff]  ;;  %668 = vmatpush.bf16.msra.mxu1 %v1257_v1  ;;  %v1264_v5 = vld [vmem:[%s1766_s1 + $0xb0] sm:$0xff]  ;;  %v1263_v8 = vld [vmem:[%s1766_s1 + $0xa8] sm:$0xff] }
   0x4   :  { %701 = vmatpush.bf16.msra.mxu2 %v1265_v2  ;;  %v1246_v9 = vld [vmem:[%s1766_s1 + $0x20] sm:$0xff]  ;;  %v1245_v12 = vld [vmem:[%s1766_s1 + $0x18] sm:$0xff]  ;;  %v1244_v15 = vld [vmem:[%s1766_s1 + $0x10] sm:$0xff] }
   0x5   :  { %v1254_v10 = vld [vmem:[%s1766_s1 + $0x60] sm:$0xff]  ;;  %v1253_v13 = vld [vmem:[%s1766_s1 + $0x58] sm:$0xff]  ;;  %v1252_v16 = vld [vmem:[%s1766_s1 + $0x50] sm:$0xff] }
   0x6   :  { %636 = vmatpush.bf16.msra.mxu0 %v1248_v3  ;;  %1316 = vmatpush.bf16.msra.mxu3 %v1248_v3  ;;  %v1262_v11 = vld [vmem:[%s1766_s1 + $0xa0] sm:$0xff]  ;;  %v1261_v14 = vld [vmem:[%s1766_s1 + $0x98] sm:$0xff]  ;;  %v1260_v17 = vld [vmem:[%s1766_s1 + $0x90] sm:$0xff] }
   0x7   :  { %669 = vmatpush.bf16.msra.mxu1 %v1256_v4  ;;  %v1243_v18 = vld [vmem:[%s1766_s1 + $0x8] sm:$0xff]  ;;  %v1242_v21 = vld [vmem:[%s1766_s1] sm:$0xff]  ;;  %v1217_v25 = vld [vmem:[%s1768_s0 + $0x18] sm:$0xf0] }
   0x8   :  { %702 = vmatpush.bf16.msra.mxu2 %v1264_v5  ;;  %v1251_v19 = vld [vmem:[%s1766_s1 + $0x48] sm:$0xff]  ;;  %v1250_v22 = vld [vmem:[%s1766_s1 + $0x40] sm:$0xff]  ;;  %v955_v26 = vld [vmem:[%s1768_s0 + $0x70] sm:$0xf] }
   0x9   :  { %v1259_v20 = vld [vmem:[%s1766_s1 + $0x88] sm:$0xff]  ;;  %v1258_v23 = vld [vmem:[%s1766_s1 + $0x80] sm:$0xff]  ;;  %v1281_v32 = vld [vmem:[%s1766_s1 + $0x138] sm:$0xff] }
   0xa   :  { %637 = vmatpush.bf16.msra.mxu0 %v1247_v6  ;;  %1317 = vmatpush.bf16.msra.mxu3 %v1247_v6  ;;  %v899_v24 = vld [vmem:[%s1768_s0] sm:$0xf]  ;;  %v1231_v27 = vld [vmem:[%s1768_s0 + $0x88] sm:$0xf0]  ;;  %v1214_v28 = vld [vmem:[%s1768_s0 + $0x4] sm:$0xf] }
   0xb   :  { %670 = vmatpush.bf16.msra.mxu1 %v1255_v7  ;;  %v901_v29 = vld [vmem:[%s1768_s0 + $0x1c] sm:$0xf0]  ;;  %v907_v30 = vld [vmem:[%s1768_s0 + $0x8] sm:$0xf]  ;;  %v1218_v31 = vld [vmem:[%s1768_s0 + $0x20] sm:$0xf0]  ;;  %v900_v34 = vor.u32 %v1217_v25, %v899_v24  ;;  %v956_v35 = vor.u32 %v1231_v27, %v955_v26 }
   0xc   :  { %703 = vmatpush.bf16.msra.mxu2 %v1263_v8  ;;  %v1456_v33 = vld [vmem:[%s1766_s1 + $0x188] sm:$0xff]  ;;  %v904_v36 = vor.u32 %v1214_v28, %v901_v29  ;;  %v908_v37 = vor.u32 %v1218_v31, %v907_v30  ;;  %v1461_v38 = vld [vmem:[%s1766_s1 + $0x178] sm:$0xff]  ;;  %v1280_v40 = vld [vmem:[%s1766_s1 + $0x130] sm:$0xff] }
   0xd   :  { %v1273_v39 = vld [vmem:[%s1766_s1 + $0xf8] sm:$0xff]  ;;  %v1474_v41 = vld [vmem:[%s1766_s1 + $0x170] sm:$0xff]  ;;  %v1482_v43 = vld [vmem:[%s1766_s1 + $0x180] sm:$0xff] }
   0xe   :  { %638 = vmatpush.bf16.msra.mxu0 %v1246_v9  ;;  %1318 = vmatpush.bf16.msra.mxu3 %v1246_v9  ;;  %v1272_v42 = vld [vmem:[%s1766_s1 + $0xf0] sm:$0xff]  ;;  %v1279_v44 = vld [vmem:[%s1766_s1 + $0x128] sm:$0xff]  ;;  %v1278_v47 = vld [vmem:[%s1766_s1 + $0x120] sm:$0xff] }
   0xf   :  { %671 = vmatpush.bf16.msra.mxu1 %v1254_v10  ;;  %v1271_v45 = vld [vmem:[%s1766_s1 + $0xe8] sm:$0xff]  ;;  %v927_v48 = vld [vmem:[%s1768_s0 + $0x38] sm:$0xf]  ;;  %v1224_v49 = vld [vmem:[%s1768_s0 + $0x50] sm:$0xf0] }
  0x10   :  { %704 = vmatpush.bf16.msra.mxu2 %v1262_v11  ;;  %v1495_v46 = vld [vmem:[%s1766_s1 + $0x168] sm:$0xff]  ;;  %v1238_v51 = vld [vmem:[%s1768_s0 + $0xc0] sm:$0xf0]  ;;  %v1221_v52 = vld [vmem:[%s1768_s0 + $0x3c] sm:$0xf]  ;;  %v928_v59 = vor.u32 %v1224_v49, %v927_v48 }
  0x11   :  { %v983_v50 = vld [vmem:[%s1768_s0 + $0xa8] sm:$0xf]  ;;  %v929_v53 = vld [vmem:[%s1768_s0 + $0x54] sm:$0xf0]  ;;  %v935_v54 = vld [vmem:[%s1768_s0 + $0x40] sm:$0xf] }
  0x12   :  { %639 = vmatpush.bf16.msra.mxu0 %v1245_v12  ;;  %1319 = vmatpush.bf16.msra.mxu3 %v1245_v12  ;;  %v1225_v55 = vld [vmem:[%s1768_s0 + $0x58] sm:$0xf0]  ;;  %v1270_v56 = vld [vmem:[%s1766_s1 + $0xe0] sm:$0xff]  ;;  %v984_v60 = vor.u32 %v1238_v51, %v983_v50  ;;  %v932_v61 = vor.u32 %v1221_v52, %v929_v53  ;;  %v1276_v1 = vld [vmem:[%s1766_s1 + $0x110] sm:$0xff] }
  0x13   :  { %672 = vmatpush.bf16.msra.mxu1 %v1253_v13  ;;  %v1286_v57 = vld [vmem:[%s1766_s1 + $0x160] sm:$0xff]  ;;  %v1277_v58 = vld [vmem:[%s1766_s1 + $0x118] sm:$0xff]  ;;  %v936_v62 = vor.u32 %v1225_v55, %v935_v54  ;;  %v1268_v2 = vld [vmem:[%s1766_s1 + $0xd0] sm:$0xff] }
  0x14   :  { %705 = vmatpush.bf16.msra.mxu2 %v1261_v14  ;;  %v1269_v63 = vld [vmem:[%s1766_s1 + $0xd8] sm:$0xff]  ;;  %v1284_v3 = vld [vmem:[%s1766_s1 + $0x150] sm:$0xff]  ;;  %v1275_v4 = vld [vmem:[%s1766_s1 + $0x108] sm:$0xff] }
  0x15   :  { %v1285_v0 = vld [vmem:[%s1766_s1 + $0x158] sm:$0xff]  ;;  %v1555_v5 = vld [vmem:[%s1768_s0 + $0xe0] sm:$0xff]  ;;  %v1267_v6 = vld [vmem:[%s1766_s1 + $0xc8] sm:$0xff] }
  0x16   :  { %640 = vmatpush.bf16.msra.mxu0 %v1244_v15  ;;  %1320 = vmatpush.bf16.msra.mxu3 %v1244_v15  ;;  %v1274_v7 = vld [vmem:[%s1766_s1 + $0x100] sm:$0xff]  ;;  %v247_v8 = vunpack.c.l.b16 %v1555_v5  ;;  %v1228_v9 = vld [vmem:[%s1768_s0 + $0x74] sm:$0xf]  ;;  %v957_v10 = vld [vmem:[%s1768_s0 + $0x8c] sm:$0xf0] }
  0x17   :  { %673 = vmatpush.bf16.msra.mxu1 %v1252_v16  ;;  %v915_v11 = vld [vmem:[%s1768_s0 + $0x10] sm:$0xf]  ;;  %v1219_v12 = vld [vmem:[%s1768_s0 + $0x28] sm:$0xf0]  ;;  %v963_v13 = vld [vmem:[%s1768_s0 + $0x78] sm:$0xf] }
  0x18   :  { %706 = vmatpush.bf16.msra.mxu2 %v1260_v17  ;;  %v1232_v14 = vld [vmem:[%s1768_s0 + $0x90] sm:$0xf0]  ;;  %v1266_v15 = vld [vmem:[%s1766_s1 + $0xc0] sm:$0xff]  ;;  %v282_v16 = vpack.c.b16 %v247_v8, %v247_v8  ;;  %v916_v17 = vor.u32 %v1219_v12, %v915_v11  ;;  %v909_v24 = vld [vmem:[%s1768_s0 + $0x24] sm:$0xf0] }
  0x19   :  { %v943_v25 = vld [vmem:[%s1768_s0 + $0x48] sm:$0xf]  ;;  %v1226_v26 = vld [vmem:[%s1768_s0 + $0x60] sm:$0xf0]  ;;  %v991_v28 = vld [vmem:[%s1768_s0 + $0xb0] sm:$0xf] }
  0x1a   :  { %641 = vmatpush.bf16.msra.mxu0 %v1243_v18  ;;  %1321 = vmatpush.bf16.msra.mxu3 %v1243_v18  ;;  %v960_v18 = vor.u32 %v1228_v9, %v957_v10  ;;  %v985_v27 = vld [vmem:[%s1768_s0 + $0xc4] sm:$0xf0]  ;;  %v1239_v29 = vld [vmem:[%s1768_s0 + $0xc8] sm:$0xf0]  ;;  %v944_v31 = vor.u32 %v1226_v26, %v943_v25  ;;  %v965_v48 = vld [vmem:[%s1768_s0 + $0x94] sm:$0xf0] }
  0x1b   :  { %674 = vmatpush.bf16.msra.mxu1 %v1251_v19  ;;  %v964_v19 = vor.u32 %v1232_v14, %v963_v13  ;;  %v1223_v49 = vld [vmem:[%s1768_s0 + $0x4c] sm:$0xf]  ;;  %v945_v50 = vld [vmem:[%s1768_s0 + $0x64] sm:$0xf0]  ;;  %v951_v51 = vld [vmem:[%s1768_s0 + $0x50] sm:$0xf] }
  0x1c   :  { %707 = vmatpush.bf16.msra.mxu2 %v1259_v20  ;;  %v1283_v20 = vld [vmem:[%s1766_s1 + $0x148] sm:$0xff]  ;;  %v948_v55 = vor.u32 %v1223_v49, %v945_v50  ;;  %v1237_v8 = vld [vmem:[%s1768_s0 + $0xbc] sm:$0xf]  ;;  %v1001_v9 = vld [vmem:[%s1768_s0 + $0xd4] sm:$0xf0] }
  0x1d   :  { %v1227_v52 = vld [vmem:[%s1768_s0 + $0x68] sm:$0xf0]  ;;  %v1007_v10 = vld [vmem:[%s1768_s0 + $0xc0] sm:$0xf]  ;;  %v1241_v11 = vld [vmem:[%s1768_s0 + $0xd8] sm:$0xf0]  ;;  %v1004_v14 = vor.u32 %v1237_v8, %v1001_v9 }
  0x1e   :  { %642 = vmatpush.bf16.msra.mxu0 %v1242_v21  ;;  %1322 = vmatpush.bf16.msra.mxu3 %v1242_v21  ;;  %v1282_v21 = vld [vmem:[%s1766_s1 + $0x140] sm:$0xff] }
  0x1f   :  { %675 = vmatpush.bf16.msra.mxu1 %v1250_v22  ;;  %v1235_v22 = vld [vmem:[%s1768_s0 + $0xac] sm:$0xf] }
  0x20   :  { %708 = vmatpush.bf16.msra.mxu2 %v1258_v23  ;;  %v1215_v23 = vld [vmem:[%s1768_s0 + $0xc] sm:$0xf] }
  0x21   :  { %643 = vmatmul.bf16.vlgmr.msra.gmra.mxu0 %v900_v34  ;;  %653 = vmatmul.bf16.vlgmr.msra.gmra.mxu3 %v956_v35  ;;  %v912_v30 = vor.u32 %v1215_v23, %v909_v24  ;;  %v992_v34 = vor.u32 %v1239_v29, %v991_v28  ;;  %v48_v35 = vld [vmem:[%s1768_s0 + $0xe8] sm:$0xff] }
  0x22   :  { %767 = vmatpush.bf16.msrb.mxu0 %v1281_v32  ;;  %676 = vmatmul.bf16.vlgmr.msra.gmra.mxu1 %v904_v36  ;;  %v988_v32 = vor.u32 %v1235_v22, %v985_v27  ;;  %v1222_v36 = vld [vmem:[%s1768_s0 + $0x44] sm:$0xf] }
  0x23   :  { %709 = vmatmul.bf16.vlgmr.msra.gmra.mxu2 %v908_v37  ;;  %1323 = vmatpush.bf16.msrb.mxu1 %v1461_v38  ;;  %v248_v37 = vunpack.c.h.b16 %v1555_v5  ;;  %v250_v5 = vunpack.c.h.b16 %v48_v35 }
  0x24   :  { %1331 = vmatpush.bf16.msrb.mxu2 %v1456_v33  ;;  %734 = vmatpush.bf16.msrb.mxu3 %v1273_v39  ;;  %v937_v39 = vld [vmem:[%s1768_s0 + $0x5c] sm:$0xf0] }
  0x25   :  { %v285_v12 = vpack.c.b16 %v250_v5, %v250_v5 }
  0x26   :  { %768 = vmatpush.bf16.msrb.mxu0 %v1280_v40  ;;  %v971_v40 = vld [vmem:[%s1768_s0 + $0x80] sm:$0xf] }
  0x27   :  { %1324 = vmatpush.bf16.msrb.mxu1 %v1474_v41 }
  0x28   :  { %1332 = vmatpush.bf16.msrb.mxu2 %v1482_v43  ;;  %735 = vmatpush.bf16.msrb.mxu3 %v1272_v42  ;;  %v940_v42 = vor.u32 %v1222_v36, %v937_v39 }
  0x2a   :  { %769 = vmatpush.bf16.msrb.mxu0 %v1279_v44 }
  0x2b   :  { %1325 = vmatpush.bf16.msrb.mxu1 %v1495_v46 }
  0x2c   :  { %736 = vmatpush.bf16.msrb.mxu3 %v1271_v45  ;;  %v283_v45 = vpack.c.b16 %v248_v37, %v248_v37 }
  0x2e   :  { %770 = vmatpush.bf16.msrb.mxu0 %v1278_v47  ;;  %v1229_v47 = vld [vmem:[%s1768_s0 + $0x7c] sm:$0xf] }
  0x2f   :  { %1326 = vmatpush.bf16.msrb.mxu1 %v1286_v57  ;;  %v968_v53 = vor.u32 %v1229_v47, %v965_v48 }
  0x30   :  { %737 = vmatpush.bf16.msrb.mxu3 %v1270_v56  ;;  %v952_v56 = vor.u32 %v1227_v52, %v951_v51 }
  0x31   :  { %648 = vmatmul.bf16.gmra.mxu0 %v928_v59  ;;  %658 = vmatmul.bf16.gmra.mxu3 %v984_v60  ;;  %v1236_v59 = vld [vmem:[%s1768_s0 + $0xb4] sm:$0xf]  ;;  %v993_v60 = vld [vmem:[%s1768_s0 + $0xcc] sm:$0xf0] }
  0x32   :  { %771 = vmatpush.bf16.msrb.mxu0 %v1277_v58  ;;  %681 = vmatmul.bf16.gmra.mxu1 %v932_v61  ;;  %v1230_v61 = vld [vmem:[%s1768_s0 + $0x84] sm:$0xf] }
  0x33   :  { %714 = vmatmul.bf16.gmra.mxu2 %v936_v62  ;;  %1327 = vmatpush.bf16.msrb.mxu1 %v1285_v0  ;;  %v973_v62 = vld [vmem:[%s1768_s0 + $0x9c] sm:$0xf0] }
  0x34   :  { %738 = vmatpush.bf16.msrb.mxu3 %v1269_v63  ;;  %v979_v63 = vld [vmem:[%s1768_s0 + $0x88] sm:$0xf] }
  0x36   :  { %772 = vmatpush.bf16.msrb.mxu0 %v1276_v1  ;;  %v996_v1 = vor.u32 %v1236_v59, %v993_v60 }
  0x37   :  { %1328 = vmatpush.bf16.msrb.mxu1 %v1284_v3 }
  0x38   :  { %739 = vmatpush.bf16.msrb.mxu3 %v1268_v2 }
  0x3a   :  { %773 = vmatpush.bf16.msrb.mxu0 %v1275_v4 }
  0x3b   :  { %1329 = vmatpush.bf16.msrb.mxu1 %v1283_v20 }
  0x3c   :  { %740 = vmatpush.bf16.msrb.mxu3 %v1267_v6  ;;  %v1216_v6 = vld [vmem:[%s1768_s0 + $0x14] sm:$0xf] }
  0x3e   :  { %774 = vmatpush.bf16.msrb.mxu0 %v1274_v7  ;;  %v917_v7 = vld [vmem:[%s1768_s0 + $0x2c] sm:$0xf0] }
  0x3f   :  { %1330 = vmatpush.bf16.msrb.mxu1 %v1282_v21  ;;  %v920_v13 = vor.u32 %v1216_v6, %v917_v7 }
  0x40   :  { %741 = vmatpush.bf16.msrb.mxu3 %v1266_v15  ;;  %v1008_v15 = vor.u32 %v1241_v11, %v1007_v10 }
  0x41   :  { %663 = vmatmul.bf16.gmra.mxu3 %v282_v16  ;;  %775 = vmatmul.bf16.vlgmr.msrb.gmra.mxu0 %v916_v17  ;;  %v50_v16 = vld [vmem:[%s1768_s0 + $0xf8] sm:$0xf] }
  0x42   :  { %800 = vmatpush.bf16.msra.mxu0 %v1461_v38  ;;  %686 = vmatmul.bf16.gmra.mxu1 %v960_v18  ;;  %v249_v38 = vunpack.c.l.b16 %v48_v35  ;;  %v923_v18 = vld [vmem:[%s1768_s0 + $0x18] sm:$0xf] }
  0x43   :  { %719 = vmatmul.bf16.gmra.mxu2 %v964_v19  ;;  %v1220_v19 = vld [vmem:[%s1768_s0 + $0x30] sm:$0xf0] }
  0x44   :  { %v924_v22 = vor.u32 %v1220_v19, %v923_v18 }
  0x46   :  { %801 = vmatpush.bf16.msra.mxu0 %v1474_v41  ;;  %v1233_v41 = vld [vmem:[%s1768_s0 + $0x98] sm:$0xf0] }
  0x47   :  { %v972_v44 = vor.u32 %v1233_v41, %v971_v40 }
  0x4a   :  { %802 = vmatpush.bf16.msra.mxu0 %v1495_v46  ;;  %v284_v46 = vpack.c.b16 %v249_v38, %v249_v38 }
  0x4e   :  { %803 = vmatpush.bf16.msra.mxu0 %v1286_v57  ;;  %v49_v57 = vld [vmem:[%s1768_s0 + $0xf0] sm:$0xff] }
  0x4f   :  { %v251_v58 = vunpack.c.l.b16 %v49_v57  ;;  %v252_v17 = vunpack.c.h.b16 %v49_v57 }
  0x51   :  { %742 = vmatmul.bf16.vlgmr.msrb.gmra.mxu3 %v912_v30  ;;  %780 = vmatmul.bf16.gmra.mxu0 %v944_v31  ;;  %v286_v2 = vpack.c.b16 %v251_v58, %v251_v58  ;;  %v287_v24 = vpack.c.b16 %v252_v17, %v252_v17 }
  0x52   :  { %804 = vmatpush.bf16.msra.mxu0 %v1285_v0  ;;  %691 = vmatmul.bf16.gmra.mxu1 %v988_v32  ;;  %v1234_v0 = vld [vmem:[%s1768_s0 + $0xa0] sm:$0xf0] }
  0x53   :  { %724 = vmatmul.bf16.gmra.mxu2 %v992_v34  ;;  %v980_v4 = vor.u32 %v1234_v0, %v979_v63 }
  0x56   :  { %805 = vmatpush.bf16.msra.mxu0 %v1284_v3  ;;  %v976_v3 = vor.u32 %v1230_v61, %v973_v62 }
  0x5a   :  { %806 = vmatpush.bf16.msra.mxu0 %v1283_v20  ;;  %v253_v20 = vunpack.c.l.b16 %v50_v16 }
  0x5c   :  { %v288_v25 = vpack.c.b16 %v253_v20, %v253_v20 }
  0x5e   :  { %807 = vmatpush.bf16.msra.mxu0 %v1282_v21  ;;  %v1714_v21 = vld [vmem:[%s1767_s2] ss:$0 sm:$0xff] }
  0x61   :  { %747 = vmatmul.bf16.gmra.mxu3 %v940_v42  ;;  %785 = vmatmul.bf16.gmra.mxu0 %v972_v44 }
  0x62   :  { %839 = vmatpush.bf16.msrb.mxu0 %v1456_v33  ;;  %696 = vmatmul.bf16.gmra.mxu1 %v283_v45  ;;  %v999_v33 = vld [vmem:[%s1768_s0 + $0xb8] sm:$0xf] }
  0x63   :  { %729 = vmatmul.bf16.gmra.mxu2 %v284_v46 }
  0x66   :  { %840 = vmatpush.bf16.msrb.mxu0 %v1482_v43  ;;  %v1240_v43 = vld [vmem:[%s1768_s0 + $0xd0] sm:$0xf0] }
  0x67   :  { %v1000_v54 = vor.u32 %v1240_v43, %v999_v33 }
  0x71   :  { %752 = vmatmul.bf16.gmra.mxu3 %v968_v53  ;;  %790 = vmatmul.bf16.gmra.mxu0 %v1000_v54 }
  0x72   :  { %813 = vmatmul.bf16.vlgmr.msrb.gmra.mxu1 %v948_v55 }
  0x73   :  { %1210 = vmatmul.msk.bf16.vlgmr.msrb.gmra.mxu2 %vm619_vm0, %v952_v56 }
  0x81   :  { %757 = vmatmul.bf16.gmra.mxu3 %v996_v1  ;;  %795 = vmatmul.bf16.gmra.mxu0 %v286_v2 }
  0x82   :  { %818 = vmatmul.bf16.gmra.mxu1 %v976_v3 }
  0x83   :  { %1211 = vmatmul.msk.bf16.gmra.mxu2 %vm619_vm0, %v980_v4 }
  0x91   :  { %762 = vmatmul.bf16.gmra.mxu3 %v285_v12  ;;  %808 = vmatmul.bf16.vlgmr.msra.gmra.mxu0 %v920_v13 }
  0x92   :  { %823 = vmatmul.bf16.gmra.mxu1 %v1004_v14 }
  0x93   :  { %1212 = vmatmul.msk.bf16.gmra.mxu2 %vm619_vm0, %v1008_v15 }
  0x9e   :  { %v644_v23 = vpop.f32.mrf.mxu0 }
  0x9f   :  { %v645_v26 = vadd.f32 %v1714_v21, %v644_v23  ;;  %v677_v27 = vpop.f32.mrf.mxu1 }
  0xa1   :  { %v678_v28 = vadd.f32 %v677_v27, %v645_v26  ;;  %1209 = vmatmul.msk.bf16.vlgmr.msrb.gmra.mxu0 %vm619_vm0, %v924_v22 }
  0xa2   :  { %828 = vmatmul.bf16.gmra.mxu1 %v287_v24 }
  0xa3   :  { %1213 = vmatmul.msk.bf16.gmra.mxu2 %vm619_vm0, %v288_v25 }
  0xa4   :  { %v654_v29 = vpop.f32.mrf.mxu3 }
  0xa5   :  { %v655_v50 = vadd.f32 %v1714_v21, %v654_v29 }
  0xa6   :  { %v710_v30 = vpop.f32.mrf.mxu2  ;;  %v646_v32 = vpop.f32.mrf.mxu0 }
  0xa7   :  { %v711_v31 = vadd.f32 %v710_v30, %v678_v28  ;;  %v647_v34 = vadd.f32 %v1714_v21, %v646_v32  ;;  %v679_v35 = vpop.f32.mrf.mxu1 }
  0xa9   :  { %v680_v36 = vadd.f32 %v679_v35, %v647_v34 }
  0xac   :  { %v1720_v37 = vpop.f32.mrf.mxu3 }
  0xae   :  { %v712_v38 = vpop.f32.mrf.mxu2  ;;  %v649_v40 = vpop.f32.mrf.mxu0 }
  0xaf   :  { %v713_v39 = vadd.f32 %v712_v38, %v680_v36  ;;  %v650_v41 = vadd.f32 %v1714_v21, %v649_v40  ;;  %v682_v42 = vpop.f32.mrf.mxu1 }
  0xb1   :  { %v683_v44 = vadd.f32 %v682_v42, %v650_v41 }
  0xb4   :  { %v659_v45 = vpop.f32.mrf.mxu3 }
  0xb5   :  { %v660_v61 = vadd.f32 %v1714_v21, %v659_v45  ;;  %v657_v45 = vadd.f32 %v1714_v21, %v1720_v37 }
  0xb6   :  { %v715_v46 = vpop.f32.mrf.mxu2  ;;  %v651_v48 = vpop.f32.mrf.mxu0 }
  0xb7   :  { %v716_v47 = vadd.f32 %v715_v46, %v683_v44  ;;  %v684_v33 = vpop.f32.mrf.mxu1  ;;  %v652_v20 = vadd.f32 %v1714_v21, %v651_v48 }
  0xb9   :  { %v685_v24 = vadd.f32 %v684_v33, %v652_v20 }
  0xbc   :  { %v1723_v43 = vpop.f32.mrf.mxu3 }
  0xbe   :  { %v717_v49 = vpop.f32.mrf.mxu2  ;;  %v776_v51 = vpop.f32.mrf.mxu0 }
  0xbf   :  { %v687_v52 = vpop.f32.mrf.mxu1  ;;  %v718_v25 = vadd.f32 %v717_v49, %v685_v24 }
  0xc0   :  { %v688_v53 = vadd.f32 %v687_v52, %v655_v50 }
  0xc4   :  { %v1726_v54 = vpop.f32.mrf.mxu3 }
  0xc6   :  { %v720_v55 = vpop.f32.mrf.mxu2  ;;  %v778_v57 = vpop.f32.mrf.mxu0 }
  0xc7   :  { %v721_v56 = vadd.f32 %v720_v55, %v688_v53  ;;  %v689_v58 = vpop.f32.mrf.mxu1 }
  0xc8   :  { %v690_v48 = vadd.f32 %v689_v58, %v657_v45 }
  0xcc   :  { %v666_v59 = vpop.f32.mrf.mxu3 }
  0xce   :  { %v722_v60 = vpop.f32.mrf.mxu2  ;;  %v781_v62 = vpop.f32.mrf.mxu0 }
  0xcf   :  { %v692_v63 = vpop.f32.mrf.mxu1  ;;  %v723_v49 = vadd.f32 %v722_v60, %v690_v48 }
  0xd0   :  { %v693_v0 = vadd.f32 %v692_v63, %v660_v61 }
  0xd4   :  { %v743_v1 = vpop.f32.mrf.mxu3 }
  0xd5   :  { %v744_v3 = vadd.f32 %v743_v1, %v711_v31 }
  0xd6   :  { %v725_v2 = vpop.f32.mrf.mxu2  ;;  %v783_v5 = vpop.f32.mrf.mxu0 }
  0xd7   :  { %v1729_v4 = vadd.f32 %v725_v2, %v693_v0  ;;  %v694_v6 = vpop.f32.mrf.mxu1  ;;  %v1731_v7 = vadd.f32 %v776_v51, %v744_v3 }
  0xdc   :  { %v745_v8 = vpop.f32.mrf.mxu3 }
  0xdd   :  { %v746_v10 = vadd.f32 %v745_v8, %v713_v39 }
  0xde   :  { %v727_v9 = vpop.f32.mrf.mxu2  ;;  %v786_v11 = vpop.f32.mrf.mxu0 }
  0xdf   :  { %v1733_v12 = vpop.f32.mrf.mxu1  ;;  %v1735_v13 = vadd.f32 %v778_v57, %v746_v10 }
  0xe4   :  { %v748_v14 = vpop.f32.mrf.mxu3 }
  0xe5   :  { %v749_v26 = vadd.f32 %v748_v14, %v716_v47 }
  0xe6   :  { %v1737_v15 = vpop.f32.mrf.mxu2  ;;  %v788_v16 = vpop.f32.mrf.mxu0 }
  0xe7   :  { %v699_v17 = vpop.f32.mrf.mxu1  ;;  %v782_v32 = vadd.f32 %v781_v62, %v749_v26 }
  0xec   :  { %v750_v18 = vpop.f32.mrf.mxu3 }
  0xed   :  { %v751_v29 = vadd.f32 %v750_v18, %v718_v25 }
  0xee   :  { %v732_v19 = vpop.f32.mrf.mxu2  ;;  %v791_v22 = vpop.f32.mrf.mxu0 }
  0xef   :  { %v814_v23 = vpop.f32.mrf.mxu1  ;;  %v784_v35 = vadd.f32 %v783_v5, %v751_v29 }
  0xf0   :  { %v815_v34 = vadd.f32 %v814_v23, %v782_v32  ;;  %v665_v23 = vadd.f32 %v1714_v21, %v1726_v54 }
  0xf2   :  { %v698_v24 = vadd.f32 %v1733_v12, %v665_v23 }
  0xf4   :  { %v753_v27 = vpop.f32.mrf.mxu3 }
  0xf5   :  { %v754_v50 = vadd.f32 %v753_v27, %v721_v56  ;;  %v662_v56 = vadd.f32 %v1714_v21, %v1723_v43 }
  0xf6   :  { %v847_v28 = vpop.f32.mrf.mxu2  ;;  %v793_v30 = vpop.f32.mrf.mxu0 }
  0xf7   :  { %v816_v31 = vpop.f32.mrf.mxu1  ;;  %v848_v36 = vadd.f32 %v847_v28, %v815_v34  ;;  %v787_v59 = vadd.f32 %v786_v11, %v754_v50  ;;  %v695_v8 = vadd.f32 %v694_v6, %v662_v56 }
  0xf8   :  { %v817_v38 = vadd.f32 %v816_v31, %v784_v35 }
  0xf9   :  { %v868_v46 = vmax.f32 %v848_v36, 0.0  ;;  %v728_v14 = vadd.f32 %v727_v9, %v695_v8  ;;  %v731_v9 = vadd.f32 %v1737_v15, %v698_v24 }
  0xfc   :  { %v755_v39 = vpop.f32.mrf.mxu3 }
  0xfd   :  { %v756_v53 = vadd.f32 %v755_v39, %v723_v49 }
  0xfe   :  { %v849_v40 = vpop.f32.mrf.mxu2  ;;  %v796_v42 = vpop.f32.mrf.mxu0 }
  0xff   :  { %v850_v41 = vadd.f32 %v849_v40, %v817_v38  ;;  %v819_v44 = vpop.f32.mrf.mxu1  ;;  %v789_v62 = vadd.f32 %v788_v16, %v756_v53 }
 0x100   :  { %v820_v61 = vadd.f32 %v819_v44, %v787_v59 }
 0x101   :  { %v869_v47 = vmax.f32 %v850_v41, 0.0 }
 0x103   :  { %v1300_v33 = vpack.c.bf16 %v869_v47, %v868_v46 }
 0x104   :  { %v758_v51 = vpop.f32.mrf.mxu3 }
 0x105   :  { %1312 = vst [vmem:[%s1769_s3 + $0x8] sm:$0xff] %v1300_v33   ;;  %v759_v17 = vadd.f32 %v758_v51, %v1729_v4 }
 0x106   :  { %v852_v52 = vpop.f32.mrf.mxu2  ;;  %v798_v55 = vpop.f32.mrf.mxu0 }
 0x107   :  { %v821_v57 = vpop.f32.mrf.mxu1  ;;  %v853_v63 = vadd.f32 %v852_v52, %v820_v61  ;;  %v792_v43 = vadd.f32 %v791_v22, %v759_v17 }
 0x108   :  { %v822_v37 = vadd.f32 %v821_v57, %v789_v62 }
 0x109   :  { %v870_v3 = vmax.f32 %v853_v63, 0.0 }
 0x10c   :  { %v760_v0 = vpop.f32.mrf.mxu3 }
 0x10d   :  { %v761_v18 = vadd.f32 %v760_v0, %v728_v14 }
 0x10e   :  { %v854_v1 = vpop.f32.mrf.mxu2  ;;  %v809_v2 = vpop.f32.mrf.mxu0 }
 0x10f   :  { %v855_v58 = vadd.f32 %v854_v1, %v822_v37  ;;  %v824_v60 = vpop.f32.mrf.mxu1  ;;  %v794_v25 = vadd.f32 %v793_v30, %v761_v18  ;;  %v810_v21 = vadd.f32 %v809_v2, %v1731_v7 }
 0x110   :  { %v825_v6 = vadd.f32 %v824_v60, %v792_v43 }
 0x111   :  { %v871_v5 = vmax.f32 %v855_v58, 0.0 }
 0x113   :  { %v1305_v10 = vpack.c.bf16 %v871_v5, %v870_v3 }
 0x114   :  { %v763_v11 = vpop.f32.mrf.mxu3 }
 0x115   :  { %1313 = vst [vmem:[%s1769_s3 + $0x10] sm:$0xff] %v1305_v10   ;;  %v764_v29 = vadd.f32 %v763_v11, %v731_v9 }
 0x116   :  { %v857_v16 = vpop.f32.mrf.mxu2  ;;  %v811_v19 = vpop.f32.mrf.mxu0 }
 0x117   :  { %v826_v20 = vpop.f32.mrf.mxu1  ;;  %v858_v4 = vadd.f32 %v857_v16, %v825_v6  ;;  %v797_v39 = vadd.f32 %v796_v42, %v764_v29  ;;  %v812_v12 = vadd.f32 %v811_v19, %v1735_v13 }
 0x118   :  { %v827_v26 = vadd.f32 %v826_v20, %v794_v25 }
 0x119   :  { %v872_v35 = vmax.f32 %v858_v4, 0.0 }
 0x11c   :  { %v765_v27 = vpop.f32.mrf.mxu3 }
 0x11e   :  { %v859_v28 = vpop.f32.mrf.mxu2  ;;  %v842_v32 = vpop.f32.mrf.mxu0 }
 0x11f   :  { %v860_v31 = vadd.f32 %v859_v28, %v827_v26  ;;  %v829_v34 = vpop.f32.mrf.mxu1  ;;  %v843_v15 = vadd.f32 %v842_v32, %v810_v21 }
 0x120   :  { %v830_v54 = vadd.f32 %v829_v34, %v797_v39 }
 0x121   :  { %v873_v36 = vmax.f32 %v860_v31, 0.0  ;;  %v866_v46 = vmax.f32 %v843_v15, 0.0 }
 0x123   :  { %v1310_v38 = vpack.c.bf16 %v873_v36, %v872_v35 }
 0x125   :  { %1314 = vst [vmem:[%s1769_s3 + $0x18] sm:$0xff] %v1310_v38  }
 0x126   :  { %v862_v22 = vpop.f32.mrf.mxu2  ;;  %v844_v40 = vpop.f32.mrf.mxu0 }
 0x127   :  { %v863_v30 = vadd.f32 %v862_v22, %v830_v54  ;;  %v831_v41 = vpop.f32.mrf.mxu1  ;;  %v845_v44 = vadd.f32 %v844_v40, %v812_v12 }
 0x129   :  { %v874_v45 = vmax.f32 %v863_v30, 0.0  ;;  %v867_v47 = vmax.f32 %v845_v44, 0.0 }
 0x12b   :  { %v883_v48 = vpack.c.bf16 %v874_v45, %v874_v45  ;;  %v1295_v42 = vpack.c.bf16 %v867_v47, %v866_v46 }
 0x12d   :  { %892 = vst [vmem:[%s1769_s3 + $0x20] sm:$0xf] %v883_v48 }
 0x12e   :  { %1296 = vst [vmem:[%s1769_s3] sm:$0xff] %v1295_v42   ;;  %v864_v7 = vpop.f32.mrf.mxu2 }

// kernel: cnn_forward.7
= control target key start
LH: loop header
LB: loop body
LE: loop exit
PB: predicated region body
PF: predicated region fallthrough
CT: control target
= control target key end

     0   :  { %s1557_s0 = inlined_call_operand.vmem [shape: bf16[2,1152], index: 0, kind: input, shape index: {}]   ;;  %s1558_s1 = inlined_call_operand.vmem [shape: bf16[1152,128], index: 1, kind: input, shape index: {}]   ;;  %s1559_s2 = inlined_call_operand.vmem [shape: f32[1,128], index: 2, kind: input, shape index: {}]   ;;  %s1560_s3 = inlined_call_operand.vmem [shape: bf16[128,128], index: 3, kind: input, shape index: {}]   ;;  %s1561_s4 = inlined_call_operand.vmem [shape: f32[1,128], index: 4, kind: input, shape index: {}]   ;;  %s1562_s5 = inlined_call_operand.hbm [shape: f32[2,128], index: 5, kind: output, shape index: {}]  }
   0x1   :  { %v1169_v0 = vld [vmem:[%s1558_s1 + $0x38] sm:$0xff]  ;;  %v1168_v4 = vld [vmem:[%s1558_s1 + $0x30] sm:$0xff]  ;;  %v1167_v8 = vld [vmem:[%s1558_s1 + $0x28] sm:$0xff] }
   0x2   :  { %v1185_v1 = vld [vmem:[%s1558_s1 + $0xb8] sm:$0xff]  ;;  %625 = vmatpush.bf16.msra.mxu0 %v1169_v0  ;;  %v1184_v5 = vld [vmem:[%s1558_s1 + $0xb0] sm:$0xff]  ;;  %v1183_v9 = vld [vmem:[%s1558_s1 + $0xa8] sm:$0xff] }
   0x3   :  { %v1193_v2 = vld [vmem:[%s1558_s1 + $0xf8] sm:$0xff]  ;;  %651 = vmatpush.bf16.msra.mxu2 %v1185_v1  ;;  %v1192_v6 = vld [vmem:[%s1558_s1 + $0xf0] sm:$0xff]  ;;  %v1191_v10 = vld [vmem:[%s1558_s1 + $0xe8] sm:$0xff] }
   0x4   :  { %v1177_v3 = vld [vmem:[%s1558_s1 + $0x78] sm:$0xff]  ;;  %664 = vmatpush.bf16.msra.mxu3 %v1193_v2  ;;  %v1176_v7 = vld [vmem:[%s1558_s1 + $0x70] sm:$0xff]  ;;  %v1175_v11 = vld [vmem:[%s1558_s1 + $0x68] sm:$0xff] }
   0x5   :  { %638 = vmatpush.bf16.msra.mxu1 %v1177_v3  ;;  %v1166_v12 = vld [vmem:[%s1558_s1 + $0x20] sm:$0xff]  ;;  %v1165_v16 = vld [vmem:[%s1558_s1 + $0x18] sm:$0xff]  ;;  %v1164_v21 = vld [vmem:[%s1558_s1 + $0x10] sm:$0xff] }
   0x6   :  { %626 = vmatpush.bf16.msra.mxu0 %v1168_v4  ;;  %v1182_v13 = vld [vmem:[%s1558_s1 + $0xa0] sm:$0xff]  ;;  %v1181_v17 = vld [vmem:[%s1558_s1 + $0x98] sm:$0xff]  ;;  %v1180_v22 = vld [vmem:[%s1558_s1 + $0x90] sm:$0xff] }
   0x7   :  { %652 = vmatpush.bf16.msra.mxu2 %v1184_v5  ;;  %v1190_v14 = vld [vmem:[%s1558_s1 + $0xe0] sm:$0xff]  ;;  %v1189_v18 = vld [vmem:[%s1558_s1 + $0xd8] sm:$0xff] }
   0x8   :  { %665 = vmatpush.bf16.msra.mxu3 %v1192_v6  ;;  %v1174_v15 = vld [vmem:[%s1558_s1 + $0x60] sm:$0xff]  ;;  %v1173_v19 = vld [vmem:[%s1558_s1 + $0x58] sm:$0xff] }
   0x9   :  { %639 = vmatpush.bf16.msra.mxu1 %v1176_v7  ;;  %v21_v20 = vld [vmem:[%s1557_s0] sm:$0xff] }
   0xa   :  { %627 = vmatpush.bf16.msra.mxu0 %v1167_v8  ;;  %172 = vst [vmem:[#allocation1] ss:$9 sm:$0xff] %v21_v20 }
   0xb   :  { %653 = vmatpush.bf16.msra.mxu2 %v1183_v9 }
   0xc   :  { %666 = vmatpush.bf16.msra.mxu3 %v1191_v10 }
   0xd   :  { %640 = vmatpush.bf16.msra.mxu1 %v1175_v11 }
   0xe   :  { %628 = vmatpush.bf16.msra.mxu0 %v1166_v12 }
   0xf   :  { %654 = vmatpush.bf16.msra.mxu2 %v1182_v13 }
  0x10   :  { %667 = vmatpush.bf16.msra.mxu3 %v1190_v14 }
  0x11   :  { %641 = vmatpush.bf16.msra.mxu1 %v1174_v15 }
  0x12   :  { %629 = vmatpush.bf16.msra.mxu0 %v1165_v16 }
  0x13   :  { %655 = vmatpush.bf16.msra.mxu2 %v1181_v17 }
  0x14   :  { %10 = vsyncpa [#allocation3], 0  ;;  %668 = vmatpush.bf16.msra.mxu3 %v1189_v18  ;;  %v1188_v23 = vld [vmem:[%s1558_s1 + $0xd0] sm:$0xff]  ;;  %v1163_v25 = vld [vmem:[%s1558_s1 + $0x8] sm:$0xff]  ;;  %s1271_s30 = smov [#allocation2]   ;;  %s833_s9 = sshll.u32 %s1562_s5, 4  ;;  %s834_s9 = int_to_ptr.hbm [resolvable:$true] %s833_s9 }
  0x15   :  { %642 = vmatpush.bf16.msra.mxu1 %v1173_v19  ;;  %v1172_v24 = vld [vmem:[%s1558_s1 + $0x50] sm:$0xff]  ;;  %v1179_v26 = vld [vmem:[%s1558_s1 + $0x88] sm:$0xff]  ;;  %v1162_v29 = vld [vmem:[%s1558_s1] sm:$0xff]  ;;  %s831_s6 = sshll.u32 %s1271_s30, 4  ;;  %s832_s6 = int_to_ptr.vmem [resolvable:$true] %s831_s6 }
  0x16   :  { %630 = vmatpush.bf16.msra.mxu0 %v1164_v21  ;;  %v1187_v27 = vld [vmem:[%s1558_s1 + $0xc8] sm:$0xff]  ;;  %v1178_v30 = vld [vmem:[%s1558_s1 + $0x80] sm:$0xff]  ;;  %v1201_v31 = vld [vmem:[%s1558_s1 + $0x138] sm:$0xff] }
  0x17   :  { %656 = vmatpush.bf16.msra.mxu2 %v1180_v22  ;;  %v1171_v28 = vld [vmem:[%s1558_s1 + $0x48] sm:$0xff]  ;;  %v1217_v32 = vld [vmem:[%s1558_s1 + $0x1b8] sm:$0xff]  ;;  %v1186_v33 = vld [vmem:[%s1558_s1 + $0xc0] sm:$0xff] }
  0x18   :  { %669 = vmatpush.bf16.msra.mxu3 %v1188_v23  ;;  %v1170_v34 = vld [vmem:[%s1558_s1 + $0x40] sm:$0xff]  ;;  %v1225_v35 = vld [vmem:[%s1558_s1 + $0x1f8] sm:$0xff]  ;;  %v1200_v37 = vld [vmem:[%s1558_s1 + $0x130] sm:$0xff] }
  0x19   :  { %643 = vmatpush.bf16.msra.mxu1 %v1172_v24  ;;  %v1209_v36 = vld [vmem:[%s1558_s1 + $0x178] sm:$0xff]  ;;  %v1216_v38 = vld [vmem:[%s1558_s1 + $0x1b0] sm:$0xff]  ;;  %v173_v40 = vld [vmem:[#allocation1] sm:$0xff] }
  0x1a   :  { %631 = vmatpush.bf16.msra.mxu0 %v1163_v25  ;;  %v175_v39 = vld [vmem:[#allocation1 + $0x12] sm:$0xff]  ;;  %v176_v43 = vld [vmem:[#allocation1 + $0x1b] sm:$0xff]  ;;  %v174_v44 = vld [vmem:[#allocation1 + $0x9] sm:$0xff] }
  0x1b   :  { %657 = vmatpush.bf16.msra.mxu2 %v1179_v26  ;;  %v1224_v41 = vld [vmem:[%s1558_s1 + $0x1f0] sm:$0xff]  ;;  %v1199_v45 = vld [vmem:[%s1558_s1 + $0x128] sm:$0xff]  ;;  %v180_v49 = vld [vmem:[#allocation1 + $0x3f] sm:$0xff] }
  0x1c   :  { %670 = vmatpush.bf16.msra.mxu3 %v1187_v27  ;;  %v1208_v42 = vld [vmem:[%s1558_s1 + $0x170] sm:$0xff]  ;;  %v1215_v46 = vld [vmem:[%s1558_s1 + $0x1a8] sm:$0xff]  ;;  %v1198_v54 = vld [vmem:[%s1558_s1 + $0x120] sm:$0xff] }
  0x1d   :  { %644 = vmatpush.bf16.msra.mxu1 %v1171_v28  ;;  %v179_v47 = vld [vmem:[#allocation1 + $0x36] sm:$0xff]  ;;  %v177_v48 = vld [vmem:[#allocation1 + $0x24] sm:$0xff]  ;;  %v178_v51 = vld [vmem:[#allocation1 + $0x2d] sm:$0xff] }
  0x1e   :  { %632 = vmatpush.bf16.msra.mxu0 %v1162_v29  ;;  %v22_v50 = vld [vmem:[%s1557_s0 + $0x8] sm:$0x1]  ;;  %v1214_v55 = vld [vmem:[%s1558_s1 + $0x1a0] sm:$0xff]  ;;  %v1197_v58 = vld [vmem:[%s1558_s1 + $0x118] sm:$0xff] }
  0x1f   :  { %658 = vmatpush.bf16.msra.mxu2 %v1178_v30  ;;  %v1223_v52 = vld [vmem:[%s1558_s1 + $0x1e8] sm:$0xff]  ;;  %182 = vst [vmem:[#allocation1] ss:$9 sm:$0xff] %v22_v50  ;;  %v1222_v56 = vld [vmem:[%s1558_s1 + $0x1e0] sm:$0xff]  ;;  %v1213_v59 = vld [vmem:[%s1558_s1 + $0x198] sm:$0xff] }
  0x20   :  { %671 = vmatpush.bf16.msra.mxu3 %v1186_v33  ;;  %v1207_v53 = vld [vmem:[%s1558_s1 + $0x168] sm:$0xff]  ;;  %v1206_v57 = vld [vmem:[%s1558_s1 + $0x160] sm:$0xff]  ;;  %v1221_v60 = vld [vmem:[%s1558_s1 + $0x1d8] sm:$0xff] }
  0x21   :  { %645 = vmatpush.bf16.msra.mxu1 %v1170_v34  ;;  %633 = vmatmul.bf16.vlgmr.msra.gmra.mxu0 %v173_v40  ;;  %v1205_v61 = vld [vmem:[%s1558_s1 + $0x158] sm:$0xff]  ;;  %v1196_v62 = vld [vmem:[%s1558_s1 + $0x110] sm:$0xff]  ;;  %v1195_v2 = vld [vmem:[%s1558_s1 + $0x108] sm:$0xff] }
  0x22   :  { %677 = vmatpush.bf16.msrb.mxu0 %v1201_v31  ;;  %659 = vmatmul.bf16.vlgmr.msra.gmra.mxu2 %v175_v39  ;;  %v1212_v63 = vld [vmem:[%s1558_s1 + $0x190] sm:$0xff]  ;;  %v1211_v3 = vld [vmem:[%s1558_s1 + $0x188] sm:$0xff]  ;;  %v1194_v6 = vld [vmem:[%s1558_s1 + $0x100] sm:$0xff] }
  0x23   :  { %703 = vmatpush.bf16.msrb.mxu2 %v1217_v32  ;;  %672 = vmatmul.bf16.vlgmr.msra.gmra.mxu3 %v176_v43  ;;  %v1220_v0 = vld [vmem:[%s1558_s1 + $0x1d0] sm:$0xff]  ;;  %v1219_v4 = vld [vmem:[%s1558_s1 + $0x1c8] sm:$0xff]  ;;  %v1210_v7 = vld [vmem:[%s1558_s1 + $0x180] sm:$0xff] }
  0x24   :  { %716 = vmatpush.bf16.msrb.mxu3 %v1225_v35  ;;  %646 = vmatmul.bf16.vlgmr.msra.gmra.mxu1 %v174_v44  ;;  %v1204_v1 = vld [vmem:[%s1558_s1 + $0x150] sm:$0xff]  ;;  %v1203_v5 = vld [vmem:[%s1558_s1 + $0x148] sm:$0xff]  ;;  %v1233_v8 = vld [vmem:[%s1558_s1 + $0x238] sm:$0xff] }
  0x25   :  { %690 = vmatpush.bf16.msrb.mxu1 %v1209_v36  ;;  %v1218_v9 = vld [vmem:[%s1558_s1 + $0x1c0] sm:$0xff]  ;;  %v1232_v11 = vld [vmem:[%s1558_s1 + $0x230] sm:$0xff]  ;;  %v1231_v12 = vld [vmem:[%s1558_s1 + $0x228] sm:$0xff] }
  0x26   :  { %678 = vmatpush.bf16.msrb.mxu0 %v1200_v37  ;;  %v1202_v10 = vld [vmem:[%s1558_s1 + $0x140] sm:$0xff]  ;;  %v1229_v14 = vld [vmem:[%s1558_s1 + $0x218] sm:$0xff]  ;;  %v1228_v15 = vld [vmem:[%s1558_s1 + $0x210] sm:$0xff] }
  0x27   :  { %704 = vmatpush.bf16.msrb.mxu2 %v1216_v38  ;;  %v1230_v13 = vld [vmem:[%s1558_s1 + $0x220] sm:$0xff]  ;;  %v1227_v16 = vld [vmem:[%s1558_s1 + $0x208] sm:$0xff]  ;;  %v1241_v19 = vld [vmem:[%s1560_s3 + $0x38] sm:$0xff] }
  0x28   :  { %717 = vmatpush.bf16.msrb.mxu3 %v1224_v41  ;;  %v1226_v17 = vld [vmem:[%s1558_s1 + $0x200] sm:$0xff]  ;;  %v1240_v22 = vld [vmem:[%s1560_s3 + $0x30] sm:$0xff]  ;;  %v1239_v23 = vld [vmem:[%s1560_s3 + $0x28] sm:$0xff] }
  0x29   :  { %691 = vmatpush.bf16.msrb.mxu1 %v1208_v42  ;;  %v183_v18 = vld [vmem:[#allocation1] sm:$0xff]  ;;  %v1237_v29 = vld [vmem:[%s1560_s3 + $0x18] sm:$0xff]  ;;  %v1236_v32 = vld [vmem:[%s1560_s3 + $0x10] sm:$0xff] }
  0x2a   :  { %679 = vmatpush.bf16.msrb.mxu0 %v1199_v45  ;;  %v1238_v27 = vld [vmem:[%s1560_s3 + $0x20] sm:$0xff]  ;;  %v1235_v33 = vld [vmem:[%s1560_s3 + $0x8] sm:$0xff] }
  0x2b   :  { %705 = vmatpush.bf16.msrb.mxu2 %v1215_v46  ;;  %v1243_v34 = vld [vmem:[%s1559_s2] ss:$0 sm:$0xff] }
  0x2c   :  { %718 = vmatpush.bf16.msrb.mxu3 %v1223_v52  ;;  %v1234_v35 = vld [vmem:[%s1560_s3] sm:$0xff] }
  0x2d   :  { %692 = vmatpush.bf16.msrb.mxu1 %v1207_v53 }
  0x2e   :  { %680 = vmatpush.bf16.msrb.mxu0 %v1198_v54 }
  0x2f   :  { %706 = vmatpush.bf16.msrb.mxu2 %v1214_v55 }
  0x30   :  { %719 = vmatpush.bf16.msrb.mxu3 %v1222_v56 }
  0x31   :  { %693 = vmatpush.bf16.msrb.mxu1 %v1206_v57  ;;  %v1244_v57 = vld [vmem:[%s1561_s4] ss:$0 sm:$0xff] }
  0x32   :  { %681 = vmatpush.bf16.msrb.mxu0 %v1197_v58 }
  0x33   :  { %707 = vmatpush.bf16.msrb.mxu2 %v1213_v59 }
  0x34   :  { %720 = vmatpush.bf16.msrb.mxu3 %v1221_v60 }
  0x35   :  { %694 = vmatpush.bf16.msrb.mxu1 %v1205_v61 }
  0x36   :  { %682 = vmatpush.bf16.msrb.mxu0 %v1196_v62 }
  0x37   :  { %708 = vmatpush.bf16.msrb.mxu2 %v1212_v63 }
  0x38   :  { %721 = vmatpush.bf16.msrb.mxu3 %v1220_v0 }
  0x39   :  { %695 = vmatpush.bf16.msrb.mxu1 %v1204_v1 }
  0x3a   :  { %683 = vmatpush.bf16.msrb.mxu0 %v1195_v2 }
  0x3b   :  { %709 = vmatpush.bf16.msrb.mxu2 %v1211_v3 }
  0x3c   :  { %722 = vmatpush.bf16.msrb.mxu3 %v1219_v4 }
  0x3d   :  { %696 = vmatpush.bf16.msrb.mxu1 %v1203_v5 }
  0x3e   :  { %684 = vmatpush.bf16.msrb.mxu0 %v1194_v6 }
  0x3f   :  { %710 = vmatpush.bf16.msrb.mxu2 %v1210_v7 }
  0x40   :  { %723 = vmatpush.bf16.msrb.mxu3 %v1218_v9 }
  0x41   :  { %697 = vmatpush.bf16.msrb.mxu1 %v1202_v10  ;;  %685 = vmatmul.bf16.vlgmr.msrb.gmra.mxu0 %v177_v48 }
  0x42   :  { %729 = vmatpush.bf16.msra.mxu0 %v1233_v8  ;;  %711 = vmatmul.bf16.vlgmr.msrb.gmra.mxu2 %v179_v47 }
  0x43   :  { %724 = vmatmul.bf16.vlgmr.msrb.gmra.mxu3 %v180_v49 }
  0x44   :  { %698 = vmatmul.bf16.vlgmr.msrb.gmra.mxu1 %v178_v51 }
  0x45   :  { %812 = vmatpush.bf16.msra.mxu1 %v1241_v19 }
  0x46   :  { %730 = vmatpush.bf16.msra.mxu0 %v1232_v11 }
  0x49   :  { %813 = vmatpush.bf16.msra.mxu1 %v1240_v22 }
  0x4a   :  { %731 = vmatpush.bf16.msra.mxu0 %v1231_v12 }
  0x4d   :  { %814 = vmatpush.bf16.msra.mxu1 %v1239_v23 }
  0x4e   :  { %732 = vmatpush.bf16.msra.mxu0 %v1230_v13 }
  0x51   :  { %815 = vmatpush.bf16.msra.mxu1 %v1238_v27 }
  0x52   :  { %733 = vmatpush.bf16.msra.mxu0 %v1229_v14 }
  0x55   :  { %816 = vmatpush.bf16.msra.mxu1 %v1237_v29 }
  0x56   :  { %734 = vmatpush.bf16.msra.mxu0 %v1228_v15 }
  0x59   :  { %817 = vmatpush.bf16.msra.mxu1 %v1236_v32 }
  0x5a   :  { %735 = vmatpush.bf16.msra.mxu0 %v1227_v16 }
  0x5d   :  { %818 = vmatpush.bf16.msra.mxu1 %v1235_v33 }
  0x5e   :  { %736 = vmatpush.bf16.msra.mxu0 %v1226_v17 }
  0x61   :  { %737 = vmatmul.bf16.vlgmr.msra.gmra.mxu0 %v183_v18  ;;  %819 = vmatpush.bf16.msra.mxu1 %v1234_v35 }
  0x9e   :  { %v634_v20 = vpop.f32.mrf.mxu0 }
  0x9f   :  { %v635_v36 = vadd.f32 %v1243_v34, %v634_v20 }
  0xa1   :  { %v647_v21 = vpop.f32.mrf.mxu1 }
  0xa2   :  { %v648_v39 = vadd.f32 %v647_v21, %v635_v36 }
  0xa5   :  { %v660_v24 = vpop.f32.mrf.mxu2 }
  0xa6   :  { %v673_v25 = vpop.f32.mrf.mxu3  ;;  %v636_v26 = vpop.f32.mrf.mxu0  ;;  %v661_v41 = vadd.f32 %v660_v24, %v648_v39 }
  0xa8   :  { %v674_v45 = vadd.f32 %v673_v25, %v661_v41 }
  0xa9   :  { %v649_v28 = vpop.f32.mrf.mxu1 }
  0xad   :  { %v662_v30 = vpop.f32.mrf.mxu2 }
  0xae   :  { %v675_v31 = vpop.f32.mrf.mxu3 }
  0xbe   :  { %v686_v37 = vpop.f32.mrf.mxu0 }
  0xbf   :  { %v687_v47 = vadd.f32 %v686_v37, %v674_v45 }
  0xc1   :  { %v699_v38 = vpop.f32.mrf.mxu1 }
  0xc2   :  { %v700_v49 = vadd.f32 %v699_v38, %v687_v47 }
  0xc5   :  { %v712_v40 = vpop.f32.mrf.mxu2 }
  0xc6   :  { %v725_v42 = vpop.f32.mrf.mxu3  ;;  %v688_v43 = vpop.f32.mrf.mxu0  ;;  %v713_v50 = vadd.f32 %v712_v40, %v700_v49 }
  0xc8   :  { %v726_v51 = vadd.f32 %v725_v42, %v713_v50 }
  0xc9   :  { %v701_v44 = vpop.f32.mrf.mxu1 }
  0xcd   :  { %v714_v46 = vpop.f32.mrf.mxu2 }
  0xce   :  { %v727_v48 = vpop.f32.mrf.mxu3 }
  0xde   :  { %v738_v52 = vpop.f32.mrf.mxu0 }
  0xdf   :  { %v739_v53 = vadd.f32 %v738_v52, %v726_v51 }
  0xe1   :  { %v742_v54 = vmax.f32 %v739_v53, 0.0 }
  0xe3   :  { %v743_v55 = vpack.c.bf16 %v742_v54, %v742_v54 }
  0xe5   :  { %820 = vmatmul.bf16.vlgmr.msra.gmra.mxu1 %v743_v55 }
  0xe6   :  { %v740_v56 = vpop.f32.mrf.mxu0 }
 0x162   :  { %v821_v58 = vpop.f32.mrf.mxu1 }
 0x163   :  { %v822_v59 = vadd.f32 %v1244_v57, %v821_v58 }
 0x165   :  { %825 = vst [vmem:[#allocation2] sm:$0x3] %v822_v59 }
 0x166   :  { %836 = dma.vmem_to_hbm [thread:$0]  %s832_s6, 32, %s834_s9, [#allocation3]  }
 0x16a   :  { %v823_v60 = vpop.f32.mrf.mxu1 }
 0x16b   :  { %1269 = dma.done.wait [#allocation3], 32  }
 0x16c   :  { %1270 = vsyncadd [#allocation3], 4294967264 }
 0x16d   :  { %841 = vsyncpa [#allocation3], 1 }

</bundles_post_ra>
